<compile_context>
chip_gen: v7x
topology: tpu7x:2x2x1
jax: 0.10.0
libtpu: 0.0.40
codegen_flags: <defaults>
</compile_context>

<pallas_src>
import functools
import math

import jax
import jax.numpy as jnp
from jax.experimental import pallas as pl
from jax.experimental.pallas import tpu as pltpu

_LN_EPS = 1e-5
_LANE = 128                       # TPU vreg lane width
_VMEM_LIMIT = 48 * 1024 * 1024    # explicit scoped-VMEM limit (safe on v5e/v6e/v7x)


def _round_up(x, m):
    return ((x + m - 1) // m) * m


def _softplus(x):
    # Softplus(beta=1, threshold=20), matching torch.nn.Softplus.
    return jnp.where(x > 20.0, x, jnp.log1p(jnp.exp(jnp.minimum(x, 20.0))))


# ----------------------------------------------------------------------------
# Kernel 1: fully fused MolConv3 body (per batch sample).
#   dist branch:   w_d * dist -> LN(1,N,k)    -> sigmoid        (full width)
#   center branch: W_c x_c    -> LN(Cm,N,k)   -> sigmoid        (conv once at Np, tiled over k)
#   combine:       feat = wd * feat_n + fc    (lane-masked)
#   update branch: ONE matmul W_u feat -> LN(Co,N,k) -> softplus
#   reduce:        sum over k -> * mask/valid_count
# Spatial layout: (k, Np) flattened with Np innermost, Lp = k*Np, Np % 128 == 0.
# Padded lanes / padded channels carry zeros through every LN sum; denominators
# use the REAL counts, so results equal the unpadded computation.
# ----------------------------------------------------------------------------
def _molconv_kernel(dist_ref, xc_ref, fn_ref, msc_ref, lm_ref,
                    cw_ref, cg_ref, cb_ref,
                    dw_ref, dg_ref, db_ref,
                    uw_ref, ug_ref, ub_ref,
                    o_ref, *, k, n_real, c_mid_real, c_out_real):
    np_pad = msc_ref.shape[-1]            # lane-padded point_num
    l_real = k * n_real                   # real spatial extent N*k

    # ---- dist branch (full width; padded dist lanes are 0) ----
    dw = dw_ref[0, 0]                                                    # scalar from SMEM
    yd = dw * dist_ref[...]                                              # (1, Lp)
    inv_l = 1.0 / l_real
    md = jnp.sum(yd) * inv_l
    vd = jnp.maximum(jnp.sum(yd * yd) * inv_l - md * md, 0.0)
    rd = jax.lax.rsqrt(vd + _LN_EPS)
    wd = jax.nn.sigmoid((yd - md) * rd * dg_ref[...] + db_ref[...])      # (1, Lp)

    # ---- center branch: 1x1 conv once at Np (identical over k), then LN+sigmoid ----
    yc = jnp.dot(cw_ref[...], xc_ref[...],
                 preferred_element_type=jnp.float32)                     # (Cm_p, Np)
    inv_cn = 1.0 / (c_mid_real * n_real)   # stats over (C_mid,N,k) == over (C_mid,N)
    mc = jnp.sum(yc) * inv_cn
    vc = jnp.maximum(jnp.sum(yc * yc) * inv_cn - mc * mc, 0.0)
    ycn = (yc - mc) * jax.lax.rsqrt(vc + _LN_EPS)
    ycn_t = jnp.concatenate([ycn] * k, axis=-1)                          # tile over k -> (Cm_p, Lp)
    fc = jax.nn.sigmoid(ycn_t * cg_ref[...] + cb_ref[...])

    # ---- combine; lane mask zeroes padded spatial positions so they do not
    #      pollute the update-branch LayerNorm statistics ----
    feat = (wd * fn_ref[...] + fc) * lm_ref[...]                         # (Cm_p, Lp) f32

    # ---- update branch: ONE MXU matmul over the full k*Np lane extent ----
    yu = jnp.dot(uw_ref[...], feat.astype(jnp.bfloat16),
                 preferred_element_type=jnp.float32)                     # (Co_p, Lp)
    inv_u = 1.0 / (c_out_real * l_real)
    mu = jnp.sum(yu) * inv_u
    vu = jnp.maximum(jnp.sum(yu * yu) * inv_u - mu * mu, 0.0)
    ru = jax.lax.rsqrt(vu + _LN_EPS)
    sp = _softplus((yu - mu) * ru * ug_ref[...] + ub_ref[...])

    # ---- k-reduction: sum of k lane-contiguous, 128-aligned slices ----
    red = sp[:, 0:np_pad]
    for j in range(1, k):
        red = red + sp[:, j * np_pad:(j + 1) * np_pad]

    # masked points (and padded lanes) get 0 via (mask / valid_count)
    o_ref[...] = (red * msc_ref[...]).astype(o_ref.dtype)


# ----------------------------------------------------------------------------
# Kernel 2: final Conv1d + LayerNorm + LeakyReLU(0.2) + masked max/mean pool.
# Consumes the per-layer outputs directly (channel-split weight slabs -> no
# concat round-trip) and processes a whole batch block per grid step.
# ----------------------------------------------------------------------------
def _final_kernel(*refs, n_layers, n_real, emb_real):
    x_refs = refs[:n_layers]
    w_refs = refs[n_layers:2 * n_layers]
    g_ref, b_ref, m01_ref, msc_ref, o_ref = refs[2 * n_layers:]
    bblk = x_refs[0].shape[0]
    inv = 1.0 / (emb_real * n_real)

    rows = []
    for s in range(bblk):                                   # static unroll over batch block
        y = jnp.dot(w_refs[0][...], x_refs[0][s], preferred_element_type=jnp.float32)
        for xr, wr in zip(x_refs[1:], w_refs[1:]):
            y = y + jnp.dot(wr[...], xr[s], preferred_element_type=jnp.float32)
        mean = jnp.sum(y) * inv
        var = jnp.maximum(jnp.sum(y * y) * inv - mean * mean, 0.0)
        y = (y - mean) * jax.lax.rsqrt(var + _LN_EPS) * g_ref[...] + b_ref[...]
        y = jnp.where(y >= 0.0, y, 0.2 * y)                 # LeakyReLU(negative_slope=0.2)
        m01 = m01_ref[s]                                    # (1, Np) 0/1 mask
        msc = msc_ref[s]                                    # (1, Np) mask / valid_count
        # NOTE: a sample with zero valid points yields -inf here, matching the
        # PyTorch reference (masked_fill(-inf) followed by max).
        mx = jnp.max(jnp.where(m01 > 0.0, y, -jnp.inf), axis=-1)    # (Emb_p,)
        av = jnp.sum(y * msc, axis=-1)                              # (Emb_p,)
        rows.append((mx + av).reshape(1, -1))
    o_ref[...] = jnp.concatenate(rows, axis=0).astype(o_ref.dtype)


# ----------------------------------------------------------------------------
# Plain-JAX glue: MolConv3._generate_feat (top-k neighbors + gather + Gram),
# producing tensors already in the (k, N)-innermost kernel layout.
# ----------------------------------------------------------------------------
def _l2_normalize_dim1(x, eps=1e-12):
    norm = jnp.sqrt(jnp.sum(x * x, axis=1, keepdims=True))
    return x / jnp.maximum(norm, eps)


def generate_feat(x, k, remove_xyz):
    # x: (B, D, N)
    xt = jnp.transpose(x, (0, 2, 1))                            # (B, N, D)
    inner = -2.0 * jnp.einsum("bnd,bdm->bnm", xt, x)            # (B, N, N)
    xx = jnp.sum(x * x, axis=1, keepdims=True)                  # (B, 1, N)
    pdist = -xx - inner - jnp.transpose(xx, (0, 2, 1))          # (B, N, N)
    neg_d, idx = jax.lax.top_k(pdist, k)                        # nearest-k (largest of -dist^2)
    dist = -neg_d                                               # (B, N, k)
    graph_feat = jax.vmap(lambda xb, ib: xb[ib])(xt, idx)       # (B, N, k, D)
    gm = jnp.einsum("bnkd,bnjd->bnkj", graph_feat, graph_feat)  # (B, N, k, k)
    gm = _l2_normalize_dim1(gm)
    sub = gm[:, :, :, 0:1]                                      # (B, N, k, 1)
    sub_gm = sub * jnp.swapaxes(sub, -1, -2)                    # (B, N, k, k)
    sub_gm = _l2_normalize_dim1(sub_gm)

    # kernel layout: spatial (k, N) with N innermost
    dist_kn = jnp.transpose(dist, (0, 2, 1))[:, None, :, :]     # (B, 1, k, N)
    gm2_kn = jnp.transpose(sub_gm, (0, 3, 2, 1))                # (B, k, k, N)
    if remove_xyz:
        xc = x[:, 3:, :]                                        # (B, D-3, N)
        fn = jnp.transpose(graph_feat[..., 3:], (0, 3, 2, 1))   # (B, D-3, k, N)
    else:
        xc = x
        fn = jnp.transpose(graph_feat, (0, 3, 2, 1))            # (B, D, k, N)
    return dist_kn, gm2_kn, xc, fn


def _ln_to_kernel(p, c_pad, n_pad):
    # PyTorch LayerNorm weight/bias (C, N, k) -> kernel layout (C_pad, k*Np),
    # N innermost, zero padded (padded positions never see gamma/beta).
    c, n, k = p.shape
    q = jnp.transpose(p, (0, 2, 1))                             # (C, k, N)
    q = jnp.pad(q, ((0, c_pad - c), (0, 0), (0, n_pad - n)))
    return q.reshape(c_pad, k * n_pad)


# ----------------------------------------------------------------------------
# MolConv3 + Encoder forward
# ----------------------------------------------------------------------------
def mol_conv3_forward(p, x, m_scaled_p, lane_mask, k, remove_xyz):
    B, _, N = x.shape
    Np = m_scaled_p.shape[-1]
    Lp = k * Np

    dist, gm2, xc, fn = generate_feat(x, k, remove_xyz)         # real (unpadded) shapes
    fn = jnp.concatenate([fn, gm2], axis=1)                     # (B, C_mid, k, N)
    C_mid, C_in = fn.shape[1], xc.shape[1]
    C_out = p["update_w"].shape[0]
    Ci_p = _round_up(C_in, 8)
    Cm_p = _round_up(C_mid, 16)          # bf16 rows pack 16 per sublane tile
    Co_p = _round_up(C_out, 8)

    # Zero-pad spatial (N -> Np) and channel dims; padded positions carry zeros
    # through every LayerNorm sum, real-count denominators keep stats exact.
    dist = jnp.pad(dist, ((0, 0), (0, 0), (0, 0), (0, Np - N))).reshape(B, 1, Lp)
    fn = jnp.pad(fn, ((0, 0), (0, Cm_p - C_mid), (0, 0), (0, Np - N)))
    fn = fn.reshape(B, Cm_p, Lp).astype(jnp.bfloat16)           # biggest input -> bf16
    xc = jnp.pad(xc, ((0, 0), (0, Ci_p - C_in), (0, Np - N))).astype(jnp.bfloat16)

    cw = jnp.pad(p["center_w"], ((0, Cm_p - C_mid), (0, Ci_p - C_in))).astype(jnp.bfloat16)
    uw = jnp.pad(p["update_w"], ((0, Co_p - C_out), (0, Cm_p - C_mid))).astype(jnp.bfloat16)
    cg = _ln_to_kernel(p["center_g"], Cm_p, Np)
    cb = _ln_to_kernel(p["center_b"], Cm_p, Np)
    dg = _ln_to_kernel(p["dist_g"], 1, Np)
    db = _ln_to_kernel(p["dist_b"], 1, Np)
    ug = _ln_to_kernel(p["update_g"], Co_p, Np)
    ub = _ln_to_kernel(p["update_b"], Co_p, Np)

    kern = functools.partial(_molconv_kernel, k=k, n_real=N,
                             c_mid_real=C_mid, c_out_real=C_out)
    return pl.pallas_call(
        kern,
        out_shape=jax.ShapeDtypeStruct((B, Co_p, Np), jnp.float32),
        grid=(B,),
        in_specs=[
            pl.BlockSpec((None, 1, Lp), lambda b: (b, 0, 0)),      # dist       (1, Lp)
            pl.BlockSpec((None, Ci_p, Np), lambda b: (b, 0, 0)),   # center x   (Ci_p, Np)
            pl.BlockSpec((None, Cm_p, Lp), lambda b: (b, 0, 0)),   # neighbors  (Cm_p, Lp)
            pl.BlockSpec((None, 1, Np), lambda b: (b, 0, 0)),      # mask/count (1, Np)
            pl.BlockSpec((1, Lp), lambda b: (0, 0)),               # lane-valid mask
            pl.BlockSpec((Cm_p, Ci_p), lambda b: (0, 0)),          # center W
            pl.BlockSpec((Cm_p, Lp), lambda b: (0, 0)),            # center gamma
            pl.BlockSpec((Cm_p, Lp), lambda b: (0, 0)),            # center beta
            pl.BlockSpec(memory_space=pltpu.MemorySpace.SMEM),     # dist W (scalar, SMEM)
            pl.BlockSpec((1, Lp), lambda b: (0, 0)),               # dist gamma
            pl.BlockSpec((1, Lp), lambda b: (0, 0)),               # dist beta
            pl.BlockSpec((Co_p, Cm_p), lambda b: (0, 0)),          # update W
            pl.BlockSpec((Co_p, Lp), lambda b: (0, 0)),            # update gamma
            pl.BlockSpec((Co_p, Lp), lambda b: (0, 0)),            # update beta
        ],
        out_specs=pl.BlockSpec((None, Co_p, Np), lambda b: (b, 0, 0)),
        compiler_params=pltpu.CompilerParams(
            dimension_semantics=("parallel",),
            vmem_limit_bytes=_VMEM_LIMIT),
    )(dist, xc, fn, m_scaled_p, lane_mask,
      cw, cg, cb, p["dist_w"], dg, db, uw, ug, ub)


def _pick_batch_block(b, max_blk=8):
    for cand in (max_blk, 4, 2, 1):
        if cand <= b and b % cand == 0:
            return cand
    return 1


def encoder_forward(params, x, idx_base, mask, k):
    # idx_base accepted for API parity with the PyTorch module; the JAX per-batch
    # gather does not need the flattened-index offset.
    del idx_base
    B, _, N = x.shape
    Np = _round_up(N, _LANE)

    maskf = mask.astype(jnp.float32)                                           # (B, N)
    inv_cnt = 1.0 / jnp.maximum(jnp.sum(maskf, axis=1, keepdims=True), 0.1)    # (B, 1)
    m_scaled = jnp.pad((maskf * inv_cnt).reshape(B, 1, N),
                       ((0, 0), (0, 0), (0, Np - N)))                          # mask / valid_count
    mask01 = jnp.pad(maskf.reshape(B, 1, N), ((0, 0), (0, 0), (0, Np - N)))
    lane_mask = jnp.tile((jnp.arange(Np) < N).astype(jnp.float32), k).reshape(1, k * Np)

    # ---- MolConv3 stack: one fused Pallas kernel per layer ----
    xs_pad, chan_info = [], []
    inp = x
    for i, lp in enumerate(params["layers"]):
        out_p = mol_conv3_forward(lp, inp, m_scaled, lane_mask, k, remove_xyz=(i == 0))
        c_out = lp["update_w"].shape[0]
        xs_pad.append(out_p.astype(jnp.bfloat16))               # (B, Co_p, Np) for final kernel
        chan_info.append((c_out, out_p.shape[1]))
        inp = out_p[:, :c_out, :N]                               # strip padding for next layer

    # ---- final Conv1d + LN + LeakyReLU + masked max/mean pool ----
    emb = params["conv_w"].shape[0]
    Emb_p = _round_up(emb, 8)
    w_slabs, off = [], 0
    for c_out, c_pad in chan_info:
        w_i = params["conv_w"][:, off:off + c_out]               # (emb, c_out) slab of the 1x1 conv
        w_slabs.append(jnp.pad(w_i, ((0, Emb_p - emb), (0, c_pad - c_out))).astype(jnp.bfloat16))
        off += c_out
    g = jnp.pad(params["conv_g"], ((0, Emb_p - emb), (0, Np - N)))
    b = jnp.pad(params["conv_b"], ((0, Emb_p - emb), (0, Np - N)))

    n_layers = len(xs_pad)
    bblk = _pick_batch_block(B)
    in_specs = ([pl.BlockSpec((bblk, cp, Np), lambda i: (i, 0, 0)) for _, cp in chan_info]
                + [pl.BlockSpec((Emb_p, cp), lambda i: (0, 0)) for _, cp in chan_info]
                + [pl.BlockSpec((Emb_p, Np), lambda i: (0, 0)),
                   pl.BlockSpec((Emb_p, Np), lambda i: (0, 0)),
                   pl.BlockSpec((bblk, 1, Np), lambda i: (i, 0, 0)),
                   pl.BlockSpec((bblk, 1, Np), lambda i: (i, 0, 0))])
    out = pl.pallas_call(
        functools.partial(_final_kernel, n_layers=n_layers, n_real=N, emb_real=emb),
        out_shape=jax.ShapeDtypeStruct((B, Emb_p), jnp.float32),
        grid=(B // bblk,),
        in_specs=in_specs,
        out_specs=pl.BlockSpec((bblk, Emb_p), lambda i: (i, 0)),
        compiler_params=pltpu.CompilerParams(
            dimension_semantics=("parallel",),
            vmem_limit_bytes=_VMEM_LIMIT),
    )(*xs_pad, *w_slabs, g, b, mask01, m_scaled)
    return out[:, :emb]


# ----------------------------------------------------------------------------
# Deterministic parameter init (PyTorch module shapes; LN weight=1, bias=0)
# ----------------------------------------------------------------------------
def init_molconv_params(key, in_dim, out_dim, N, k, remove_xyz):
    if remove_xyz:
        c_in, c_mid = in_dim - 3, in_dim + k - 3
    else:
        c_in, c_mid = in_dim, in_dim + k
    k1, k2, k3 = jax.random.split(key, 3)

    def w_init(kk, co, ci):
        return (jax.random.normal(kk, (co, ci), dtype=jnp.float32)
                / math.sqrt(max(ci, 1))).astype(jnp.float32)

    return dict(
        dist_w=w_init(k1, 1, 1),
        dist_g=jnp.ones((1, N, k), jnp.float32),
        dist_b=jnp.zeros((1, N, k), jnp.float32),
        center_w=w_init(k2, c_mid, c_in),
        center_g=jnp.ones((c_mid, N, k), jnp.float32),
        center_b=jnp.zeros((c_mid, N, k), jnp.float32),
        update_w=w_init(k3, out_dim, c_mid),
        update_g=jnp.ones((out_dim, N, k), jnp.float32),
        update_b=jnp.zeros((out_dim, N, k), jnp.float32),
    )


def init_encoder_params(key, in_dim, layers, emb_dim, N, k):
    keys = jax.random.split(key, len(layers) + 1)
    layer_params = []
    prev = in_dim
    for i, out_dim in enumerate(layers):
        layer_params.append(
            init_molconv_params(keys[i], prev, out_dim, N, k, remove_xyz=(i == 0)))
        prev = out_dim
    conv_w = (jax.random.normal(keys[-1], (emb_dim, emb_dim), jnp.float32)
              / math.sqrt(emb_dim)).astype(jnp.float32)
    return dict(
        layers=layer_params,
        conv_w=conv_w,
        conv_g=jnp.ones((emb_dim, N), jnp.float32),
        conv_b=jnp.zeros((emb_dim, N), jnp.float32),
    )


if __name__ == "__main__":
    B, in_dim, N, K = 2, 8, 16, 4
    layers = [16, 16]
    emb_dim = sum(layers)   # 32, must equal sum(layers) for the final channel-split conv

    key = jax.random.PRNGKey(0)
    kx, kp = jax.random.split(key)
    x = jax.random.normal(kx, (B, in_dim, N), dtype=jnp.float32)
    # first sample has 12 valid points, second has all 16
    mask = jnp.stack([jnp.arange(N) < 12, jnp.arange(N) < 16], axis=0)       # (B, N) bool
    idx_base = (jnp.arange(B) * N).reshape(B, 1, 1).astype(jnp.int32)

    params = init_encoder_params(kp, in_dim, layers, emb_dim, N, K)

    fwd = jax.jit(encoder_forward, static_argnums=(4,))
    out = fwd(params, x, idx_base, mask, K)
    out = jax.block_until_ready(out)

    assert out.shape == (B, emb_dim), out.shape
    assert bool(jnp.all(jnp.isfinite(out)))
    print("KERNEL_OK")
</pallas_src>

<mosaic_0001>
module attributes {stable_mosaic.version = 11 : i64} {
  func.func @_molconv_kernel(%arg0: i32, %arg1: memref<1x1x512xf32, #tpu.memory_space<vmem>>, %arg2: memref<1x8x128xbf16, #tpu.memory_space<vmem>>, %arg3: memref<1x16x512xbf16, #tpu.memory_space<vmem>>, %arg4: memref<1x1x128xf32, #tpu.memory_space<vmem>>, %arg5: memref<1x512xf32, #tpu.memory_space<vmem>>, %arg6: memref<16x8xbf16, #tpu.memory_space<vmem>>, %arg7: memref<16x512xf32, #tpu.memory_space<vmem>>, %arg8: memref<16x512xf32, #tpu.memory_space<vmem>>, %arg9: memref<1x1xf32, #tpu.memory_space<smem>>, %arg10: memref<1x512xf32, #tpu.memory_space<vmem>>, %arg11: memref<1x512xf32, #tpu.memory_space<vmem>>, %arg12: memref<16x16xbf16, #tpu.memory_space<vmem>>, %arg13: memref<16x512xf32, #tpu.memory_space<vmem>>, %arg14: memref<16x512xf32, #tpu.memory_space<vmem>>, %arg15: memref<1x16x128xf32, #tpu.memory_space<vmem>>) attributes {dimension_semantics = [#tpu.dimension_semantics<parallel>], iteration_bounds = array<i64: 2>, scalar_prefetch = 0 : i64, scratch_operands = 0 : i64, tpu.core_type = #tpu.core_type<tc>, window_params = [{transform_indices = @transform_0, window_bounds = array<i64: 1, 1, 512>}, {transform_indices = @transform_1, window_bounds = array<i64: 1, 8, 128>}, {transform_indices = @transform_2, window_bounds = array<i64: 1, 16, 512>}, {transform_indices = @transform_3, window_bounds = array<i64: 1, 1, 128>}, {pipeline_mode = #tpu.pipeline_mode<synchronous>, transform_indices = @transform_4, window_bounds = array<i64: 1, 512>}, {pipeline_mode = #tpu.pipeline_mode<synchronous>, transform_indices = @transform_5, window_bounds = array<i64: 16, 8>}, {pipeline_mode = #tpu.pipeline_mode<synchronous>, transform_indices = @transform_6, window_bounds = array<i64: 16, 512>}, {pipeline_mode = #tpu.pipeline_mode<synchronous>, transform_indices = @transform_7, window_bounds = array<i64: 16, 512>}, {transform_indices = @transform_8, window_bounds = array<i64: 1, 1>}, {pipeline_mode = #tpu.pipeline_mode<synchronous>, transform_indices = @transform_9, window_bounds = array<i64: 1, 512>}, {pipeline_mode = #tpu.pipeline_mode<synchronous>, transform_indices = @transform_10, window_bounds = array<i64: 1, 512>}, {pipeline_mode = #tpu.pipeline_mode<synchronous>, transform_indices = @transform_11, window_bounds = array<i64: 16, 16>}, {pipeline_mode = #tpu.pipeline_mode<synchronous>, transform_indices = @transform_12, window_bounds = array<i64: 16, 512>}, {pipeline_mode = #tpu.pipeline_mode<synchronous>, transform_indices = @transform_13, window_bounds = array<i64: 16, 512>}, {transform_indices = @transform_14, window_bounds = array<i64: 1, 16, 128>}]} {
    %c0 = arith.constant 0 : index
    %c0_0 = arith.constant 0 : index
    %0 = memref.load %arg9[%c0, %c0_0] : memref<1x1xf32, #tpu.memory_space<smem>>
    %c0_1 = arith.constant 0 : index
    %c0_2 = arith.constant 0 : index
    %c0_3 = arith.constant 0 : index
    %1 = vector.load %arg1[%c0_1, %c0_2, %c0_3] : memref<1x1x512xf32, #tpu.memory_space<vmem>>, vector<1x1x512xf32>
    %2 = vector.shape_cast %1 : vector<1x1x512xf32> to vector<1x512xf32>
    %3 = vector.broadcast %0 : f32 to vector<1x512xf32>
    %4 = arith.mulf %3, %2 : vector<1x512xf32>
    %5 = vector.shape_cast %4 : vector<1x512xf32> to vector<1x1x512xf32>
    %cst = arith.constant dense<0.000000e+00> : vector<1xf32>
    %6 = vector.multi_reduction <add>, %5, %cst [1, 2] : vector<1x1x512xf32> to vector<1xf32>
    %7 = vector.shape_cast %6 : vector<1xf32> to vector<1x1x1xf32>
    %8 = vector.extract %7[0, 0, 0] : f32 from vector<1x1x1xf32>
    %cst_4 = arith.constant 1.562500e-02 : f32
    %9 = arith.mulf %8, %cst_4 : f32
    %10 = arith.mulf %4, %4 : vector<1x512xf32>
    %11 = vector.shape_cast %10 : vector<1x512xf32> to vector<1x1x512xf32>
    %cst_5 = arith.constant dense<0.000000e+00> : vector<1xf32>
    %12 = vector.multi_reduction <add>, %11, %cst_5 [1, 2] : vector<1x1x512xf32> to vector<1xf32>
    %13 = vector.shape_cast %12 : vector<1xf32> to vector<1x1x1xf32>
    %14 = vector.extract %13[0, 0, 0] : f32 from vector<1x1x1xf32>
    %cst_6 = arith.constant 1.562500e-02 : f32
    %15 = arith.mulf %14, %cst_6 : f32
    %16 = arith.mulf %9, %9 : f32
    %17 = arith.subf %15, %16 : f32
    %cst_7 = arith.constant 0.000000e+00 : f32
    %18 = arith.maximumf %17, %cst_7 : f32
    %cst_8 = arith.constant 9.99999974E-6 : f32
    %19 = arith.addf %18, %cst_8 : f32
    %20 = math.rsqrt %19 : f32
    %21 = vector.broadcast %9 : f32 to vector<1x512xf32>
    %22 = arith.subf %4, %21 : vector<1x512xf32>
    %23 = vector.broadcast %20 : f32 to vector<1x512xf32>
    %24 = arith.mulf %22, %23 : vector<1x512xf32>
    %c0_9 = arith.constant 0 : index
    %c0_10 = arith.constant 0 : index
    %25 = vector.load %arg10[%c0_9, %c0_10] : memref<1x512xf32, #tpu.memory_space<vmem>>, vector<1x512xf32>
    %26 = arith.mulf %24, %25 : vector<1x512xf32>
    %c0_11 = arith.constant 0 : index
    %c0_12 = arith.constant 0 : index
    %27 = vector.load %arg11[%c0_11, %c0_12] : memref<1x512xf32, #tpu.memory_space<vmem>>, vector<1x512xf32>
    %28 = arith.addf %26, %27 : vector<1x512xf32>
    %29 = arith.negf %28 : vector<1x512xf32>
    %30 = math.exp %29 : vector<1x512xf32>
    %cst_13 = arith.constant 1.000000e+00 : f32
    %31 = vector.broadcast %cst_13 : f32 to vector<1x512xf32>
    %32 = arith.addf %31, %30 : vector<1x512xf32>
    %33 = arith.divf %31, %32 : vector<1x512xf32>
    %c0_14 = arith.constant 0 : index
    %c0_15 = arith.constant 0 : index
    %34 = vector.load %arg6[%c0_14, %c0_15] : memref<16x8xbf16, #tpu.memory_space<vmem>>, vector<16x8xbf16>
    %c0_16 = arith.constant 0 : index
    %c0_17 = arith.constant 0 : index
    %c0_18 = arith.constant 0 : index
    %35 = vector.load %arg2[%c0_16, %c0_17, %c0_18] : memref<1x8x128xbf16, #tpu.memory_space<vmem>>, vector<1x8x128xbf16>
    %36 = vector.shape_cast %35 : vector<1x8x128xbf16> to vector<8x128xbf16>
    %cst_19 = arith.constant dense<0.000000e+00> : vector<16x128xf32>
    %37 = tpu.matmul %34, %36, %cst_19 {dimension_numbers = #tpu.dot_dimension_numbers<[1], [0], [0], [1], [0, 0, 1, 1], [], []>} : vector<16x8xbf16>, vector<8x128xbf16>, vector<16x128xf32> -> vector<16x128xf32>
    %38 = vector.shape_cast %37 : vector<16x128xf32> to vector<1x16x128xf32>
    %cst_20 = arith.constant dense<0.000000e+00> : vector<1xf32>
    %39 = vector.multi_reduction <add>, %38, %cst_20 [1, 2] : vector<1x16x128xf32> to vector<1xf32>
    %40 = vector.shape_cast %39 : vector<1xf32> to vector<1x1x1xf32>
    %41 = vector.extract %40[0, 0, 0] : f32 from vector<1x1x1xf32>
    %cst_21 = arith.constant 0.0069444445 : f32
    %42 = arith.mulf %41, %cst_21 : f32
    %43 = arith.mulf %37, %37 : vector<16x128xf32>
    %44 = vector.shape_cast %43 : vector<16x128xf32> to vector<1x16x128xf32>
    %cst_22 = arith.constant dense<0.000000e+00> : vector<1xf32>
    %45 = vector.multi_reduction <add>, %44, %cst_22 [1, 2] : vector<1x16x128xf32> to vector<1xf32>
    %46 = vector.shape_cast %45 : vector<1xf32> to vector<1x1x1xf32>
    %47 = vector.extract %46[0, 0, 0] : f32 from vector<1x1x1xf32>
    %cst_23 = arith.constant 0.0069444445 : f32
    %48 = arith.mulf %47, %cst_23 : f32
    %49 = arith.mulf %42, %42 : f32
    %50 = arith.subf %48, %49 : f32
    %cst_24 = arith.constant 0.000000e+00 : f32
    %51 = arith.maximumf %50, %cst_24 : f32
    %52 = vector.broadcast %42 : f32 to vector<16x128xf32>
    %53 = arith.subf %37, %52 : vector<16x128xf32>
    %cst_25 = arith.constant 9.99999974E-6 : f32
    %54 = arith.addf %51, %cst_25 : f32
    %55 = math.rsqrt %54 : f32
    %56 = vector.broadcast %55 : f32 to vector<16x128xf32>
    %57 = arith.mulf %53, %56 : vector<16x128xf32>
    %58 = tpu.concatenate %57, %57, %57, %57 in 1 : vector<16x128xf32>, vector<16x128xf32>, vector<16x128xf32>, vector<16x128xf32> -> vector<16x512xf32>
    %c0_26 = arith.constant 0 : index
    %c0_27 = arith.constant 0 : index
    %59 = vector.load %arg7[%c0_26, %c0_27] : memref<16x512xf32, #tpu.memory_space<vmem>>, vector<16x512xf32>
    %60 = arith.mulf %58, %59 : vector<16x512xf32>
    %c0_28 = arith.constant 0 : index
    %c0_29 = arith.constant 0 : index
    %61 = vector.load %arg8[%c0_28, %c0_29] : memref<16x512xf32, #tpu.memory_space<vmem>>, vector<16x512xf32>
    %62 = arith.addf %60, %61 : vector<16x512xf32>
    %63 = arith.negf %62 : vector<16x512xf32>
    %64 = math.exp %63 : vector<16x512xf32>
    %cst_30 = arith.constant 1.000000e+00 : f32
    %65 = vector.broadcast %cst_30 : f32 to vector<16x512xf32>
    %66 = arith.addf %65, %64 : vector<16x512xf32>
    %67 = arith.divf %65, %66 : vector<16x512xf32>
    %c0_31 = arith.constant 0 : index
    %c0_32 = arith.constant 0 : index
    %c0_33 = arith.constant 0 : index
    %68 = vector.load %arg3[%c0_31, %c0_32, %c0_33] : memref<1x16x512xbf16, #tpu.memory_space<vmem>>, vector<1x16x512xbf16>
    %69 = vector.shape_cast %68 : vector<1x16x512xbf16> to vector<16x512xbf16>
    %70 = arith.extf %69 : vector<16x512xbf16> to vector<16x512xf32>
    %71 = vector.broadcast %33 : vector<1x512xf32> to vector<16x512xf32>
    %72 = arith.mulf %71, %70 : vector<16x512xf32>
    %73 = arith.addf %72, %67 : vector<16x512xf32>
    %c0_34 = arith.constant 0 : index
    %c0_35 = arith.constant 0 : index
    %74 = vector.load %arg5[%c0_34, %c0_35] : memref<1x512xf32, #tpu.memory_space<vmem>>, vector<1x512xf32>
    %75 = vector.broadcast %74 : vector<1x512xf32> to vector<16x512xf32>
    %76 = arith.mulf %73, %75 : vector<16x512xf32>
    %c0_36 = arith.constant 0 : index
    %c0_37 = arith.constant 0 : index
    %77 = vector.load %arg12[%c0_36, %c0_37] : memref<16x16xbf16, #tpu.memory_space<vmem>>, vector<16x16xbf16>
    %78 = arith.truncf %76 : vector<16x512xf32> to vector<16x512xbf16>
    %cst_38 = arith.constant dense<0.000000e+00> : vector<16x512xf32>
    %79 = tpu.matmul %77, %78, %cst_38 {dimension_numbers = #tpu.dot_dimension_numbers<[1], [0], [0], [1], [0, 0, 1, 1], [], []>} : vector<16x16xbf16>, vector<16x512xbf16>, vector<16x512xf32> -> vector<16x512xf32>
    %80 = vector.shape_cast %79 : vector<16x512xf32> to vector<1x16x512xf32>
    %cst_39 = arith.constant dense<0.000000e+00> : vector<1xf32>
    %81 = vector.multi_reduction <add>, %80, %cst_39 [1, 2] : vector<1x16x512xf32> to vector<1xf32>
    %82 = vector.shape_cast %81 : vector<1xf32> to vector<1x1x1xf32>
    %83 = vector.extract %82[0, 0, 0] : f32 from vector<1x1x1xf32>
    %cst_40 = arith.constant 9.765625E-4 : f32
    %84 = arith.mulf %83, %cst_40 : f32
    %85 = arith.mulf %79, %79 : vector<16x512xf32>
    %86 = vector.shape_cast %85 : vector<16x512xf32> to vector<1x16x512xf32>
    %cst_41 = arith.constant dense<0.000000e+00> : vector<1xf32>
    %87 = vector.multi_reduction <add>, %86, %cst_41 [1, 2] : vector<1x16x512xf32> to vector<1xf32>
    %88 = vector.shape_cast %87 : vector<1xf32> to vector<1x1x1xf32>
    %89 = vector.extract %88[0, 0, 0] : f32 from vector<1x1x1xf32>
    %cst_42 = arith.constant 9.765625E-4 : f32
    %90 = arith.mulf %89, %cst_42 : f32
    %91 = arith.mulf %84, %84 : f32
    %92 = arith.subf %90, %91 : f32
    %cst_43 = arith.constant 0.000000e+00 : f32
    %93 = arith.maximumf %92, %cst_43 : f32
    %cst_44 = arith.constant 9.99999974E-6 : f32
    %94 = arith.addf %93, %cst_44 : f32
    %95 = math.rsqrt %94 : f32
    %96 = vector.broadcast %84 : f32 to vector<16x512xf32>
    %97 = arith.subf %79, %96 : vector<16x512xf32>
    %98 = vector.broadcast %95 : f32 to vector<16x512xf32>
    %99 = arith.mulf %97, %98 : vector<16x512xf32>
    %c0_45 = arith.constant 0 : index
    %c0_46 = arith.constant 0 : index
    %100 = vector.load %arg13[%c0_45, %c0_46] : memref<16x512xf32, #tpu.memory_space<vmem>>, vector<16x512xf32>
    %101 = arith.mulf %99, %100 : vector<16x512xf32>
    %c0_47 = arith.constant 0 : index
    %c0_48 = arith.constant 0 : index
    %102 = vector.load %arg14[%c0_47, %c0_48] : memref<16x512xf32, #tpu.memory_space<vmem>>, vector<16x512xf32>
    %103 = arith.addf %101, %102 : vector<16x512xf32>
    %cst_49 = arith.constant 2.000000e+01 : f32
    %104 = vector.broadcast %cst_49 : f32 to vector<16x512xf32>
    %105 = arith.cmpf ogt, %103, %104 : vector<16x512xf32>
    %cst_50 = arith.constant 2.000000e+01 : f32
    %106 = vector.broadcast %cst_50 : f32 to vector<16x512xf32>
    %107 = arith.minimumf %103, %106 : vector<16x512xf32>
    %108 = math.exp %107 : vector<16x512xf32>
    %109 = math.log1p %108 : vector<16x512xf32>
    %110 = arith.select %105, %103, %109 : vector<16x512xi1>, vector<16x512xf32>
    %111 = vector.extract_strided_slice %110 {offsets = [0, 0], sizes = [16, 128], strides = [1, 1]} : vector<16x512xf32> to vector<16x128xf32>
    %112 = vector.extract_strided_slice %110 {offsets = [0, 128], sizes = [16, 128], strides = [1, 1]} : vector<16x512xf32> to vector<16x128xf32>
    %113 = arith.addf %111, %112 : vector<16x128xf32>
    %114 = vector.extract_strided_slice %110 {offsets = [0, 256], sizes = [16, 128], strides = [1, 1]} : vector<16x512xf32> to vector<16x128xf32>
    %115 = arith.addf %113, %114 : vector<16x128xf32>
    %116 = vector.extract_strided_slice %110 {offsets = [0, 384], sizes = [16, 128], strides = [1, 1]} : vector<16x512xf32> to vector<16x128xf32>
    %117 = arith.addf %115, %116 : vector<16x128xf32>
    %c0_51 = arith.constant 0 : index
    %c0_52 = arith.constant 0 : index
    %c0_53 = arith.constant 0 : index
    %118 = vector.load %arg4[%c0_51, %c0_52, %c0_53] : memref<1x1x128xf32, #tpu.memory_space<vmem>>, vector<1x1x128xf32>
    %119 = vector.shape_cast %118 : vector<1x1x128xf32> to vector<1x128xf32>
    %120 = vector.broadcast %119 : vector<1x128xf32> to vector<16x128xf32>
    %121 = arith.mulf %117, %120 : vector<16x128xf32>
    %c0_54 = arith.constant 0 : index
    %c0_55 = arith.constant 0 : index
    %c0_56 = arith.constant 0 : index
    %122 = vector.load %arg15[%c0_54, %c0_55, %c0_56] : memref<1x16x128xf32, #tpu.memory_space<vmem>>, vector<1x16x128xf32>
    %123 = vector.shape_cast %122 : vector<1x16x128xf32> to vector<16x128xf32>
    %124 = vector.shape_cast %121 : vector<16x128xf32> to vector<1x16x128xf32>
    tpu.vector_store %arg15[%c0_54, %c0_55, %c0_56], %124 {strides = array<i32>} : memref<1x16x128xf32, #tpu.memory_space<vmem>>, vector<1x16x128xf32>,
    return
  }
  func.func @transform_0(%arg0: i32) -> (i32, i32, i32) {
    %c0_i32 = arith.constant 0 : i32
    %c0_i32_0 = arith.constant 0 : i32
    %c0_i32_1 = arith.constant 0 : i32
    return %arg0, %c0_i32, %c0_i32_0 : i32, i32, i32
  }
  func.func @transform_1(%arg0: i32) -> (i32, i32, i32) {
    %c0_i32 = arith.constant 0 : i32
    %c0_i32_0 = arith.constant 0 : i32
    %c0_i32_1 = arith.constant 0 : i32
    return %arg0, %c0_i32, %c0_i32_0 : i32, i32, i32
  }
  func.func @transform_2(%arg0: i32) -> (i32, i32, i32) {
    %c0_i32 = arith.constant 0 : i32
    %c0_i32_0 = arith.constant 0 : i32
    %c0_i32_1 = arith.constant 0 : i32
    return %arg0, %c0_i32, %c0_i32_0 : i32, i32, i32
  }
  func.func @transform_3(%arg0: i32) -> (i32, i32, i32) {
    %c0_i32 = arith.constant 0 : i32
    %c0_i32_0 = arith.constant 0 : i32
    %c0_i32_1 = arith.constant 0 : i32
    return %arg0, %c0_i32, %c0_i32_0 : i32, i32, i32
  }
  func.func @transform_4(%arg0: i32) -> (i32, i32) {
    %c0_i32 = arith.constant 0 : i32
    %c0_i32_0 = arith.constant 0 : i32
    %c0_i32_1 = arith.constant 0 : i32
    return %c0_i32, %c0_i32_0 : i32, i32
  }
  func.func @transform_5(%arg0: i32) -> (i32, i32) {
    %c0_i32 = arith.constant 0 : i32
    %c0_i32_0 = arith.constant 0 : i32
    %c0_i32_1 = arith.constant 0 : i32
    return %c0_i32, %c0_i32_0 : i32, i32
  }
  func.func @transform_6(%arg0: i32) -> (i32, i32) {
    %c0_i32 = arith.constant 0 : i32
    %c0_i32_0 = arith.constant 0 : i32
    %c0_i32_1 = arith.constant 0 : i32
    return %c0_i32, %c0_i32_0 : i32, i32
  }
  func.func @transform_7(%arg0: i32) -> (i32, i32) {
    %c0_i32 = arith.constant 0 : i32
    %c0_i32_0 = arith.constant 0 : i32
    %c0_i32_1 = arith.constant 0 : i32
    return %c0_i32, %c0_i32_0 : i32, i32
  }
  func.func @transform_8(%arg0: i32) -> (i32, i32) {
    %c0_i32 = arith.constant 0 : i32
    %c0_i32_0 = arith.constant 0 : i32
    %c0_i32_1 = arith.constant 0 : i32
    return %c0_i32, %c0_i32_0 : i32, i32
  }
  func.func @transform_9(%arg0: i32) -> (i32, i32) {
    %c0_i32 = arith.constant 0 : i32
    %c0_i32_0 = arith.constant 0 : i32
    %c0_i32_1 = arith.constant 0 : i32
    return %c0_i32, %c0_i32_0 : i32, i32
  }
  func.func @transform_10(%arg0: i32) -> (i32, i32) {
    %c0_i32 = arith.constant 0 : i32
    %c0_i32_0 = arith.constant 0 : i32
    %c0_i32_1 = arith.constant 0 : i32
    return %c0_i32, %c0_i32_0 : i32, i32
  }
  func.func @transform_11(%arg0: i32) -> (i32, i32) {
    %c0_i32 = arith.constant 0 : i32
    %c0_i32_0 = arith.constant 0 : i32
    %c0_i32_1 = arith.constant 0 : i32
    return %c0_i32, %c0_i32_0 : i32, i32
  }
  func.func @transform_12(%arg0: i32) -> (i32, i32) {
    %c0_i32 = arith.constant 0 : i32
    %c0_i32_0 = arith.constant 0 : i32
    %c0_i32_1 = arith.constant 0 : i32
    return %c0_i32, %c0_i32_0 : i32, i32
  }
  func.func @transform_13(%arg0: i32) -> (i32, i32) {
    %c0_i32 = arith.constant 0 : i32
    %c0_i32_0 = arith.constant 0 : i32
    %c0_i32_1 = arith.constant 0 : i32
    return %c0_i32, %c0_i32_0 : i32, i32
  }
  func.func @transform_14(%arg0: i32) -> (i32, i32, i32) {
    %c0_i32 = arith.constant 0 : i32
    %c0_i32_0 = arith.constant 0 : i32
    %c0_i32_1 = arith.constant 0 : i32
    return %arg0, %c0_i32, %c0_i32_0 : i32, i32, i32
  }
}

module attributes {stable_mosaic.version = 11 : i64} {
  func.func @_molconv_kernel(%arg0: i32, %arg1: memref<1x1x512xf32, #tpu.memory_space<vmem>>, %arg2: memref<1x16x128xbf16, #tpu.memory_space<vmem>>, %arg3: memref<1x32x512xbf16, #tpu.memory_space<vmem>>, %arg4: memref<1x1x128xf32, #tpu.memory_space<vmem>>, %arg5: memref<1x512xf32, #tpu.memory_space<vmem>>, %arg6: memref<32x16xbf16, #tpu.memory_space<vmem>>, %arg7: memref<32x512xf32, #tpu.memory_space<vmem>>, %arg8: memref<32x512xf32, #tpu.memory_space<vmem>>, %arg9: memref<1x1xf32, #tpu.memory_space<smem>>, %arg10: memref<1x512xf32, #tpu.memory_space<vmem>>, %arg11: memref<1x512xf32, #tpu.memory_space<vmem>>, %arg12: memref<16x32xbf16, #tpu.memory_space<vmem>>, %arg13: memref<16x512xf32, #tpu.memory_space<vmem>>, %arg14: memref<16x512xf32, #tpu.memory_space<vmem>>, %arg15: memref<1x16x128xf32, #tpu.memory_space<vmem>>) attributes {dimension_semantics = [#tpu.dimension_semantics<parallel>], iteration_bounds = array<i64: 2>, scalar_prefetch = 0 : i64, scratch_operands = 0 : i64, tpu.core_type = #tpu.core_type<tc>, window_params = [{transform_indices = @transform_0, window_bounds = array<i64: 1, 1, 512>}, {transform_indices = @transform_1, window_bounds = array<i64: 1, 16, 128>}, {transform_indices = @transform_2, window_bounds = array<i64: 1, 32, 512>}, {transform_indices = @transform_3, window_bounds = array<i64: 1, 1, 128>}, {pipeline_mode = #tpu.pipeline_mode<synchronous>, transform_indices = @transform_4, window_bounds = array<i64: 1, 512>}, {pipeline_mode = #tpu.pipeline_mode<synchronous>, transform_indices = @transform_5, window_bounds = array<i64: 32, 16>}, {pipeline_mode = #tpu.pipeline_mode<synchronous>, transform_indices = @transform_6, window_bounds = array<i64: 32, 512>}, {pipeline_mode = #tpu.pipeline_mode<synchronous>, transform_indices = @transform_7, window_bounds = array<i64: 32, 512>}, {transform_indices = @transform_8, window_bounds = array<i64: 1, 1>}, {pipeline_mode = #tpu.pipeline_mode<synchronous>, transform_indices = @transform_9, window_bounds = array<i64: 1, 512>}, {pipeline_mode = #tpu.pipeline_mode<synchronous>, transform_indices = @transform_10, window_bounds = array<i64: 1, 512>}, {pipeline_mode = #tpu.pipeline_mode<synchronous>, transform_indices = @transform_11, window_bounds = array<i64: 16, 32>}, {pipeline_mode = #tpu.pipeline_mode<synchronous>, transform_indices = @transform_12, window_bounds = array<i64: 16, 512>}, {pipeline_mode = #tpu.pipeline_mode<synchronous>, transform_indices = @transform_13, window_bounds = array<i64: 16, 512>}, {transform_indices = @transform_14, window_bounds = array<i64: 1, 16, 128>}]} {
    %c0 = arith.constant 0 : index
    %c0_0 = arith.constant 0 : index
    %0 = memref.load %arg9[%c0, %c0_0] : memref<1x1xf32, #tpu.memory_space<smem>>
    %c0_1 = arith.constant 0 : index
    %c0_2 = arith.constant 0 : index
    %c0_3 = arith.constant 0 : index
    %1 = vector.load %arg1[%c0_1, %c0_2, %c0_3] : memref<1x1x512xf32, #tpu.memory_space<vmem>>, vector<1x1x512xf32>
    %2 = vector.shape_cast %1 : vector<1x1x512xf32> to vector<1x512xf32>
    %3 = vector.broadcast %0 : f32 to vector<1x512xf32>
    %4 = arith.mulf %3, %2 : vector<1x512xf32>
    %5 = vector.shape_cast %4 : vector<1x512xf32> to vector<1x1x512xf32>
    %cst = arith.constant dense<0.000000e+00> : vector<1xf32>
    %6 = vector.multi_reduction <add>, %5, %cst [1, 2] : vector<1x1x512xf32> to vector<1xf32>
    %7 = vector.shape_cast %6 : vector<1xf32> to vector<1x1x1xf32>
    %8 = vector.extract %7[0, 0, 0] : f32 from vector<1x1x1xf32>
    %cst_4 = arith.constant 1.562500e-02 : f32
    %9 = arith.mulf %8, %cst_4 : f32
    %10 = arith.mulf %4, %4 : vector<1x512xf32>
    %11 = vector.shape_cast %10 : vector<1x512xf32> to vector<1x1x512xf32>
    %cst_5 = arith.constant dense<0.000000e+00> : vector<1xf32>
    %12 = vector.multi_reduction <add>, %11, %cst_5 [1, 2] : vector<1x1x512xf32> to vector<1xf32>
    %13 = vector.shape_cast %12 : vector<1xf32> to vector<1x1x1xf32>
    %14 = vector.extract %13[0, 0, 0] : f32 from vector<1x1x1xf32>
    %cst_6 = arith.constant 1.562500e-02 : f32
    %15 = arith.mulf %14, %cst_6 : f32
    %16 = arith.mulf %9, %9 : f32
    %17 = arith.subf %15, %16 : f32
    %cst_7 = arith.constant 0.000000e+00 : f32
    %18 = arith.maximumf %17, %cst_7 : f32
    %cst_8 = arith.constant 9.99999974E-6 : f32
    %19 = arith.addf %18, %cst_8 : f32
    %20 = math.rsqrt %19 : f32
    %21 = vector.broadcast %9 : f32 to vector<1x512xf32>
    %22 = arith.subf %4, %21 : vector<1x512xf32>
    %23 = vector.broadcast %20 : f32 to vector<1x512xf32>
    %24 = arith.mulf %22, %23 : vector<1x512xf32>
    %c0_9 = arith.constant 0 : index
    %c0_10 = arith.constant 0 : index
    %25 = vector.load %arg10[%c0_9, %c0_10] : memref<1x512xf32, #tpu.memory_space<vmem>>, vector<1x512xf32>
    %26 = arith.mulf %24, %25 : vector<1x512xf32>
    %c0_11 = arith.constant 0 : index
    %c0_12 = arith.constant 0 : index
    %27 = vector.load %arg11[%c0_11, %c0_12] : memref<1x512xf32, #tpu.memory_space<vmem>>, vector<1x512xf32>
    %28 = arith.addf %26, %27 : vector<1x512xf32>
    %29 = arith.negf %28 : vector<1x512xf32>
    %30 = math.exp %29 : vector<1x512xf32>
    %cst_13 = arith.constant 1.000000e+00 : f32
    %31 = vector.broadcast %cst_13 : f32 to vector<1x512xf32>
    %32 = arith.addf %31, %30 : vector<1x512xf32>
    %33 = arith.divf %31, %32 : vector<1x512xf32>
    %c0_14 = arith.constant 0 : index
    %c0_15 = arith.constant 0 : index
    %34 = vector.load %arg6[%c0_14, %c0_15] : memref<32x16xbf16, #tpu.memory_space<vmem>>, vector<32x16xbf16>
    %c0_16 = arith.constant 0 : index
    %c0_17 = arith.constant 0 : index
    %c0_18 = arith.constant 0 : index
    %35 = vector.load %arg2[%c0_16, %c0_17, %c0_18] : memref<1x16x128xbf16, #tpu.memory_space<vmem>>, vector<1x16x128xbf16>
    %36 = vector.shape_cast %35 : vector<1x16x128xbf16> to vector<16x128xbf16>
    %cst_19 = arith.constant dense<0.000000e+00> : vector<32x128xf32>
    %37 = tpu.matmul %34, %36, %cst_19 {dimension_numbers = #tpu.dot_dimension_numbers<[1], [0], [0], [1], [0, 0, 1, 1], [], []>} : vector<32x16xbf16>, vector<16x128xbf16>, vector<32x128xf32> -> vector<32x128xf32>
    %38 = vector.shape_cast %37 : vector<32x128xf32> to vector<1x32x128xf32>
    %cst_20 = arith.constant dense<0.000000e+00> : vector<1xf32>
    %39 = vector.multi_reduction <add>, %38, %cst_20 [1, 2] : vector<1x32x128xf32> to vector<1xf32>
    %40 = vector.shape_cast %39 : vector<1xf32> to vector<1x1x1xf32>
    %41 = vector.extract %40[0, 0, 0] : f32 from vector<1x1x1xf32>
    %cst_21 = arith.constant 3.125000e-03 : f32
    %42 = arith.mulf %41, %cst_21 : f32
    %43 = arith.mulf %37, %37 : vector<32x128xf32>
    %44 = vector.shape_cast %43 : vector<32x128xf32> to vector<1x32x128xf32>
    %cst_22 = arith.constant dense<0.000000e+00> : vector<1xf32>
    %45 = vector.multi_reduction <add>, %44, %cst_22 [1, 2] : vector<1x32x128xf32> to vector<1xf32>
    %46 = vector.shape_cast %45 : vector<1xf32> to vector<1x1x1xf32>
    %47 = vector.extract %46[0, 0, 0] : f32 from vector<1x1x1xf32>
    %cst_23 = arith.constant 3.125000e-03 : f32
    %48 = arith.mulf %47, %cst_23 : f32
    %49 = arith.mulf %42, %42 : f32
    %50 = arith.subf %48, %49 : f32
    %cst_24 = arith.constant 0.000000e+00 : f32
    %51 = arith.maximumf %50, %cst_24 : f32
    %52 = vector.broadcast %42 : f32 to vector<32x128xf32>
    %53 = arith.subf %37, %52 : vector<32x128xf32>
    %cst_25 = arith.constant 9.99999974E-6 : f32
    %54 = arith.addf %51, %cst_25 : f32
    %55 = math.rsqrt %54 : f32
    %56 = vector.broadcast %55 : f32 to vector<32x128xf32>
    %57 = arith.mulf %53, %56 : vector<32x128xf32>
    %58 = tpu.concatenate %57, %57, %57, %57 in 1 : vector<32x128xf32>, vector<32x128xf32>, vector<32x128xf32>, vector<32x128xf32> -> vector<32x512xf32>
    %c0_26 = arith.constant 0 : index
    %c0_27 = arith.constant 0 : index
    %59 = vector.load %arg7[%c0_26, %c0_27] : memref<32x512xf32, #tpu.memory_space<vmem>>, vector<32x512xf32>
    %60 = arith.mulf %58, %59 : vector<32x512xf32>
    %c0_28 = arith.constant 0 : index
    %c0_29 = arith.constant 0 : index
    %61 = vector.load %arg8[%c0_28, %c0_29] : memref<32x512xf32, #tpu.memory_space<vmem>>, vector<32x512xf32>
    %62 = arith.addf %60, %61 : vector<32x512xf32>
    %63 = arith.negf %62 : vector<32x512xf32>
    %64 = math.exp %63 : vector<32x512xf32>
    %cst_30 = arith.constant 1.000000e+00 : f32
    %65 = vector.broadcast %cst_30 : f32 to vector<32x512xf32>
    %66 = arith.addf %65, %64 : vector<32x512xf32>
    %67 = arith.divf %65, %66 : vector<32x512xf32>
    %c0_31 = arith.constant 0 : index
    %c0_32 = arith.constant 0 : index
    %c0_33 = arith.constant 0 : index
    %68 = vector.load %arg3[%c0_31, %c0_32, %c0_33] : memref<1x32x512xbf16, #tpu.memory_space<vmem>>, vector<1x32x512xbf16>
    %69 = vector.shape_cast %68 : vector<1x32x512xbf16> to vector<32x512xbf16>
    %70 = arith.extf %69 : vector<32x512xbf16> to vector<32x512xf32>
    %71 = vector.broadcast %33 : vector<1x512xf32> to vector<32x512xf32>
    %72 = arith.mulf %71, %70 : vector<32x512xf32>
    %73 = arith.addf %72, %67 : vector<32x512xf32>
    %c0_34 = arith.constant 0 : index
    %c0_35 = arith.constant 0 : index
    %74 = vector.load %arg5[%c0_34, %c0_35] : memref<1x512xf32, #tpu.memory_space<vmem>>, vector<1x512xf32>
    %75 = vector.broadcast %74 : vector<1x512xf32> to vector<32x512xf32>
    %76 = arith.mulf %73, %75 : vector<32x512xf32>
    %c0_36 = arith.constant 0 : index
    %c0_37 = arith.constant 0 : index
    %77 = vector.load %arg12[%c0_36, %c0_37] : memref<16x32xbf16, #tpu.memory_space<vmem>>, vector<16x32xbf16>
    %78 = arith.truncf %76 : vector<32x512xf32> to vector<32x512xbf16>
    %cst_38 = arith.constant dense<0.000000e+00> : vector<16x512xf32>
    %79 = tpu.matmul %77, %78, %cst_38 {dimension_numbers = #tpu.dot_dimension_numbers<[1], [0], [0], [1], [0, 0, 1, 1], [], []>} : vector<16x32xbf16>, vector<32x512xbf16>, vector<16x512xf32> -> vector<16x512xf32>
    %80 = vector.shape_cast %79 : vector<16x512xf32> to vector<1x16x512xf32>
    %cst_39 = arith.constant dense<0.000000e+00> : vector<1xf32>
    %81 = vector.multi_reduction <add>, %80, %cst_39 [1, 2] : vector<1x16x512xf32> to vector<1xf32>
    %82 = vector.shape_cast %81 : vector<1xf32> to vector<1x1x1xf32>
    %83 = vector.extract %82[0, 0, 0] : f32 from vector<1x1x1xf32>
    %cst_40 = arith.constant 9.765625E-4 : f32
    %84 = arith.mulf %83, %cst_40 : f32
    %85 = arith.mulf %79, %79 : vector<16x512xf32>
    %86 = vector.shape_cast %85 : vector<16x512xf32> to vector<1x16x512xf32>
    %cst_41 = arith.constant dense<0.000000e+00> : vector<1xf32>
    %87 = vector.multi_reduction <add>, %86, %cst_41 [1, 2] : vector<1x16x512xf32> to vector<1xf32>
    %88 = vector.shape_cast %87 : vector<1xf32> to vector<1x1x1xf32>
    %89 = vector.extract %88[0, 0, 0] : f32 from vector<1x1x1xf32>
    %cst_42 = arith.constant 9.765625E-4 : f32
    %90 = arith.mulf %89, %cst_42 : f32
    %91 = arith.mulf %84, %84 : f32
    %92 = arith.subf %90, %91 : f32
    %cst_43 = arith.constant 0.000000e+00 : f32
    %93 = arith.maximumf %92, %cst_43 : f32
    %cst_44 = arith.constant 9.99999974E-6 : f32
    %94 = arith.addf %93, %cst_44 : f32
    %95 = math.rsqrt %94 : f32
    %96 = vector.broadcast %84 : f32 to vector<16x512xf32>
    %97 = arith.subf %79, %96 : vector<16x512xf32>
    %98 = vector.broadcast %95 : f32 to vector<16x512xf32>
    %99 = arith.mulf %97, %98 : vector<16x512xf32>
    %c0_45 = arith.constant 0 : index
    %c0_46 = arith.constant 0 : index
    %100 = vector.load %arg13[%c0_45, %c0_46] : memref<16x512xf32, #tpu.memory_space<vmem>>, vector<16x512xf32>
    %101 = arith.mulf %99, %100 : vector<16x512xf32>
    %c0_47 = arith.constant 0 : index
    %c0_48 = arith.constant 0 : index
    %102 = vector.load %arg14[%c0_47, %c0_48] : memref<16x512xf32, #tpu.memory_space<vmem>>, vector<16x512xf32>
    %103 = arith.addf %101, %102 : vector<16x512xf32>
    %cst_49 = arith.constant 2.000000e+01 : f32
    %104 = vector.broadcast %cst_49 : f32 to vector<16x512xf32>
    %105 = arith.cmpf ogt, %103, %104 : vector<16x512xf32>
    %cst_50 = arith.constant 2.000000e+01 : f32
    %106 = vector.broadcast %cst_50 : f32 to vector<16x512xf32>
    %107 = arith.minimumf %103, %106 : vector<16x512xf32>
    %108 = math.exp %107 : vector<16x512xf32>
    %109 = math.log1p %108 : vector<16x512xf32>
    %110 = arith.select %105, %103, %109 : vector<16x512xi1>, vector<16x512xf32>
    %111 = vector.extract_strided_slice %110 {offsets = [0, 0], sizes = [16, 128], strides = [1, 1]} : vector<16x512xf32> to vector<16x128xf32>
    %112 = vector.extract_strided_slice %110 {offsets = [0, 128], sizes = [16, 128], strides = [1, 1]} : vector<16x512xf32> to vector<16x128xf32>
    %113 = arith.addf %111, %112 : vector<16x128xf32>
    %114 = vector.extract_strided_slice %110 {offsets = [0, 256], sizes = [16, 128], strides = [1, 1]} : vector<16x512xf32> to vector<16x128xf32>
    %115 = arith.addf %113, %114 : vector<16x128xf32>
    %116 = vector.extract_strided_slice %110 {offsets = [0, 384], sizes = [16, 128], strides = [1, 1]} : vector<16x512xf32> to vector<16x128xf32>
    %117 = arith.addf %115, %116 : vector<16x128xf32>
    %c0_51 = arith.constant 0 : index
    %c0_52 = arith.constant 0 : index
    %c0_53 = arith.constant 0 : index
    %118 = vector.load %arg4[%c0_51, %c0_52, %c0_53] : memref<1x1x128xf32, #tpu.memory_space<vmem>>, vector<1x1x128xf32>
    %119 = vector.shape_cast %118 : vector<1x1x128xf32> to vector<1x128xf32>
    %120 = vector.broadcast %119 : vector<1x128xf32> to vector<16x128xf32>
    %121 = arith.mulf %117, %120 : vector<16x128xf32>
    %c0_54 = arith.constant 0 : index
    %c0_55 = arith.constant 0 : index
    %c0_56 = arith.constant 0 : index
    %122 = vector.load %arg15[%c0_54, %c0_55, %c0_56] : memref<1x16x128xf32, #tpu.memory_space<vmem>>, vector<1x16x128xf32>
    %123 = vector.shape_cast %122 : vector<1x16x128xf32> to vector<16x128xf32>
    %124 = vector.shape_cast %121 : vector<16x128xf32> to vector<1x16x128xf32>
    tpu.vector_store %arg15[%c0_54, %c0_55, %c0_56], %124 {strides = array<i32>} : memref<1x16x128xf32, #tpu.memory_space<vmem>>, vector<1x16x128xf32>,
    return
  }
  func.func @transform_0(%arg0: i32) -> (i32, i32, i32) {
    %c0_i32 = arith.constant 0 : i32
    %c0_i32_0 = arith.constant 0 : i32
    %c0_i32_1 = arith.constant 0 : i32
    return %arg0, %c0_i32, %c0_i32_0 : i32, i32, i32
  }
  func.func @transform_1(%arg0: i32) -> (i32, i32, i32) {
    %c0_i32 = arith.constant 0 : i32
    %c0_i32_0 = arith.constant 0 : i32
    %c0_i32_1 = arith.constant 0 : i32
    return %arg0, %c0_i32, %c0_i32_0 : i32, i32, i32
  }
  func.func @transform_2(%arg0: i32) -> (i32, i32, i32) {
    %c0_i32 = arith.constant 0 : i32
    %c0_i32_0 = arith.constant 0 : i32
    %c0_i32_1 = arith.constant 0 : i32
    return %arg0, %c0_i32, %c0_i32_0 : i32, i32, i32
  }
  func.func @transform_3(%arg0: i32) -> (i32, i32, i32) {
    %c0_i32 = arith.constant 0 : i32
    %c0_i32_0 = arith.constant 0 : i32
    %c0_i32_1 = arith.constant 0 : i32
    return %arg0, %c0_i32, %c0_i32_0 : i32, i32, i32
  }
  func.func @transform_4(%arg0: i32) -> (i32, i32) {
    %c0_i32 = arith.constant 0 : i32
    %c0_i32_0 = arith.constant 0 : i32
    %c0_i32_1 = arith.constant 0 : i32
    return %c0_i32, %c0_i32_0 : i32, i32
  }
  func.func @transform_5(%arg0: i32) -> (i32, i32) {
    %c0_i32 = arith.constant 0 : i32
    %c0_i32_0 = arith.constant 0 : i32
    %c0_i32_1 = arith.constant 0 : i32
    return %c0_i32, %c0_i32_0 : i32, i32
  }
  func.func @transform_6(%arg0: i32) -> (i32, i32) {
    %c0_i32 = arith.constant 0 : i32
    %c0_i32_0 = arith.constant 0 : i32
    %c0_i32_1 = arith.constant 0 : i32
    return %c0_i32, %c0_i32_0 : i32, i32
  }
  func.func @transform_7(%arg0: i32) -> (i32, i32) {
    %c0_i32 = arith.constant 0 : i32
    %c0_i32_0 = arith.constant 0 : i32
    %c0_i32_1 = arith.constant 0 : i32
    return %c0_i32, %c0_i32_0 : i32, i32
  }
  func.func @transform_8(%arg0: i32) -> (i32, i32) {
    %c0_i32 = arith.constant 0 : i32
    %c0_i32_0 = arith.constant 0 : i32
    %c0_i32_1 = arith.constant 0 : i32
    return %c0_i32, %c0_i32_0 : i32, i32
  }
  func.func @transform_9(%arg0: i32) -> (i32, i32) {
    %c0_i32 = arith.constant 0 : i32
    %c0_i32_0 = arith.constant 0 : i32
    %c0_i32_1 = arith.constant 0 : i32
    return %c0_i32, %c0_i32_0 : i32, i32
  }
  func.func @transform_10(%arg0: i32) -> (i32, i32) {
    %c0_i32 = arith.constant 0 : i32
    %c0_i32_0 = arith.constant 0 : i32
    %c0_i32_1 = arith.constant 0 : i32
    return %c0_i32, %c0_i32_0 : i32, i32
  }
  func.func @transform_11(%arg0: i32) -> (i32, i32) {
    %c0_i32 = arith.constant 0 : i32
    %c0_i32_0 = arith.constant 0 : i32
    %c0_i32_1 = arith.constant 0 : i32
    return %c0_i32, %c0_i32_0 : i32, i32
  }
  func.func @transform_12(%arg0: i32) -> (i32, i32) {
    %c0_i32 = arith.constant 0 : i32
    %c0_i32_0 = arith.constant 0 : i32
    %c0_i32_1 = arith.constant 0 : i32
    return %c0_i32, %c0_i32_0 : i32, i32
  }
  func.func @transform_13(%arg0: i32) -> (i32, i32) {
    %c0_i32 = arith.constant 0 : i32
    %c0_i32_0 = arith.constant 0 : i32
    %c0_i32_1 = arith.constant 0 : i32
    return %c0_i32, %c0_i32_0 : i32, i32
  }
  func.func @transform_14(%arg0: i32) -> (i32, i32, i32) {
    %c0_i32 = arith.constant 0 : i32
    %c0_i32_0 = arith.constant 0 : i32
    %c0_i32_1 = arith.constant 0 : i32
    return %arg0, %c0_i32, %c0_i32_0 : i32, i32, i32
  }
}

module attributes {stable_mosaic.version = 11 : i64} {
  func.func @_final_kernel(%arg0: i32, %arg1: memref<2x16x128xbf16, #tpu.memory_space<vmem>>, %arg2: memref<2x16x128xbf16, #tpu.memory_space<vmem>>, %arg3: memref<32x16xbf16, #tpu.memory_space<vmem>>, %arg4: memref<32x16xbf16, #tpu.memory_space<vmem>>, %arg5: memref<32x128xf32, #tpu.memory_space<vmem>>, %arg6: memref<32x128xf32, #tpu.memory_space<vmem>>, %arg7: memref<2x1x128xf32, #tpu.memory_space<vmem>>, %arg8: memref<2x1x128xf32, #tpu.memory_space<vmem>>, %arg9: memref<2x32xf32, #tpu.memory_space<vmem>>) attributes {dimension_semantics = [#tpu.dimension_semantics<parallel>], iteration_bounds = array<i64: 1>, scalar_prefetch = 0 : i64, scratch_operands = 0 : i64, tpu.core_type = #tpu.core_type<tc>, window_params = [{transform_indices = @transform_0, window_bounds = array<i64: 2, 16, 128>}, {transform_indices = @transform_1, window_bounds = array<i64: 2, 16, 128>}, {pipeline_mode = #tpu.pipeline_mode<synchronous>, transform_indices = @transform_2, window_bounds = array<i64: 32, 16>}, {pipeline_mode = #tpu.pipeline_mode<synchronous>, transform_indices = @transform_3, window_bounds = array<i64: 32, 16>}, {pipeline_mode = #tpu.pipeline_mode<synchronous>, transform_indices = @transform_4, window_bounds = array<i64: 32, 128>}, {pipeline_mode = #tpu.pipeline_mode<synchronous>, transform_indices = @transform_5, window_bounds = array<i64: 32, 128>}, {transform_indices = @transform_6, window_bounds = array<i64: 2, 1, 128>}, {transform_indices = @transform_7, window_bounds = array<i64: 2, 1, 128>}, {transform_indices = @transform_8, window_bounds = array<i64: 2, 32>}]} {
    %c0 = arith.constant 0 : index
    %c0_0 = arith.constant 0 : index
    %0 = vector.load %arg3[%c0, %c0_0] : memref<32x16xbf16, #tpu.memory_space<vmem>>, vector<32x16xbf16>
    %c0_1 = arith.constant 0 : index
    %c0_2 = arith.constant 0 : index
    %c0_3 = arith.constant 0 : index
    %1 = vector.load %arg1[%c0_1, %c0_2, %c0_3] : memref<2x16x128xbf16, #tpu.memory_space<vmem>>, vector<1x16x128xbf16>
    %2 = vector.shape_cast %1 : vector<1x16x128xbf16> to vector<16x128xbf16>
    %cst = arith.constant dense<0.000000e+00> : vector<32x128xf32>
    %3 = tpu.matmul %0, %2, %cst {dimension_numbers = #tpu.dot_dimension_numbers<[1], [0], [0], [1], [0, 0, 1, 1], [], []>} : vector<32x16xbf16>, vector<16x128xbf16>, vector<32x128xf32> -> vector<32x128xf32>
    %c0_4 = arith.constant 0 : index
    %c0_5 = arith.constant 0 : index
    %4 = vector.load %arg4[%c0_4, %c0_5] : memref<32x16xbf16, #tpu.memory_space<vmem>>, vector<32x16xbf16>
    %c0_6 = arith.constant 0 : index
    %c0_7 = arith.constant 0 : index
    %c0_8 = arith.constant 0 : index
    %5 = vector.load %arg2[%c0_6, %c0_7, %c0_8] : memref<2x16x128xbf16, #tpu.memory_space<vmem>>, vector<1x16x128xbf16>
    %6 = vector.shape_cast %5 : vector<1x16x128xbf16> to vector<16x128xbf16>
    %cst_9 = arith.constant dense<0.000000e+00> : vector<32x128xf32>
    %7 = tpu.matmul %4, %6, %cst_9 {dimension_numbers = #tpu.dot_dimension_numbers<[1], [0], [0], [1], [0, 0, 1, 1], [], []>} : vector<32x16xbf16>, vector<16x128xbf16>, vector<32x128xf32> -> vector<32x128xf32>
    %8 = arith.addf %3, %7 : vector<32x128xf32>
    %9 = vector.shape_cast %8 : vector<32x128xf32> to vector<1x32x128xf32>
    %cst_10 = arith.constant dense<0.000000e+00> : vector<1xf32>
    %10 = vector.multi_reduction <add>, %9, %cst_10 [1, 2] : vector<1x32x128xf32> to vector<1xf32>
    %11 = vector.shape_cast %10 : vector<1xf32> to vector<1x1x1xf32>
    %12 = vector.extract %11[0, 0, 0] : f32 from vector<1x1x1xf32>
    %cst_11 = arith.constant 0.001953125 : f32
    %13 = arith.mulf %12, %cst_11 : f32
    %14 = arith.mulf %8, %8 : vector<32x128xf32>
    %15 = vector.shape_cast %14 : vector<32x128xf32> to vector<1x32x128xf32>
    %cst_12 = arith.constant dense<0.000000e+00> : vector<1xf32>
    %16 = vector.multi_reduction <add>, %15, %cst_12 [1, 2] : vector<1x32x128xf32> to vector<1xf32>
    %17 = vector.shape_cast %16 : vector<1xf32> to vector<1x1x1xf32>
    %18 = vector.extract %17[0, 0, 0] : f32 from vector<1x1x1xf32>
    %cst_13 = arith.constant 0.001953125 : f32
    %19 = arith.mulf %18, %cst_13 : f32
    %20 = arith.mulf %13, %13 : f32
    %21 = arith.subf %19, %20 : f32
    %cst_14 = arith.constant 0.000000e+00 : f32
    %22 = arith.maximumf %21, %cst_14 : f32
    %23 = vector.broadcast %13 : f32 to vector<32x128xf32>
    %24 = arith.subf %8, %23 : vector<32x128xf32>
    %cst_15 = arith.constant 9.99999974E-6 : f32
    %25 = arith.addf %22, %cst_15 : f32
    %26 = math.rsqrt %25 : f32
    %27 = vector.broadcast %26 : f32 to vector<32x128xf32>
    %28 = arith.mulf %24, %27 : vector<32x128xf32>
    %c0_16 = arith.constant 0 : index
    %c0_17 = arith.constant 0 : index
    %29 = vector.load %arg5[%c0_16, %c0_17] : memref<32x128xf32, #tpu.memory_space<vmem>>, vector<32x128xf32>
    %30 = arith.mulf %28, %29 : vector<32x128xf32>
    %c0_18 = arith.constant 0 : index
    %c0_19 = arith.constant 0 : index
    %31 = vector.load %arg6[%c0_18, %c0_19] : memref<32x128xf32, #tpu.memory_space<vmem>>, vector<32x128xf32>
    %32 = arith.addf %30, %31 : vector<32x128xf32>
    %cst_20 = arith.constant 0.000000e+00 : f32
    %33 = vector.broadcast %cst_20 : f32 to vector<32x128xf32>
    %34 = arith.cmpf oge, %32, %33 : vector<32x128xf32>
    %cst_21 = arith.constant 2.000000e-01 : f32
    %35 = vector.broadcast %cst_21 : f32 to vector<32x128xf32>
    %36 = arith.mulf %35, %32 : vector<32x128xf32>
    %37 = arith.select %34, %32, %36 : vector<32x128xi1>, vector<32x128xf32>
    %c0_22 = arith.constant 0 : index
    %c0_23 = arith.constant 0 : index
    %c0_24 = arith.constant 0 : index
    %38 = vector.load %arg7[%c0_22, %c0_23, %c0_24] : memref<2x1x128xf32, #tpu.memory_space<vmem>>, vector<1x1x128xf32>
    %39 = vector.shape_cast %38 : vector<1x1x128xf32> to vector<1x128xf32>
    %c0_25 = arith.constant 0 : index
    %c0_26 = arith.constant 0 : index
    %c0_27 = arith.constant 0 : index
    %40 = vector.load %arg8[%c0_25, %c0_26, %c0_27] : memref<2x1x128xf32, #tpu.memory_space<vmem>>, vector<1x1x128xf32>
    %41 = vector.shape_cast %40 : vector<1x1x128xf32> to vector<1x128xf32>
    %cst_28 = arith.constant 0.000000e+00 : f32
    %42 = vector.broadcast %cst_28 : f32 to vector<1x128xf32>
    %43 = arith.cmpf ogt, %39, %42 : vector<1x128xf32>
    %cst_29 = arith.constant 0xFF800000 : f32
    %44 = vector.shape_cast %43 : vector<1x128xi1> to vector<1x128xi1>
    %45 = vector.broadcast %44 : vector<1x128xi1> to vector<32x128xi1>
    %46 = vector.broadcast %cst_29 : f32 to vector<32x128xf32>
    %47 = arith.select %45, %37, %46 : vector<32x128xi1>, vector<32x128xf32>
    %cst_30 = arith.constant dense<0xFF800000> : vector<32xf32>
    %48 = vector.multi_reduction <maximumf>, %47, %cst_30 [1] : vector<32x128xf32> to vector<32xf32>
    %49 = vector.broadcast %41 : vector<1x128xf32> to vector<32x128xf32>
    %50 = arith.mulf %37, %49 : vector<32x128xf32>
    %cst_31 = arith.constant dense<0.000000e+00> : vector<32xf32>
    %51 = vector.multi_reduction <add>, %50, %cst_31 [1] : vector<32x128xf32> to vector<32xf32>
    %52 = arith.addf %48, %51 : vector<32xf32>
    %53 = vector.shape_cast %52 : vector<32xf32> to vector<1x32xf32>
    %c0_32 = arith.constant 0 : index
    %c0_33 = arith.constant 0 : index
    %54 = vector.load %arg3[%c0_32, %c0_33] : memref<32x16xbf16, #tpu.memory_space<vmem>>, vector<32x16xbf16>
    %c1 = arith.constant 1 : index
    %c0_34 = arith.constant 0 : index
    %c0_35 = arith.constant 0 : index
    %55 = vector.load %arg1[%c1, %c0_34, %c0_35] : memref<2x16x128xbf16, #tpu.memory_space<vmem>>, vector<1x16x128xbf16>
    %56 = vector.shape_cast %55 : vector<1x16x128xbf16> to vector<16x128xbf16>
    %cst_36 = arith.constant dense<0.000000e+00> : vector<32x128xf32>
    %57 = tpu.matmul %54, %56, %cst_36 {dimension_numbers = #tpu.dot_dimension_numbers<[1], [0], [0], [1], [0, 0, 1, 1], [], []>} : vector<32x16xbf16>, vector<16x128xbf16>, vector<32x128xf32> -> vector<32x128xf32>
    %c0_37 = arith.constant 0 : index
    %c0_38 = arith.constant 0 : index
    %58 = vector.load %arg4[%c0_37, %c0_38] : memref<32x16xbf16, #tpu.memory_space<vmem>>, vector<32x16xbf16>
    %c1_39 = arith.constant 1 : index
    %c0_40 = arith.constant 0 : index
    %c0_41 = arith.constant 0 : index
    %59 = vector.load %arg2[%c1_39, %c0_40, %c0_41] : memref<2x16x128xbf16, #tpu.memory_space<vmem>>, vector<1x16x128xbf16>
    %60 = vector.shape_cast %59 : vector<1x16x128xbf16> to vector<16x128xbf16>
    %cst_42 = arith.constant dense<0.000000e+00> : vector<32x128xf32>
    %61 = tpu.matmul %58, %60, %cst_42 {dimension_numbers = #tpu.dot_dimension_numbers<[1], [0], [0], [1], [0, 0, 1, 1], [], []>} : vector<32x16xbf16>, vector<16x128xbf16>, vector<32x128xf32> -> vector<32x128xf32>
    %62 = arith.addf %57, %61 : vector<32x128xf32>
    %63 = vector.shape_cast %62 : vector<32x128xf32> to vector<1x32x128xf32>
    %cst_43 = arith.constant dense<0.000000e+00> : vector<1xf32>
    %64 = vector.multi_reduction <add>, %63, %cst_43 [1, 2] : vector<1x32x128xf32> to vector<1xf32>
    %65 = vector.shape_cast %64 : vector<1xf32> to vector<1x1x1xf32>
    %66 = vector.extract %65[0, 0, 0] : f32 from vector<1x1x1xf32>
    %cst_44 = arith.constant 0.001953125 : f32
    %67 = arith.mulf %66, %cst_44 : f32
    %68 = arith.mulf %62, %62 : vector<32x128xf32>
    %69 = vector.shape_cast %68 : vector<32x128xf32> to vector<1x32x128xf32>
    %cst_45 = arith.constant dense<0.000000e+00> : vector<1xf32>
    %70 = vector.multi_reduction <add>, %69, %cst_45 [1, 2] : vector<1x32x128xf32> to vector<1xf32>
    %71 = vector.shape_cast %70 : vector<1xf32> to vector<1x1x1xf32>
    %72 = vector.extract %71[0, 0, 0] : f32 from vector<1x1x1xf32>
    %cst_46 = arith.constant 0.001953125 : f32
    %73 = arith.mulf %72, %cst_46 : f32
    %74 = arith.mulf %67, %67 : f32
    %75 = arith.subf %73, %74 : f32
    %cst_47 = arith.constant 0.000000e+00 : f32
    %76 = arith.maximumf %75, %cst_47 : f32
    %77 = vector.broadcast %67 : f32 to vector<32x128xf32>
    %78 = arith.subf %62, %77 : vector<32x128xf32>
    %cst_48 = arith.constant 9.99999974E-6 : f32
    %79 = arith.addf %76, %cst_48 : f32
    %80 = math.rsqrt %79 : f32
    %81 = vector.broadcast %80 : f32 to vector<32x128xf32>
    %82 = arith.mulf %78, %81 : vector<32x128xf32>
    %c0_49 = arith.constant 0 : index
    %c0_50 = arith.constant 0 : index
    %83 = vector.load %arg5[%c0_49, %c0_50] : memref<32x128xf32, #tpu.memory_space<vmem>>, vector<32x128xf32>
    %84 = arith.mulf %82, %83 : vector<32x128xf32>
    %c0_51 = arith.constant 0 : index
    %c0_52 = arith.constant 0 : index
    %85 = vector.load %arg6[%c0_51, %c0_52] : memref<32x128xf32, #tpu.memory_space<vmem>>, vector<32x128xf32>
    %86 = arith.addf %84, %85 : vector<32x128xf32>
    %cst_53 = arith.constant 0.000000e+00 : f32
    %87 = vector.broadcast %cst_53 : f32 to vector<32x128xf32>
    %88 = arith.cmpf oge, %86, %87 : vector<32x128xf32>
    %cst_54 = arith.constant 2.000000e-01 : f32
    %89 = vector.broadcast %cst_54 : f32 to vector<32x128xf32>
    %90 = arith.mulf %89, %86 : vector<32x128xf32>
    %91 = arith.select %88, %86, %90 : vector<32x128xi1>, vector<32x128xf32>
    %c1_55 = arith.constant 1 : index
    %c0_56 = arith.constant 0 : index
    %c0_57 = arith.constant 0 : index
    %92 = vector.load %arg7[%c1_55, %c0_56, %c0_57] : memref<2x1x128xf32, #tpu.memory_space<vmem>>, vector<1x1x128xf32>
    %93 = vector.shape_cast %92 : vector<1x1x128xf32> to vector<1x128xf32>
    %c1_58 = arith.constant 1 : index
    %c0_59 = arith.constant 0 : index
    %c0_60 = arith.constant 0 : index
    %94 = vector.load %arg8[%c1_58, %c0_59, %c0_60] : memref<2x1x128xf32, #tpu.memory_space<vmem>>, vector<1x1x128xf32>
    %95 = vector.shape_cast %94 : vector<1x1x128xf32> to vector<1x128xf32>
    %cst_61 = arith.constant 0.000000e+00 : f32
    %96 = vector.broadcast %cst_61 : f32 to vector<1x128xf32>
    %97 = arith.cmpf ogt, %93, %96 : vector<1x128xf32>
    %cst_62 = arith.constant 0xFF800000 : f32
    %98 = vector.shape_cast %97 : vector<1x128xi1> to vector<1x128xi1>
    %99 = vector.broadcast %98 : vector<1x128xi1> to vector<32x128xi1>
    %100 = vector.broadcast %cst_62 : f32 to vector<32x128xf32>
    %101 = arith.select %99, %91, %100 : vector<32x128xi1>, vector<32x128xf32>
    %cst_63 = arith.constant dense<0xFF800000> : vector<32xf32>
    %102 = vector.multi_reduction <maximumf>, %101, %cst_63 [1] : vector<32x128xf32> to vector<32xf32>
    %103 = vector.broadcast %95 : vector<1x128xf32> to vector<32x128xf32>
    %104 = arith.mulf %91, %103 : vector<32x128xf32>
    %cst_64 = arith.constant dense<0.000000e+00> : vector<32xf32>
    %105 = vector.multi_reduction <add>, %104, %cst_64 [1] : vector<32x128xf32> to vector<32xf32>
    %106 = arith.addf %102, %105 : vector<32xf32>
    %107 = vector.shape_cast %106 : vector<32xf32> to vector<1x32xf32>
    %108 = tpu.concatenate %53, %107 in 0 : vector<1x32xf32>, vector<1x32xf32> -> vector<2x32xf32>
    %c0_65 = arith.constant 0 : index
    %c0_66 = arith.constant 0 : index
    %109 = vector.load %arg9[%c0_65, %c0_66] : memref<2x32xf32, #tpu.memory_space<vmem>>, vector<2x32xf32>
    tpu.vector_store %arg9[%c0_65, %c0_66], %108 {strides = array<i32>} : memref<2x32xf32, #tpu.memory_space<vmem>>, vector<2x32xf32>,
    return
  }
  func.func @transform_0(%arg0: i32) -> (i32, i32, i32) {
    %c0_i32 = arith.constant 0 : i32
    %c0_i32_0 = arith.constant 0 : i32
    %c0_i32_1 = arith.constant 0 : i32
    return %arg0, %c0_i32, %c0_i32_0 : i32, i32, i32
  }
  func.func @transform_1(%arg0: i32) -> (i32, i32, i32) {
    %c0_i32 = arith.constant 0 : i32
    %c0_i32_0 = arith.constant 0 : i32
    %c0_i32_1 = arith.constant 0 : i32
    return %arg0, %c0_i32, %c0_i32_0 : i32, i32, i32
  }
  func.func @transform_2(%arg0: i32) -> (i32, i32) {
    %c0_i32 = arith.constant 0 : i32
    %c0_i32_0 = arith.constant 0 : i32
    %c0_i32_1 = arith.constant 0 : i32
    return %c0_i32, %c0_i32_0 : i32, i32
  }
  func.func @transform_3(%arg0: i32) -> (i32, i32) {
    %c0_i32 = arith.constant 0 : i32
    %c0_i32_0 = arith.constant 0 : i32
    %c0_i32_1 = arith.constant 0 : i32
    return %c0_i32, %c0_i32_0 : i32, i32
  }
  func.func @transform_4(%arg0: i32) -> (i32, i32) {
    %c0_i32 = arith.constant 0 : i32
    %c0_i32_0 = arith.constant 0 : i32
    %c0_i32_1 = arith.constant 0 : i32
    return %c0_i32, %c0_i32_0 : i32, i32
  }
  func.func @transform_5(%arg0: i32) -> (i32, i32) {
    %c0_i32 = arith.constant 0 : i32
    %c0_i32_0 = arith.constant 0 : i32
    %c0_i32_1 = arith.constant 0 : i32
    return %c0_i32, %c0_i32_0 : i32, i32
  }
  func.func @transform_6(%arg0: i32) -> (i32, i32, i32) {
    %c0_i32 = arith.constant 0 : i32
    %c0_i32_0 = arith.constant 0 : i32
    %c0_i32_1 = arith.constant 0 : i32
    return %arg0, %c0_i32, %c0_i32_0 : i32, i32, i32
  }
  func.func @transform_7(%arg0: i32) -> (i32, i32, i32) {
    %c0_i32 = arith.constant 0 : i32
    %c0_i32_0 = arith.constant 0 : i32
    %c0_i32_1 = arith.constant 0 : i32
    return %arg0, %c0_i32, %c0_i32_0 : i32, i32, i32
  }
  func.func @transform_8(%arg0: i32) -> (i32, i32) {
    %c0_i32 = arith.constant 0 : i32
    %c0_i32_0 = arith.constant 0 : i32
    return %arg0, %c0_i32 : i32, i32
  }
}

</mosaic_0001>

<bundles_post_ra>
// kernel: neg.11
= control target key start
LH: loop header
LB: loop body
LE: loop exit
PB: predicated region body
PF: predicated region fallthrough
CT: control target
= control target key end

     0   :  { %s24_s0 = inlined_call_operand.vmem [shape: f32[2,16], index: 0, kind: input, shape index: {}]   ;;  %s25_s1 = inlined_call_operand.vmem [shape: f32[2,16], index: 1, kind: output, shape index: {}]  }
   0x1   :  { %v2_v0 = vld [vmem:[%s24_s0] sm:$0x3] }
   0x2   :  { %v5_v1 = vxor.u32 2147483648, %v2_v0 }
   0x4   :  { %7 = vst [vmem:[%s25_s1] sm:$0x3] %v5_v1 }

// kernel: tile.8
= control target key start
LH: loop header
LB: loop body
LE: loop exit
PB: predicated region body
PF: predicated region fallthrough
CT: control target
= control target key end

     0   :  { %s22_s0 = inlined_call_operand.vmem [shape: f32[128], index: 0, kind: input, shape index: {}]   ;;  %s23_s1 = inlined_call_operand.vmem [shape: f32[4,128], index: 1, kind: output, shape index: {}]  }
   0x1   :  { %v4_v0 = vld [vmem:[%s22_s0] ss:$0 sm:$0xff] }
   0x2   :  { %5 = vst [vmem:[%s23_s1] sm:$0xf] %v4_v0 }

// kernel: encoder_forward.3
= control target key start
LH: loop header
LB: loop body
LE: loop exit
PB: predicated region body
PF: predicated region fallthrough
CT: control target
= control target key end

     0   :  { %s1525_s15 = smov 0   ;;  %s1881_s0 = inlined_call_operand.vmem [shape: f32[2,1,512], index: 0, kind: input, shape index: {}]   ;;  %s1882_s1 = inlined_call_operand.vmem [shape: bf16[2,8,128], index: 1, kind: input, shape index: {}]   ;;  %s1883_s2 = inlined_call_operand.vmem [shape: bf16[2,16,512], index: 2, kind: input, shape index: {}]   ;;  %s1884_s3 = inlined_call_operand.vmem [shape: f32[2,1,128], index: 3, kind: input, shape index: {}]   ;;  %s1885_s4 = inlined_call_operand.vmem [shape: f32[1,512], index: 4, kind: input, shape index: {}]   ;;  %s1886_s5 = inlined_call_operand.vmem [shape: bf16[16,8], index: 5, kind: input, shape index: {}]   ;;  %s1887_s6 = inlined_call_operand.vmem [shape: f32[16,512], index: 6, kind: input, shape index: {}]   ;;  %s1888_s7 = inlined_call_operand.vmem [shape: f32[16,512], index: 7, kind: input, shape index: {}]   ;;  %s1889_s8 = inlined_call_operand.<no memory space> [shape: f32[1,1], index: 8, kind: input, shape index: {}]   ;;  %s1890_s9 = inlined_call_operand.vmem [shape: f32[1,512], index: 9, kind: input, shape index: {}]   ;;  %s1891_s10 = inlined_call_operand.vmem [shape: f32[1,512], index: 10, kind: input, shape index: {}]   ;;  %s1892_s11 = inlined_call_operand.vmem [shape: bf16[16,16], index: 11, kind: input, shape index: {}]   ;;  %s1893_s12 = inlined_call_operand.vmem [shape: f32[16,512], index: 12, kind: input, shape index: {}]   ;;  %s1894_s13 = inlined_call_operand.vmem [shape: f32[16,512], index: 13, kind: input, shape index: {}]   ;;  %s1895_s14 = inlined_call_operand.vmem [shape: f32[2,16,128], index: 14, kind: output, shape index: {}]  }
   0x1   :  { %19 = sst [smem:[#allocation2]] %s1889_s8 }
   0x2 LB: > { %s1291_s16 = sadd.s32 4294967295, %s1441_s15   ;;  %p1295_p0 = scmp.ge.s32.totalorder %s1441_s15, 1  ;;  %s1441_s15 = sphi %s1525_s15, %s25_s15  }
   0x3   : > { %p439_p1 = scmp.lt.s32.totalorder %s1441_s15, 3 }
   0x5   : > { %p440_p2 = pnand %p1295_p0, %p439_p1 }
   0x6   : > { %p496_p3 = scmp.lt.s32.totalorder (!%p440_p2), %s1291_s16, 1  ;;  %s518_s17 = sld [smem:[#allocation2]] (!%p440_p2)  ;;  %v523_v0 = vlaneseq (!%p440_p2)  ;;  %v1443_v1 = vmov (!%p440_p2), 0.0   ;;  %vm1444_vm0 = vmmov (!%p440_p2), 0   ;;  %vm633_vm1 = vcmask (!%p440_p2), 1043456   ;;  %v1359_v12 = vld [vmem:[%s1886_s5] sm:$0xff] (!%p440_p2)  }
   0x7   : > { %443 = sbr.rel (%p440_p2) target bundleno = 1120 (0x460), region = 76  ;;  %1323 = vmatprep.subr.bf16.mxu0 (!%p440_p2), %v1443_v1  ;;  %1325 = vmatprep.mubr.msk.bf16.mxu0 (!%p440_p2), %vm1444_vm0, %v1443_v1  ;;  %vm629_vm2 = vcmask (!%p440_p2), 64512   ;;  %vm543_vm3 = vcmask (!%p440_p2), 1040384   ;;  %vm885_vm4 = vcmask (!%p440_p2), 130048  }
   0x8   : > { %v524_v2 = vshrl.u32 (!%p440_p2), %v523_v0, 7 }
   0xa   : > { %v1542_v3 = vsub.s32 (!%p440_p2), 0, %v524_v2  ;;  %v1544_v4 = vsub.s32 (!%p440_p2), 1, %v524_v2  ;;  %v1546_v5 = vsub.s32 (!%p440_p2), 2, %v524_v2  ;;  %v1548_v6 = vsub.s32 (!%p440_p2), 3, %v524_v2 }
   0xc   : > { %v520_v8 = vstv (!%p440_p2), %s518_s17 }
   0xe   : > { %s1907_s16 = smov (!%p496_p3, %s1291_s16), 1 }
   0xf   : > { %s1296_s8 = sshll.u32 %s1907_s16, 2 }
  0x10   : > { %s499_s20 = scalar_lea.vmem %s1881_s0, %s1296_s8  ;;  %s503_s23 = scalar_lea.vmem %s1882_s1, %s1296_s8 }
  0x11   : > { %v519_v7 = vld [vmem:[%s499_s20] sm:$0xf]  ;;  %s1445_s8 = smov 0.0  }
  0x12   : > { %v623_v9 = vld [vmem:[%s503_s23] sm:$0xf]  ;;  %v1550_v10 = vmul.f32 %v520_v8, %v519_v7 }
  0x13   : > { %v635_v11 = vsel %vm633_vm1, %v623_v9, 0 }
  0x14   : > { %1324 = vmatpush3.bf16.msra.mxu0 %v635_v11  ;;  %v526_v13 = vrot.slane %v1550_v10, %v1542_v3  ;;  %v530_v14 = vrot.slane %v1550_v10, %v1544_v4  ;;  %v534_v15 = vrot.slane %v1550_v10, %v1546_v5  ;;  %v538_v16 = vrot.slane %v1550_v10, %v1548_v6 }
  0x15   : > { %v561_v17 = vmul.f32 %v1550_v10, %v1550_v10 }
  0x16   : > { %v544_v18 = vsel %vm543_vm3, %v526_v13, 0.0  ;;  %v545_v19 = vsel %vm543_vm3, %v530_v14, 0.0  ;;  %v547_v20 = vsel %vm543_vm3, %v534_v15, 0.0  ;;  %v549_v25 = vsel %vm543_vm3, %v538_v16, 0.0 }
  0x17   : > { %1326 = vmatmul.mubr.msk.bf16.vlgmr.msra.gmra.mrb[0].mxu0 %vm629_vm2, %v1359_v12  ;;  %v546_v21 = vadd.f32 %v545_v19, %v544_v18  ;;  %v566_v22 = vrot.slane %v561_v17, %v1542_v3  ;;  %v570_v23 = vrot.slane %v561_v17, %v1544_v4  ;;  %v574_v24 = vrot.slane %v561_v17, %v1546_v5 }
  0x18   : > { %v578_v26 = vrot.slane %v561_v17, %v1548_v6  ;;  %v1446_v15 = vmov 0  }
  0x19   : > { %v548_v27 = vadd.f32 %v547_v20, %v546_v21  ;;  %v583_v28 = vsel %vm543_vm3, %v566_v22, 0.0  ;;  %v584_v29 = vsel %vm543_vm3, %v570_v23, 0.0  ;;  %v586_v30 = vsel %vm543_vm3, %v574_v24, 0.0  ;;  %921 = vmatprep.mubr.bf16.mxu1 %v1446_v15  ;;  %964 = vmatprep.mubr.bf16.mxu0 %v1446_v15 }
  0x1a   : > { %v585_v31 = vadd.f32 %v584_v29, %v583_v28  ;;  %v588_v33 = vsel %vm543_vm3, %v578_v26, 0.0 }
  0x1b   : > { %v550_v32 = vadd.f32 %v549_v25, %v548_v27  ;;  %v611_v25 = vld [vmem:[%s1890_s9] sm:$0xf] }
  0x1c   : > { %v587_v34 = vadd.f32 %v586_v30, %v585_v31  ;;  %v613_v27 = vld [vmem:[%s1891_s10] sm:$0xf]  ;;  %v716_v31 = vld [vmem:[%s1887_s6 + $0x8] sm:$0xff] }
  0x1d   : > { %551 = vadd.xlane.f32.xlu0 %v550_v32  ;;  %v717_v32 = vld [vmem:[%s1887_s6 + $0x10] sm:$0xff] }
  0x1e   : > { %v589_v35 = vadd.f32 %v588_v33, %v587_v34  ;;  %v718_v34 = vld [vmem:[%s1887_s6 + $0x18] sm:$0xff] }
  0x21   : > { %590 = vadd.xlane.f32.xlu0 %v589_v35  ;;  %v719_v35 = vld [vmem:[%s1887_s6 + $0x20] sm:$0xff] }
  0xaa   : > { %v552_v36 = vpop.xlane.xlu0 %551 }
  0xab   : > { %v553_v37 = vrot.slane %v552_v36, 4 }
  0xad   : > { %v554_v38 = vadd.f32 %v553_v37, %v552_v36  ;;  %v720_v36 = vld [vmem:[%s1887_s6 + $0x28] sm:$0xff] }
  0xae   : > { %v591_v39 = vpop.xlane.xlu0 %590 }
  0xaf   : > { %v555_v40 = vrot.slane %v554_v38, 2  ;;  %v592_v41 = vrot.slane %v591_v39, 4 }
  0xb1   : > { %v593_v42 = vadd.f32 %v592_v41, %v591_v39  ;;  %v556_v43 = vadd.f32 %v555_v40, %v554_v38  ;;  %v721_v39 = vld [vmem:[%s1887_s6 + $0x30] sm:$0xff]  ;;  %v722_v40 = vld [vmem:[%s1887_s6 + $0x38] sm:$0xff]  ;;  %v731_v41 = vld [vmem:[%s1888_s7] sm:$0xff] }
  0xb3   : > { %v594_v44 = vrot.slane %v593_v42, 2  ;;  %v557_v45 = vrot.slane %v556_v43, 1 }
  0xb5   : > { %v558_v46 = vadd.f32 %v557_v45, %v556_v43  ;;  %v595_v47 = vadd.f32 %v594_v44, %v593_v42  ;;  %v732_v43 = vld [vmem:[%s1888_s7 + $0x8] sm:$0xff]  ;;  %v733_v44 = vld [vmem:[%s1888_s7 + $0x10] sm:$0xff]  ;;  %v734_v45 = vld [vmem:[%s1888_s7 + $0x18] sm:$0xff] }
  0xb7   : > { %1329 = vpush %v558_v46  ;;  %v596_v48 = vrot.slane %v595_v47, 1 }
  0xb9   : > { %v597_v49 = vadd.f32 %v596_v48, %v595_v47 }
  0xbb   : > { %1331 = vpush %v597_v49 }
  0xe8   : > { %s1330_s26 = spop %1329 }
  0xe9   : > { %s1577_s27 = smul.f32 0.015625, %s1330_s26 }
  0xea   : > { %v671_v50 = vpop.f32.mrb[0].mxu0 }
  0xeb   : > { %v1327_v51 = vpop.f32.mrb[1].mxu0  ;;  %s600_s28 = smul.f32 %s1577_s27, %s1577_s27  ;;  %v689_v55 = vmul.f32 %v671_v50, %v671_v50  ;;  %v607_v21 = vstv %s1577_s27 }
  0xec   : > { %v674_v52 = vpop.f32.mrb[2].mxu0  ;;  %s1332_s29 = spop %1331  ;;  %v608_v22 = vsub.f32 %v1550_v10, %v607_v21  ;;  %v715_v10 = vld [vmem:[%s1887_s6] sm:$0xff]  ;;  %v736_v51 = vld [vmem:[%s1888_s7 + $0x28] sm:$0xff] }
  0xed   : > { %v1328_v53 = vpop.f32.mrb[3].mxu0  ;;  %v678_v54 = vadd.f32 %v674_v52, %v671_v50  ;;  %v690_v56 = vmul.f32 %v674_v52, %v674_v52  ;;  %s599_s30 = smul.f32 0.015625, %s1332_s29 }
  0xef   : > { %679 = vadd.xlane.f32.xlu1 %v678_v54  ;;  %v691_v57 = vadd.f32 %v690_v56, %v689_v55  ;;  %s601_s17 = ssub.f32 %s599_s30, %s600_s28  ;;  %v737_v56 = vld [vmem:[%s1888_s7 + $0x30] sm:$0xff] }
  0xf1   : > { %s602_s18 = smax.f32 %s1445_s8, %s601_s17 }
  0xf2   : > { %s603_s19 = sadd.f32 1e-05, %s602_s18  ;;  %s511_s18 = scalar_lea.vmem %s1884_s3, %s1907_s16 }
  0xf3   : > { %692 = vadd.xlane.f32.xlu1 %v691_v57  ;;  %v738_v57 = vld [vmem:[%s1888_s7 + $0x38] sm:$0xff] }
  0xf4   : > { %v604_v58 = vstv %s603_s19 }
  0xf5   : > { %1361 = vrsqrt.f32 %v604_v58 }
  0xff   : > { %v1362_v59 = vpop.eup %1361 }
 0x100   : > { %1333 = vpush %v1362_v59 }
 0x131   : > { %s1334_s20 = spop %1333 }
 0x132   : > { %v609_v23 = vstv %s1334_s20 }
 0x133   : > { %v610_v24 = vmul.f32 %v609_v23, %v608_v22 }
 0x135   : > { %v612_v26 = vmul.f32 %v611_v25, %v610_v24 }
 0x137   : > { %v614_v28 = vadd.f32 %v613_v27, %v612_v26 }
 0x139   : > { %v1302_v29 = vmul.f32 -1.442695, %v614_v28 }
 0x17c   : > { %v680_v60 = vpop.xlane.xlu1 %679 }
 0x17d   : > { %v681_v61 = vrot.slane %v680_v60, 4 }
 0x17f   : > { %v682_v62 = vadd.f32 %v681_v61, %v680_v60 }
 0x180   : > { %v693_v63 = vpop.xlane.xlu1 %692 }
 0x181   : > { %v683_v0 = vrot.slane %v682_v62, 2  ;;  %v694_v1 = vrot.slane %v693_v63, 4 }
 0x183   : > { %v695_v2 = vadd.f32 %v694_v1, %v693_v63  ;;  %v684_v7 = vadd.f32 %v683_v0, %v682_v62 }
 0x185   : > { %v696_v8 = vrot.slane %v695_v2, 2  ;;  %v685_v9 = vrot.slane %v684_v7, 1 }
 0x187   : > { %v686_v11 = vadd.f32 %v685_v9, %v684_v7  ;;  %v697_v12 = vadd.f32 %v696_v8, %v695_v2 }
 0x189   : > { %1335 = vpush %v686_v11  ;;  %v698_v13 = vrot.slane %v697_v12, 1 }
 0x18b   : > { %v699_v14 = vadd.f32 %v698_v13, %v697_v12 }
 0x18d   : > { %1337 = vpush %v699_v14 }
 0x1ba   : > { %s1336_s21 = spop %1335 }
 0x1bb   : > { %s688_s22 = smul.f32 0.0069444445, %s1336_s21 }
 0x1bd   : > { %v705_v16 = vstv %s688_s22  ;;  %s702_s23 = smul.f32 %s688_s22, %s688_s22 }
 0x1be   : > { %s1338_s24 = spop %1337  ;;  %v706_v17 = vsub.f32 %v671_v50, %v705_v16  ;;  %v707_v18 = vsub.f32 %v674_v52, %v705_v16  ;;  %v735_v50 = vld [vmem:[%s1888_s7 + $0x20] sm:$0xff] }
 0x1bf   : > { %s701_s25 = smul.f32 0.0069444445, %s1338_s24  ;;  %s1319_s24 = sshll.u32 %s1907_s16, 5 }
 0x1c1   : > { %s703_s26 = ssub.f32 %s701_s25, %s702_s23 }
 0x1c3   : > { %s704_s28 = smax.f32 %s1445_s8, %s703_s26 }
 0x1c4   : > { %s708_s29 = sadd.f32 1e-05, %s704_s28  ;;  %s1643_s28 = scalar_lea.vmem %s1883_s2, %s1319_s24 }
 0x1c5   : > { %v795_v27 = vld [vmem:[%s1643_s28] sm:$0xff] }
 0x1c6   : > { %v709_v19 = vstv %s708_s29 }
 0x1c7   : > { %1363 = vrsqrt.f32 %v709_v19 }
 0x1c8   : > { %1365 = vpow2.f32 %v1302_v29 }
 0x1d1   : > { %v1364_v20 = vpop.eup %1363 }
 0x1d2   : > { %1339 = vpush %v1364_v20  ;;  %v1366_v30 = vpop.eup %1365 }
 0x1d3   : > { %v618_v42 = vadd.f32 1.0, %v1366_v30 }
 0x1d5   : > { %1367 = vrcp.f32 %v618_v42 }
 0x1df   : > { %v1368_v15 = vpop.eup %1367 }
 0x203   : > { %s1340_s21 = spop %1339 }
 0x204   : > { %v712_v33 = vstv %s1340_s21 }
 0x205   : > { %v713_v37 = vmul.f32 %v712_v33, %v706_v17  ;;  %v714_v38 = vmul.f32 %v712_v33, %v707_v18  ;;  %v799_v33 = vunpack.c.l.bf16 %v795_v27 }
 0x207   : > { %v723_v46 = vmul.f32 %v715_v10, %v713_v37  ;;  %v724_v47 = vmul.f32 %v716_v31, %v713_v37  ;;  %v725_v48 = vmul.f32 %v717_v32, %v713_v37  ;;  %v726_v49 = vmul.f32 %v718_v34, %v713_v37  ;;  %v796_v31 = vld [vmem:[%s1643_s28 + $0x8] sm:$0xff] }
 0x208   : > { %v727_v52 = vmul.f32 %v719_v35, %v714_v38  ;;  %v728_v53 = vmul.f32 %v720_v36, %v714_v38  ;;  %v729_v54 = vmul.f32 %v721_v39, %v714_v38  ;;  %v730_v55 = vmul.f32 %v722_v40, %v714_v38  ;;  %v797_v35 = vld [vmem:[%s1643_s28 + $0x10] sm:$0xff]  ;;  %v844_v40 = vld [vmem:[%s1885_s4] sm:$0xf] }
 0x209   : > { %v739_v58 = vadd.f32 %v731_v41, %v723_v46  ;;  %v740_v59 = vadd.f32 %v732_v43, %v724_v47  ;;  %v741_v60 = vadd.f32 %v733_v44, %v725_v48  ;;  %v742_v61 = vadd.f32 %v734_v45, %v726_v49  ;;  %v798_v41 = vld [vmem:[%s1643_s28 + $0x18] sm:$0xff] }
 0x20a   : > { %v743_v62 = vadd.f32 %v735_v50, %v727_v52  ;;  %v744_v63 = vadd.f32 %v736_v51, %v728_v53  ;;  %v745_v0 = vadd.f32 %v737_v56, %v729_v54  ;;  %v746_v8 = vadd.f32 %v738_v57, %v730_v55 }
 0x20b   : > { %v1305_v1 = vmul.f32 -1.442695, %v739_v58  ;;  %v1306_v2 = vmul.f32 -1.442695, %v740_v59  ;;  %v1307_v7 = vmul.f32 -1.442695, %v741_v60  ;;  %v811_v34 = vrot.slane %v1368_v15, %v1542_v3 }
 0x20c   : > { %v1308_v9 = vmul.f32 -1.442695, %v742_v61  ;;  %v1309_v11 = vmul.f32 -1.442695, %v743_v62  ;;  %v1310_v12 = vmul.f32 -1.442695, %v744_v63  ;;  %v800_v36 = vunpack.c.h.bf16 %v795_v27 }
 0x20d   : > { %1369 = vpow2.f32 %v1305_v1  ;;  %v1311_v13 = vmul.f32 -1.442695, %v745_v0  ;;  %v1312_v14 = vmul.f32 -1.442695, %v746_v8  ;;  %v815_v37 = vrot.slane %v1368_v15, %v1544_v4 }
 0x20e   : > { %1371 = vpow2.f32 %v1306_v2  ;;  %v801_v38 = vunpack.c.l.bf16 %v796_v31  ;;  %v819_v39 = vrot.slane %v1368_v15, %v1546_v5  ;;  %v802_v42 = vunpack.c.h.bf16 %v796_v31 }
 0x20f   : > { %1373 = vpow2.f32 %v1307_v7  ;;  %v823_v43 = vrot.slane %v1368_v15, %v1548_v6  ;;  %v803_v44 = vunpack.c.l.bf16 %v797_v35  ;;  %v828_v45 = vmul.f32 %v811_v34, %v799_v33 }
 0x210   : > { %1375 = vpow2.f32 %v1308_v9  ;;  %v804_v47 = vunpack.c.h.bf16 %v797_v35  ;;  %v829_v48 = vmul.f32 %v815_v37, %v800_v36  ;;  %v805_v50 = vunpack.c.l.bf16 %v798_v41 }
 0x211   : > { %1377 = vpow2.f32 %v1309_v11  ;;  %v849_v52 = vrot.slane %v844_v40, %v1542_v3  ;;  %v830_v53 = vmul.f32 %v819_v39, %v801_v38  ;;  %v853_v56 = vrot.slane %v844_v40, %v1544_v4 }
 0x212   : > { %1379 = vpow2.f32 %v1310_v12  ;;  %v806_v57 = vunpack.c.h.bf16 %v798_v41  ;;  %v831_v58 = vmul.f32 %v823_v43, %v802_v42  ;;  %v832_v60 = vmul.f32 %v811_v34, %v803_v44 }
 0x213   : > { %1381 = vpow2.f32 %v1311_v13  ;;  %v857_v62 = vrot.slane %v844_v40, %v1546_v5  ;;  %v833_v0 = vmul.f32 %v815_v37, %v804_v47  ;;  %v861_v2 = vrot.slane %v844_v40, %v1548_v6 }
 0x214   : > { %1383 = vpow2.f32 %v1312_v14  ;;  %v834_v9 = vmul.f32 %v819_v39, %v805_v50  ;;  %v835_v4 = vmul.f32 %v823_v43, %v806_v57 }
 0x217   : > { %v1370_v16 = vpop.eup %1369 }
 0x218   : > { %v1372_v17 = vpop.eup %1371  ;;  %v771_v18 = vadd.f32 1.0, %v1370_v16 }
 0x219   : > { %v1374_v19 = vpop.eup %1373  ;;  %v772_v20 = vadd.f32 1.0, %v1372_v17 }
 0x21a   : > { %v1376_v21 = vpop.eup %1375  ;;  %v773_v22 = vadd.f32 1.0, %v1374_v19  ;;  %1385 = vrcp.f32 %v771_v18 }
 0x21b   : > { %v1378_v23 = vpop.eup %1377  ;;  %v774_v24 = vadd.f32 1.0, %v1376_v21  ;;  %1387 = vrcp.f32 %v772_v20 }
 0x21c   : > { %v1380_v25 = vpop.eup %1379  ;;  %v775_v26 = vadd.f32 1.0, %v1378_v23  ;;  %1389 = vrcp.f32 %v773_v22 }
 0x21d   : > { %v1382_v28 = vpop.eup %1381  ;;  %v776_v29 = vadd.f32 1.0, %v1380_v25  ;;  %1391 = vrcp.f32 %v774_v24  ;;  %v1360_v25 = vld [vmem:[%s1892_s11] sm:$0xff]  }
 0x21e   : > { %v1384_v30 = vpop.eup %1383  ;;  %v777_v10 = vadd.f32 1.0, %v1382_v28  ;;  %1393 = vrcp.f32 %v775_v26 }
 0x21f   : > { %v778_v32 = vadd.f32 1.0, %v1384_v30  ;;  %1395 = vrcp.f32 %v776_v29 }
 0x220   : > { %1397 = vrcp.f32 %v777_v10 }
 0x221   : > { %1399 = vrcp.f32 %v778_v32 }
 0x224   : > { %v1386_v46 = vpop.eup %1385 }
 0x225   : > { %v1388_v49 = vpop.eup %1387  ;;  %v836_v51 = vadd.f32 %v1386_v46, %v828_v45 }
 0x226   : > { %v1390_v54 = vpop.eup %1389  ;;  %v837_v55 = vadd.f32 %v1388_v49, %v829_v48 }
 0x227   : > { %v1392_v59 = vpop.eup %1391  ;;  %v838_v61 = vadd.f32 %v1390_v54, %v830_v53  ;;  %v866_v3 = vmul.f32 %v849_v52, %v836_v51 }
 0x228   : > { %v1394_v63 = vpop.eup %1393  ;;  %v839_v1 = vadd.f32 %v1392_v59, %v831_v58  ;;  %v867_v13 = vmul.f32 %v853_v56, %v837_v55 }
 0x229   : > { %v1396_v7 = vpop.eup %1395  ;;  %v840_v8 = vadd.f32 %v1394_v63, %v832_v60  ;;  %v868_v17 = vmul.f32 %v857_v62, %v838_v61 }
 0x22a   : > { %v1398_v11 = vpop.eup %1397  ;;  %v841_v12 = vadd.f32 %v1396_v7, %v833_v0  ;;  %v869_v5 = vmul.f32 %v861_v2, %v839_v1 }
 0x22b   : > { %v1400_v14 = vpop.eup %1399  ;;  %v870_v15 = vmul.f32 %v849_v52, %v840_v8  ;;  %v842_v16 = vadd.f32 %v1398_v11, %v834_v9 }
 0x22c   : > { %v871_v18 = vmul.f32 %v853_v56, %v841_v12  ;;  %v843_v19 = vadd.f32 %v1400_v14, %v835_v4 }
 0x22d   : > { %v876_v20 = vpack.c.bf16 %v870_v15, %v866_v3  ;;  %v872_v21 = vmul.f32 %v857_v62, %v842_v16 }
 0x22e   : > { %v877_v22 = vpack.c.bf16 %v871_v18, %v867_v13  ;;  %v873_v23 = vmul.f32 %v861_v2, %v843_v19  ;;  %v1042_v19 = vld [vmem:[%s1893_s12] sm:$0xff] }
 0x22f   : > { %v878_v6 = vpack.c.bf16 %v872_v21, %v868_v17  ;;  %v1044_v21 = vld [vmem:[%s1893_s12 + $0x10] sm:$0xff] }
 0x230   : > { %889 = vmatprep.subr.bf16.mxu1 %v877_v22  ;;  %v879_v24 = vpack.c.bf16 %v873_v23, %v869_v5  ;;  %v1043_v5 = vld [vmem:[%s1893_s12 + $0x8] sm:$0xff]  ;;  %v1045_v22 = vld [vmem:[%s1893_s12 + $0x18] sm:$0xff]  ;;  %v1046_v23 = vld [vmem:[%s1893_s12 + $0x20] sm:$0xff] }
 0x231   : > { %890 = vmatpush1.bf16.msra.mxu1 %v876_v20 }
 0x232   : > { %932 = vmatprep.subr.bf16.mxu0 %v879_v24 }
 0x233   : > { %933 = vmatpush1.bf16.msra.mxu0 %v878_v6 }
 0x234   : > { %1314 = vmatmul.mubr.msk.bf16.vlgmr.msra.gmra.mrb[0].mxu1 %vm885_vm4, %v1360_v25 }
 0x236   : > { %1315 = vmatmul.mubr.msk.bf16.vlgmr.msra.gmra.mrb[4].mxu0 %vm885_vm4, %v1360_v25 }
 0x307   : > { %v1663_v26 = vpop.f32.mrb[0].mxu1 }
 0x308   : > { %v992_v27 = vmul.f32 %v1663_v26, %v1663_v26  ;;  %v1667_v28 = vpop.f32.mrb[1].mxu1 }
 0x309   : > { %v975_v29 = vadd.f32 %v1667_v28, %v1663_v26  ;;  %v993_v30 = vmul.f32 %v1667_v28, %v1667_v28  ;;  %v1673_v10 = vpop.f32.mrb[2].mxu1  ;;  %v1675_v31 = vpop.f32.mrb[4].mxu0 }
 0x30a   : > { %v994_v32 = vmul.f32 %v1675_v31, %v1675_v31  ;;  %v1679_v33 = vpop.f32.mrb[3].mxu1  ;;  %v1681_v34 = vpop.f32.mrb[5].mxu0  ;;  %v996_v42 = vmul.f32 %v1673_v10, %v1673_v10 }
 0x30b   : > { %v1000_v35 = vadd.f32 %v993_v30, %v992_v27  ;;  %v976_v36 = vadd.f32 %v975_v29, %v1675_v31  ;;  %v1684_v37 = vpop.f32.mrb[6].mxu0  ;;  %v995_v41 = vmul.f32 %v1681_v34, %v1681_v34  ;;  %v997_v45 = vmul.f32 %v1679_v33, %v1679_v33  ;;  %v1047_v27 = vld [vmem:[%s1893_s12 + $0x28] sm:$0xff]  ;;  %v1058_v29 = vld [vmem:[%s1894_s13] sm:$0xff] }
 0x30c   : > { %v1686_v38 = vpop.f32.mrb[7].mxu0  ;;  %v998_v48 = vmul.f32 %v1684_v37, %v1684_v37 }
 0x30d   : > { %v1001_v39 = vadd.f32 %v1000_v35, %v994_v32  ;;  %v977_v40 = vadd.f32 %v976_v36, %v1681_v34  ;;  %v999_v51 = vmul.f32 %v1686_v38, %v1686_v38  ;;  %v1061_v35 = vld [vmem:[%s1894_s13 + $0x18] sm:$0xff] }
 0x30e   : > { %v1049_v36 = vld [vmem:[%s1893_s12 + $0x38] sm:$0xff] }
 0x30f   : > { %v978_v43 = vadd.f32 %v977_v40, %v1673_v10  ;;  %v1002_v44 = vadd.f32 %v1001_v39, %v995_v41  ;;  %v1062_v41 = vld [vmem:[%s1894_s13 + $0x20] sm:$0xff] }
 0x311   : > { %v979_v46 = vadd.f32 %v978_v43, %v1679_v33  ;;  %v1003_v47 = vadd.f32 %v1002_v44, %v996_v42  ;;  %v1063_v42 = vld [vmem:[%s1894_s13 + $0x28] sm:$0xff] }
 0x313   : > { %v980_v49 = vadd.f32 %v979_v46, %v1684_v37  ;;  %v1004_v50 = vadd.f32 %v1003_v47, %v997_v45  ;;  %v1064_v46 = vld [vmem:[%s1894_s13 + $0x30] sm:$0xff] }
 0x315   : > { %v981_v52 = vadd.f32 %v980_v49, %v1686_v38  ;;  %v1005_v53 = vadd.f32 %v1004_v50, %v998_v48 }
 0x317   : > { %982 = vadd.xlane.f32.xlu0 %v981_v52  ;;  %v1006_v54 = vadd.f32 %v1005_v53, %v999_v51 }
 0x319   : > { %1007 = vadd.xlane.f32.xlu1 %v1006_v54  ;;  %v1065_v54 = vld [vmem:[%s1894_s13 + $0x38] sm:$0xff] }
 0x3a4   : > { %v983_v55 = vpop.xlane.xlu0 %982 }
 0x3a5   : > { %v984_v56 = vrot.slane %v983_v55, 4 }
 0x3a6   : > { %v1008_v57 = vpop.xlane.xlu1 %1007 }
 0x3a7   : > { %v985_v58 = vadd.f32 %v984_v56, %v983_v55  ;;  %v1009_v59 = vrot.slane %v1008_v57, 4 }
 0x3a9   : > { %v986_v60 = vrot.slane %v985_v58, 2  ;;  %v1010_v61 = vadd.f32 %v1009_v59, %v1008_v57 }
 0x3ab   : > { %v987_v62 = vadd.f32 %v986_v60, %v985_v58  ;;  %v1011_v63 = vrot.slane %v1010_v61, 2 }
 0x3ad   : > { %v1012_v0 = vadd.f32 %v1011_v63, %v1010_v61  ;;  %v988_v1 = vrot.slane %v987_v62, 1 }
 0x3af   : > { %v989_v2 = vadd.f32 %v988_v1, %v987_v62  ;;  %v1013_v7 = vrot.slane %v1012_v0, 1 }
 0x3b1   : > { %1341 = vpush %v989_v2  ;;  %v1014_v8 = vadd.f32 %v1013_v7, %v1012_v0 }
 0x3b3   : > { %1343 = vpush %v1014_v8 }
 0x3e2   : > { %s1342_s19 = spop %1341 }
 0x3e3   : > { %s991_s22 = smul.f32 0.0009765625, %s1342_s19  ;;  %s1320_s19 = sshll.u32 %s1907_s16, 4 }
 0x3e4   : > { %s1344_s27 = spop %1343 }
 0x3e5   : > { %s1017_s21 = smul.f32 %s991_s22, %s991_s22  ;;  %v1024_v3 = vstv %s991_s22  ;;  %s516_s22 = scalar_lea.vmem %s1895_s14, %s1320_s19 }
 0x3e6   : > { %s1016_s20 = smul.f32 0.0009765625, %s1344_s27  ;;  %v1025_v9 = vsub.f32 %v1663_v26, %v1024_v3  ;;  %v1026_v11 = vsub.f32 %v1667_v28, %v1024_v3  ;;  %v1027_v12 = vsub.f32 %v1675_v31, %v1024_v3  ;;  %v1028_v13 = vsub.f32 %v1681_v34, %v1024_v3  ;;  %v1048_v28 = vld [vmem:[%s1893_s12 + $0x30] sm:$0xff] }
 0x3e7   : > { %v1029_v4 = vsub.f32 %v1673_v10, %v1024_v3  ;;  %v1030_v14 = vsub.f32 %v1679_v33, %v1024_v3  ;;  %v1031_v15 = vsub.f32 %v1684_v37, %v1024_v3  ;;  %v1032_v16 = vsub.f32 %v1686_v38, %v1024_v3  ;;  %v1059_v33 = vld [vmem:[%s1894_s13 + $0x8] sm:$0xff]  ;;  %v1060_v34 = vld [vmem:[%s1894_s13 + $0x10] sm:$0xff] }
 0x3e8   : > { %s1018_s23 = ssub.f32 %s1016_s20, %s1017_s21 }
 0x3ea   : > { %s1019_s24 = smax.f32 %s1445_s8, %s1018_s23 }
 0x3eb   : > { %s1020_s25 = sadd.f32 1e-05, %s1019_s24 }
 0x3ed   : > { %v1021_v17 = vstv %s1020_s25 }
 0x3ee   : > { %1401 = vrsqrt.f32 %v1021_v17 }
 0x3f8   : > { %v1402_v18 = vpop.eup %1401 }
 0x3f9   : > { %1345 = vpush %v1402_v18 }
 0x42a   : > { %s1346_s26 = spop %1345 }
 0x42b   : > { %v1033_v20 = vstv %s1346_s26 }
 0x42c   : > { %v1034_v6 = vmul.f32 %v1033_v20, %v1025_v9  ;;  %v1035_v24 = vmul.f32 %v1033_v20, %v1026_v11  ;;  %v1036_v25 = vmul.f32 %v1033_v20, %v1027_v12  ;;  %v1037_v26 = vmul.f32 %v1033_v20, %v1028_v13 }
 0x42d   : > { %v1038_v30 = vmul.f32 %v1033_v20, %v1029_v4  ;;  %v1039_v10 = vmul.f32 %v1033_v20, %v1030_v14  ;;  %v1040_v31 = vmul.f32 %v1033_v20, %v1031_v15  ;;  %v1041_v32 = vmul.f32 %v1033_v20, %v1032_v16 }
 0x42e   : > { %v1050_v37 = vmul.f32 %v1042_v19, %v1034_v6  ;;  %v1051_v38 = vmul.f32 %v1043_v5, %v1035_v24  ;;  %v1052_v39 = vmul.f32 %v1044_v21, %v1036_v25  ;;  %v1053_v40 = vmul.f32 %v1045_v22, %v1037_v26 }
 0x42f   : > { %v1054_v43 = vmul.f32 %v1046_v23, %v1038_v30  ;;  %v1055_v44 = vmul.f32 %v1047_v27, %v1039_v10  ;;  %v1056_v45 = vmul.f32 %v1048_v28, %v1040_v31  ;;  %v1057_v51 = vmul.f32 %v1049_v36, %v1041_v32 }
 0x430   : > { %v1757_v47 = vadd.f32 %v1058_v29, %v1050_v37  ;;  %v1759_v48 = vadd.f32 %v1059_v33, %v1051_v38  ;;  %v1761_v49 = vadd.f32 %v1060_v34, %v1052_v39  ;;  %v1763_v50 = vadd.f32 %v1061_v35, %v1053_v40 }
 0x431   : > { %v1765_v52 = vadd.f32 %v1062_v41, %v1054_v43  ;;  %v1767_v53 = vadd.f32 %v1063_v42, %v1055_v44  ;;  %v1772_v55 = vadd.f32 %v1064_v46, %v1056_v45  ;;  %v1778_v60 = vadd.f32 %v1065_v54, %v1057_v51 }
 0x432   : > { %v1082_v56 = vmin.f32 %v1757_v47, 20.0  ;;  %v1083_v57 = vmin.f32 %v1759_v48, 20.0  ;;  %v1084_v58 = vmin.f32 %v1761_v49, 20.0  ;;  %v1085_v59 = vmin.f32 %v1763_v50, 20.0 }
 0x433   : > { %v1086_v61 = vmin.f32 %v1765_v52, 20.0  ;;  %v1087_v62 = vmin.f32 %v1767_v53, 20.0  ;;  %v1088_v2 = vmin.f32 %v1772_v55, 20.0  ;;  %v1089_v3 = vmin.f32 %v1778_v60, 20.0 }
 0x434   : > { %v1090_v63 = vmul.f32 1.442695, %v1082_v56  ;;  %v1092_v0 = vmul.f32 1.442695, %v1083_v57  ;;  %v1094_v1 = vmul.f32 1.442695, %v1084_v58 }
 0x435   : > { %v1096_v7 = vmul.f32 1.442695, %v1085_v59  ;;  %v1098_v8 = vmul.f32 1.442695, %v1086_v61  ;;  %v1100_v9 = vmul.f32 1.442695, %v1087_v62 }
 0x436   : > { %1403 = vpow2.f32 %v1090_v63  ;;  %v1102_v11 = vmul.f32 1.442695, %v1088_v2  ;;  %v1104_v12 = vmul.f32 1.442695, %v1089_v3  ;;  %vm1074_vm5 = vcmp.gt.f32.partialorder %v1757_v47, 20.0 }
 0x437   : > { %1405 = vpow2.f32 %v1092_v0  ;;  %vm1075_vm6 = vcmp.gt.f32.partialorder %v1759_v48, 20.0  ;;  %vm1076_vm7 = vcmp.gt.f32.partialorder %v1761_v49, 20.0  ;;  %vm1077_vm10 = vcmp.gt.f32.partialorder %v1763_v50, 20.0 }
 0x438   : > { %1407 = vpow2.f32 %v1094_v1  ;;  %vm1078_vm12 = vcmp.gt.f32.partialorder %v1765_v52, 20.0  ;;  %vm1079_vm0 = vcmp.gt.f32.partialorder %v1767_v53, 20.0  ;;  %vm1080_vm2 = vcmp.gt.f32.partialorder %v1772_v55, 20.0 }
 0x439   : > { %1409 = vpow2.f32 %v1096_v7  ;;  %vm1081_vm4 = vcmp.gt.f32.partialorder %v1778_v60, 20.0 }
 0x43a   : > { %1411 = vpow2.f32 %v1098_v8 }
 0x43b   : > { %1413 = vpow2.f32 %v1100_v9 }
 0x43c   : > { %1415 = vpow2.f32 %v1102_v11 }
 0x43d   : > { %1417 = vpow2.f32 %v1104_v12 }
 0x440   : > { %v1404_v13 = vpop.eup %1403 }
 0x441   : > { %v1406_v4 = vpop.eup %1405  ;;  %v1106_v14 = vadd.f32 1.0, %v1404_v13  ;;  %v1109_v5 = vmul.f32 -0.5, %v1404_v13  ;;  %v1112_v26 = vand.u32 2147483647, %v1404_v13 }
 0x442   : > { %v1408_v15 = vpop.eup %1407  ;;  %v1115_v16 = vadd.f32 1.0, %v1406_v4  ;;  %v1118_v20 = vmul.f32 -0.5, %v1406_v4  ;;  %v1121_v27 = vand.u32 2147483647, %v1406_v4 }
 0x443   : > { %v1784_v17 = vpop.eup %1409  ;;  %1419 = vlog2.f32 %v1106_v14  ;;  %v1124_v18 = vadd.f32 1.0, %v1408_v15  ;;  %v1127_v23 = vmul.f32 -0.5, %v1408_v15  ;;  %v1110_v25 = vadd.f32 1.0, %v1109_v5 }
 0x444   : > { %v1786_v19 = vpop.eup %1411  ;;  %1421 = vlog2.f32 %v1115_v16  ;;  %v1133_v21 = vadd.f32 1.0, %v1784_v17  ;;  %v1119_v29 = vadd.f32 1.0, %v1118_v20  ;;  %v1130_v30 = vand.u32 2147483647, %v1408_v15 }
 0x445   : > { %1423 = vlog2.f32 %v1124_v18  ;;  %v1789_v22 = vpop.eup %1413  ;;  %v1142_v24 = vadd.f32 1.0, %v1786_v19  ;;  %v1128_v31 = vadd.f32 1.0, %v1127_v23  ;;  %v1136_v32 = vmul.f32 -0.5, %v1784_v17 }
 0x446   : > { %v1791_v6 = vpop.eup %1415  ;;  %1425 = vlog2.f32 %v1133_v21  ;;  %v1151_v10 = vadd.f32 1.0, %v1789_v22  ;;  %v1139_v34 = vand.u32 2147483647, %v1784_v17  ;;  %v1145_v35 = vmul.f32 -0.5, %v1786_v19 }
 0x447   : > { %v1795_v28 = vpop.eup %1417  ;;  %1427 = vlog2.f32 %v1142_v24  ;;  %v1160_v33 = vadd.f32 1.0, %v1791_v6  ;;  %vm1804_vm8 = vcmp.lt.f32.partialorder %v1112_v26, 0.0004427343  ;;  %vm1808_vm9 = vcmp.lt.f32.partialorder %v1121_v27, 0.0004427343 }
 0x448   : > { %1429 = vlog2.f32 %v1151_v10  ;;  %v1169_v38 = vadd.f32 1.0, %v1795_v28  ;;  %v1111_v40 = vmul.f32 %v1404_v13, %v1110_v25  ;;  %v1120_v41 = vmul.f32 %v1406_v4, %v1119_v29  ;;  %v1316_v25 = vld [vmem:[%s511_s18] ss:$0 sm:$0xff] }
 0x449   : > { %1431 = vlog2.f32 %v1160_v33  ;;  %vm1814_vm11 = vcmp.lt.f32.partialorder %v1130_v30, 0.0004427343  ;;  %v1154_v43 = vmul.f32 -0.5, %v1789_v22  ;;  %v1129_v46 = vmul.f32 %v1408_v15, %v1128_v31 }
 0x44a   : > { %v1137_v51 = vadd.f32 1.0, %v1136_v32  ;;  %1433 = vlog2.f32 %v1169_v38  ;;  %vm1820_vm13 = vcmp.lt.f32.partialorder %v1139_v34, 0.0004427343  ;;  %v1146_v58 = vadd.f32 1.0, %v1145_v35 }
 0x44b   : > { %v1163_v59 = vmul.f32 -0.5, %v1791_v6  ;;  %v1148_v63 = vand.u32 2147483647, %v1786_v19  ;;  %v1172_v0 = vmul.f32 -0.5, %v1795_v28  ;;  %v1155_v7 = vadd.f32 1.0, %v1154_v43 }
 0x44c   : > { %v1157_v8 = vand.u32 2147483647, %v1789_v22  ;;  %v1138_v12 = vmul.f32 %v1784_v17, %v1137_v51  ;;  %v1147_v14 = vmul.f32 %v1786_v19, %v1146_v58  ;;  %v1175_v29 = vand.u32 2147483647, %v1795_v28 }
 0x44d   : > { %v1420_v39 = vpop.eup %1419  ;;  %v1164_v15 = vadd.f32 1.0, %v1163_v59  ;;  %v1173_v17 = vadd.f32 1.0, %v1172_v0  ;;  %vm1149_vm14 = vcmp.lt.f32.partialorder %v1148_v63, 0.0004427343  ;;  %v1156_v21 = vmul.f32 %v1789_v22, %v1155_v7 }
 0x44e   : > { %v1422_v44 = vpop.eup %1421  ;;  %v1108_v45 = vmul.f32 0.6931472, %v1420_v39  ;;  %vm1854_vm15 = vcmp.lt.f32.partialorder %v1157_v8, 0.0004427343  ;;  %vm1176_vm3 = vcmp.lt.f32.partialorder %v1175_v29, 0.0004427343 }
 0x44f   : > { %v1424_v54 = vpop.eup %1423  ;;  %v1117_v56 = vmul.f32 0.6931472, %v1422_v44  ;;  %v1165_v10 = vmul.f32 %v1791_v6, %v1164_v15 }
 0x450   : > { %v1114_v61 = vsel %vm1804_vm8, %v1111_v40, %v1108_v45  ;;  %v1126_v62 = vmul.f32 0.6931472, %v1424_v54  ;;  %v1426_v1 = vpop.eup %1425 }
 0x451   : > { %v1123_v2 = vsel %vm1808_vm9, %v1120_v41, %v1117_v56  ;;  %v1178_v3 = vsel %vm1074_vm5, %v1757_v47, %v1114_v61  ;;  %v1135_v11 = vmul.f32 0.6931472, %v1426_v1  ;;  %v1428_v4 = vpop.eup %1427  ;;  %v1166_v47 = vand.u32 2147483647, %v1791_v6 }
 0x452   : > { %v1132_v9 = vsel %vm1814_vm11, %v1129_v46, %v1126_v62  ;;  %v1179_v13 = vsel %vm1075_vm6, %v1759_v48, %v1123_v2  ;;  %v1144_v5 = vmul.f32 0.6931472, %v1428_v4  ;;  %v1430_v20 = vpop.eup %1429 }
 0x453   : > { %v1186_v16 = vadd.f32 %v1179_v13, %v1178_v3  ;;  %v1141_v18 = vsel %vm1820_vm13, %v1138_v12, %v1135_v11  ;;  %v1180_v48 = vsel %vm1076_vm7, %v1761_v49, %v1132_v9  ;;  %v1432_v24 = vpop.eup %1431  ;;  %v1153_v27 = vmul.f32 0.6931472, %v1430_v20 }
 0x454   : > { %v1150_v26 = vsel %vm1149_vm14, %v1147_v14, %v1144_v5  ;;  %v1181_v49 = vsel %vm1077_vm10, %v1763_v50, %v1141_v18  ;;  %v1162_v30 = vmul.f32 0.6931472, %v1432_v24  ;;  %v1434_v32 = vpop.eup %1433  ;;  %vm1167_vm1 = vcmp.lt.f32.partialorder %v1166_v47, 0.0004427343 }
 0x455   : > { %v1188_v23 = vadd.f32 %v1186_v16, %v1180_v48  ;;  %v1182_v22 = vsel %vm1078_vm12, %v1765_v52, %v1150_v26  ;;  %v1159_v33 = vsel %vm1854_vm15, %v1156_v21, %v1153_v27  ;;  %v1174_v50 = vmul.f32 %v1795_v28, %v1173_v17 }
 0x456   : > { %v1168_v34 = vsel %vm1167_vm1, %v1165_v10, %v1162_v30  ;;  %v1171_v6 = vmul.f32 0.6931472, %v1434_v32  ;;  %v1183_v35 = vsel %vm1079_vm0, %v1767_v53, %v1159_v33 }
 0x457   : > { %v1190_v31 = vadd.f32 %v1188_v23, %v1181_v49  ;;  %v1187_v52 = vadd.f32 %v1183_v35, %v1182_v22  ;;  %v1184_v38 = vsel %vm1080_vm2, %v1772_v55, %v1168_v34 }
 0x458   : > { %v1177_v37 = vsel %vm1176_vm3, %v1174_v50, %v1171_v6 }
 0x459   : > { %v1199_v36 = vmul.f32 %v1316_v25, %v1190_v31  ;;  %v1189_v39 = vadd.f32 %v1187_v52, %v1184_v38  ;;  %v1185_v40 = vsel %vm1081_vm4, %v1778_v60, %v1177_v37 }
 0x45b   : > { %1201 = vst [vmem:[%s516_s22] sm:$0xff] %v1199_v36  ;;  %v1191_v41 = vadd.f32 %v1189_v39, %v1185_v40 }
 0x45d   : > { %v1200_v28 = vmul.f32 %v1316_v25, %v1191_v41 }
 0x45f   : > { %1202 = vst [vmem:[%s516_s22 + $0x8] sm:$0xff] %v1200_v28 }
 0x460 PF: > { %s25_s15 = sadd.s32 1, %s1441_s15  }
 0x461   : > { %p22_p4 = scmp.ge.s32.totalorder %s25_s15, 4  }
 0x463   :  { %24 = sbr.rel (!%p22_p4) target bundleno = 2 (0x2), region = 115 }

// kernel: encoder_forward.4
= control target key start
LH: loop header
LB: loop body
LE: loop exit
PB: predicated region body
PF: predicated region fallthrough
CT: control target
= control target key end

     0   :  { %s1723_s15 = smov 0   ;;  %s2251_s0 = inlined_call_operand.vmem [shape: f32[2,1,512], index: 0, kind: input, shape index: {}]   ;;  %s2252_s1 = inlined_call_operand.vmem [shape: bf16[2,16,128], index: 1, kind: input, shape index: {}]   ;;  %s2253_s2 = inlined_call_operand.vmem [shape: bf16[2,32,512], index: 2, kind: input, shape index: {}]   ;;  %s2254_s3 = inlined_call_operand.vmem [shape: f32[2,1,128], index: 3, kind: input, shape index: {}]   ;;  %s2255_s4 = inlined_call_operand.vmem [shape: f32[1,512], index: 4, kind: input, shape index: {}]   ;;  %s2256_s5 = inlined_call_operand.vmem [shape: bf16[32,16], index: 5, kind: input, shape index: {}]   ;;  %s2257_s6 = inlined_call_operand.vmem [shape: f32[32,512], index: 6, kind: input, shape index: {}]   ;;  %s2258_s7 = inlined_call_operand.vmem [shape: f32[32,512], index: 7, kind: input, shape index: {}]   ;;  %s2259_s8 = inlined_call_operand.<no memory space> [shape: f32[1,1], index: 8, kind: input, shape index: {}]   ;;  %s2260_s9 = inlined_call_operand.vmem [shape: f32[1,512], index: 9, kind: input, shape index: {}]   ;;  %s2261_s10 = inlined_call_operand.vmem [shape: f32[1,512], index: 10, kind: input, shape index: {}]   ;;  %s2262_s11 = inlined_call_operand.vmem [shape: bf16[16,32], index: 11, kind: input, shape index: {}]   ;;  %s2263_s12 = inlined_call_operand.vmem [shape: f32[16,512], index: 12, kind: input, shape index: {}]   ;;  %s2264_s13 = inlined_call_operand.vmem [shape: f32[16,512], index: 13, kind: input, shape index: {}]   ;;  %s2265_s14 = inlined_call_operand.vmem [shape: f32[2,16,128], index: 14, kind: output, shape index: {}]  }
   0x1   :  { %19 = sst [smem:[#allocation2]] %s2259_s8 }
   0x2 LB: > { %s1445_s16 = sadd.s32 4294967295, %s1641_s15   ;;  %p1449_p0 = scmp.ge.s32.totalorder %s1641_s15, 1  ;;  %s1641_s15 = sphi %s1723_s15, %s25_s15  }
   0x3   : > { %p440_p1 = scmp.lt.s32.totalorder %s1641_s15, 3 }
   0x5   : > { %p441_p2 = pnand %p1449_p0, %p440_p1 }
   0x6   : > { %p498_p3 = scmp.lt.s32.totalorder (!%p441_p2), %s1445_s16, 1  ;;  %v1526_v0 = vld [vmem:[%s2256_s5] sm:$0xff] (!%p441_p2)   ;;  %v526_v1 = vlaneseq (!%p441_p2)  ;;  %vm646_vm0 = vcmask (!%p441_p2), 130048   ;;  %s521_s8 = sld [smem:[#allocation2]] (!%p441_p2)  ;;  %v1527_v4 = vld [vmem:[%s2256_s5 + $0x8] sm:$0xff] (!%p441_p2)   ;;  %vm546_vm1 = vcmask (!%p441_p2), 1040384  }
   0x7   : > { %444 = sbr.rel (%p441_p2) target bundleno = 1140 (0x474), region = 76  ;;  %1493 = vmatprep.mubr.msk.bf16.mxu0 (!%p441_p2), %vm646_vm0, %v1526_v0  ;;  %s1643_s20 = smov (!%p441_p2), 0.0   ;;  %vm1039_vm2 = vcmask (!%p441_p2), 261120  }
   0x8   : > { %v527_v2 = vshrl.u32 (!%p441_p2), %v526_v1, 7 }
   0xa   : > { %v1748_v6 = vsub.s32 (!%p441_p2), 0, %v527_v2  ;;  %v1750_v7 = vsub.s32 (!%p441_p2), 1, %v527_v2  ;;  %v1752_v8 = vsub.s32 (!%p441_p2), 2, %v527_v2  ;;  %v1754_v9 = vsub.s32 (!%p441_p2), 3, %v527_v2 }
   0xc   : > { %v523_v10 = vstv (!%p441_p2), %s521_s8 }
   0xe   : > { %s2277_s16 = smov (!%p498_p3, %s1445_s16), 1 }
   0xf   : > { %s1485_s19 = sshll.u32 %s2277_s16, 3  ;;  %s1450_s23 = sshll.u32 %s2277_s16, 2 }
  0x10   : > { %s506_s22 = scalar_lea.vmem %s2252_s1, %s1485_s19  ;;  %s501_s28 = scalar_lea.vmem %s2251_s0, %s1450_s23 }
  0x11   : > { %v1525_v3 = vld [vmem:[%s506_s22] sm:$0xff]  }
  0x12   : > { %1491 = vmatprep.subr.bf16.mxu0 %v1525_v3  ;;  %v522_v5 = vld [vmem:[%s501_s28] sm:$0xf] }
  0x13   : > { %1492 = vmatpush3.bf16.msra.mxu0 %v1525_v3  ;;  %v1756_v11 = vmul.f32 %v523_v10, %v522_v5 }
  0x15   : > { %v529_v12 = vrot.slane %v1756_v11, %v1748_v6  ;;  %v533_v13 = vrot.slane %v1756_v11, %v1750_v7  ;;  %v537_v14 = vrot.slane %v1756_v11, %v1752_v8  ;;  %v541_v15 = vrot.slane %v1756_v11, %v1754_v9 }
  0x16   : > { %1494 = vmatmul.mubr.msk.bf16.vlgmr.msra.gmra.mrb[0].mxu0 %vm646_vm0, %v1527_v4  ;;  %v564_v16 = vmul.f32 %v1756_v11, %v1756_v11 }
  0x17   : > { %v547_v17 = vsel %vm546_vm1, %v529_v12, 0.0  ;;  %v548_v18 = vsel %vm546_vm1, %v533_v13, 0.0  ;;  %v550_v19 = vsel %vm546_vm1, %v537_v14, 0.0  ;;  %v552_v24 = vsel %vm546_vm1, %v541_v15, 0.0 }
  0x18   : > { %v549_v20 = vadd.f32 %v548_v18, %v547_v17  ;;  %v569_v21 = vrot.slane %v564_v16, %v1748_v6  ;;  %v573_v22 = vrot.slane %v564_v16, %v1750_v7  ;;  %v577_v23 = vrot.slane %v564_v16, %v1752_v8 }
  0x19   : > { %v581_v25 = vrot.slane %v564_v16, %v1754_v9 }
  0x1a   : > { %v551_v26 = vadd.f32 %v550_v19, %v549_v20  ;;  %v586_v27 = vsel %vm546_vm1, %v569_v21, 0.0  ;;  %v587_v28 = vsel %vm546_vm1, %v573_v22, 0.0  ;;  %v589_v29 = vsel %vm546_vm1, %v577_v23, 0.0 }
  0x1b   : > { %v588_v30 = vadd.f32 %v587_v28, %v586_v27  ;;  %v591_v32 = vsel %vm546_vm1, %v581_v25, 0.0 }
  0x1c   : > { %v553_v31 = vadd.f32 %v552_v24, %v551_v26  ;;  %v1644_v26 = vmov 0  }
  0x1d   : > { %v590_v33 = vadd.f32 %v589_v29, %v588_v30  ;;  %1075 = vmatprep.mubr.bf16.mxu1 %v1644_v26  ;;  %1118 = vmatprep.mubr.bf16.mxu0 %v1644_v26 }
  0x1e   : > { %554 = vadd.xlane.f32.xlu0 %v553_v31 }
  0x1f   : > { %v592_v34 = vadd.f32 %v591_v32, %v590_v33  ;;  %v614_v32 = vld [vmem:[%s2260_s9] sm:$0xf] }
  0x22   : > { %593 = vadd.xlane.f32.xlu0 %v592_v34  ;;  %v616_v34 = vld [vmem:[%s2261_s10] sm:$0xf] }
  0xab   : > { %v555_v35 = vpop.xlane.xlu0 %554 }
  0xac   : > { %v556_v36 = vrot.slane %v555_v35, 4 }
  0xae   : > { %v557_v37 = vadd.f32 %v556_v36, %v555_v35 }
  0xaf   : > { %v594_v38 = vpop.xlane.xlu0 %593 }
  0xb0   : > { %v558_v39 = vrot.slane %v557_v37, 2  ;;  %v595_v40 = vrot.slane %v594_v38, 4 }
  0xb2   : > { %v596_v41 = vadd.f32 %v595_v40, %v594_v38  ;;  %v559_v42 = vadd.f32 %v558_v39, %v557_v37  ;;  %v750_v38 = vld [vmem:[%s2257_s6 + $0x8] sm:$0xff]  ;;  %v751_v39 = vld [vmem:[%s2257_s6 + $0x10] sm:$0xff] }
  0xb4   : > { %v597_v43 = vrot.slane %v596_v41, 2  ;;  %v560_v44 = vrot.slane %v559_v42, 1 }
  0xb6   : > { %v561_v45 = vadd.f32 %v560_v44, %v559_v42  ;;  %v598_v46 = vadd.f32 %v597_v43, %v596_v41  ;;  %v752_v42 = vld [vmem:[%s2257_s6 + $0x18] sm:$0xff]  ;;  %v753_v43 = vld [vmem:[%s2257_s6 + $0x20] sm:$0xff]  ;;  %v754_v44 = vld [vmem:[%s2257_s6 + $0x28] sm:$0xff] }
  0xb8   : > { %1497 = vpush %v561_v45  ;;  %v599_v47 = vrot.slane %v598_v46, 1  ;;  %v755_v45 = vld [vmem:[%s2257_s6 + $0x30] sm:$0xff] }
  0xba   : > { %v600_v48 = vadd.f32 %v599_v47, %v598_v46 }
  0xbc   : > { %1499 = vpush %v600_v48 }
  0xe9   : > { %v1781_v49 = vpop.f32.mrb[0].mxu0  ;;  %s1498_s29 = spop %1497 }
  0xea   : > { %v1783_v50 = vpop.f32.mrb[1].mxu0  ;;  %s1787_s30 = smul.f32 0.015625, %s1498_s29  ;;  %v717_v56 = vmul.f32 %v1781_v49, %v1781_v49 }
  0xeb   : > { %v1785_v51 = vpop.f32.mrb[2].mxu0  ;;  %v715_v53 = vmul.f32 %v1783_v50, %v1783_v50 }
  0xec   : > { %v1789_v52 = vpop.f32.mrb[3].mxu0  ;;  %s603_s17 = smul.f32 %s1787_s30, %s1787_s30  ;;  %v718_v60 = vmul.f32 %v1785_v51, %v1785_v51  ;;  %v610_v28 = vstv %s1787_s30  ;;  %s514_s30 = scalar_lea.vmem %s2254_s3, %s2277_s16 }
  0xed   : > { %v702_v54 = vadd.f32 %v1789_v52, %v1783_v50  ;;  %v716_v55 = vmul.f32 %v1789_v52, %v1789_v52  ;;  %s1500_s18 = spop %1499  ;;  %v611_v29 = vsub.f32 %v1756_v11, %v610_v28  ;;  %v749_v11 = vld [vmem:[%s2257_s6] sm:$0xff] }
  0xee   : > { %s602_s8 = smul.f32 0.015625, %s1500_s18 }
  0xef   : > { %v703_v57 = vadd.f32 %v1781_v49, %v702_v54  ;;  %v719_v58 = vadd.f32 %v716_v55, %v715_v53  ;;  %v756_v55 = vld [vmem:[%s2257_s6 + $0x38] sm:$0xff] }
  0xf0   : > { %s604_s19 = ssub.f32 %s602_s8, %s603_s17 }
  0xf1   : > { %v704_v59 = vadd.f32 %v1785_v51, %v703_v57  ;;  %v720_v61 = vadd.f32 %v719_v58, %v717_v56  ;;  %v784_v57 = vld [vmem:[%s2258_s7 + $0x18] sm:$0xff]  ;;  %v757_v58 = vld [vmem:[%s2257_s6 + $0x40] sm:$0xff] }
  0xf2   : > { %s605_s21 = smax.f32 %s1643_s20, %s604_s19 }
  0xf3   : > { %705 = vadd.xlane.f32.xlu1 %v704_v59  ;;  %v721_v62 = vadd.f32 %v720_v61, %v718_v60  ;;  %s606_s22 = sadd.f32 1e-05, %s605_s21  ;;  %v785_v60 = vld [vmem:[%s2258_s7 + $0x20] sm:$0xff]  ;;  %v758_v61 = vld [vmem:[%s2257_s6 + $0x48] sm:$0xff] }
  0xf5   : > { %v607_v63 = vstv %s606_s22 }
  0xf6   : > { %1529 = vrsqrt.f32 %v607_v63 }
  0xf7   : > { %722 = vadd.xlane.f32.xlu1 %v721_v62  ;;  %v759_v62 = vld [vmem:[%s2257_s6 + $0x50] sm:$0xff] }
 0x100   : > { %v1530_v0 = vpop.eup %1529 }
 0x101   : > { %1501 = vpush %v1530_v0  ;;  %v786_v0 = vld [vmem:[%s2258_s7 + $0x28] sm:$0xff] }
 0x132   : > { %s1502_s23 = spop %1501 }
 0x133   : > { %v612_v30 = vstv %s1502_s23 }
 0x134   : > { %v613_v31 = vmul.f32 %v612_v30, %v611_v29  ;;  %v763_v29 = vld [vmem:[%s2257_s6 + $0x70] sm:$0xff] }
 0x136   : > { %v615_v33 = vmul.f32 %v614_v32, %v613_v31  ;;  %v791_v31 = vld [vmem:[%s2258_s7 + $0x50] sm:$0xff] }
 0x138   : > { %v617_v35 = vadd.f32 %v616_v34, %v615_v33  ;;  %v764_v34 = vld [vmem:[%s2257_s6 + $0x78] sm:$0xff] }
 0x13a   : > { %v1457_v36 = vmul.f32 -1.442695, %v617_v35 }
 0x180   : > { %v706_v1 = vpop.xlane.xlu1 %705 }
 0x181   : > { %v707_v2 = vrot.slane %v706_v1, 4 }
 0x183   : > { %v708_v3 = vadd.f32 %v707_v2, %v706_v1 }
 0x184   : > { %v723_v4 = vpop.xlane.xlu1 %722 }
 0x185   : > { %v709_v5 = vrot.slane %v708_v3, 2  ;;  %v724_v10 = vrot.slane %v723_v4, 4 }
 0x187   : > { %v725_v12 = vadd.f32 %v724_v10, %v723_v4  ;;  %v710_v13 = vadd.f32 %v709_v5, %v708_v3  ;;  %v787_v10 = vld [vmem:[%s2258_s7 + $0x30] sm:$0xff] }
 0x189   : > { %v726_v14 = vrot.slane %v725_v12, 2  ;;  %v711_v15 = vrot.slane %v710_v13, 1 }
 0x18b   : > { %v712_v16 = vadd.f32 %v711_v15, %v710_v13  ;;  %v727_v17 = vadd.f32 %v726_v14, %v725_v12  ;;  %v760_v14 = vld [vmem:[%s2257_s6 + $0x58] sm:$0xff]  ;;  %v761_v15 = vld [vmem:[%s2257_s6 + $0x60] sm:$0xff] }
 0x18d   : > { %1503 = vpush %v712_v16  ;;  %v728_v18 = vrot.slane %v727_v17, 1 }
 0x18f   : > { %v729_v19 = vadd.f32 %v728_v18, %v727_v17  ;;  %v788_v17 = vld [vmem:[%s2258_s7 + $0x38] sm:$0xff] }
 0x191   : > { %1505 = vpush %v729_v19  ;;  %v762_v19 = vld [vmem:[%s2257_s6 + $0x68] sm:$0xff] }
 0x1be   : > { %s1504_s24 = spop %1503 }
 0x1bf   : > { %s714_s25 = smul.f32 0.003125, %s1504_s24 }
 0x1c1   : > { %v1806_v20 = vstv %s714_s25  ;;  %s732_s26 = smul.f32 %s714_s25, %s714_s25 }
 0x1c2   : > { %s1506_s27 = spop %1505  ;;  %v736_v21 = vsub.f32 %v1783_v50, %v1806_v20  ;;  %v737_v22 = vsub.f32 %v1789_v52, %v1806_v20  ;;  %v738_v23 = vsub.f32 %v1781_v49, %v1806_v20  ;;  %v739_v24 = vsub.f32 %v1785_v51, %v1806_v20  ;;  %v781_v50 = vld [vmem:[%s2258_s7] sm:$0xff]  ;;  %v782_v51 = vld [vmem:[%s2258_s7 + $0x8] sm:$0xff]  ;;  %v783_v52 = vld [vmem:[%s2258_s7 + $0x10] sm:$0xff] }
 0x1c3   : > { %s731_s28 = smul.f32 0.003125, %s1506_s27 }
 0x1c5   : > { %s733_s29 = ssub.f32 %s731_s28, %s732_s26 }
 0x1c7   : > { %s734_s17 = smax.f32 %s1643_s20, %s733_s29 }
 0x1c8   : > { %s740_s18 = sadd.f32 1e-05, %s734_s17 }
 0x1ca   : > { %v741_v25 = vstv %s740_s18  ;;  %s1486_s18 = sshll.u32 %s2277_s16, 6 }
 0x1cb   : > { %1531 = vrsqrt.f32 %v741_v25  ;;  %s1929_s21 = scalar_lea.vmem %s2253_s2, %s1486_s18 }
 0x1cc   : > { %1533 = vpow2.f32 %v1457_v36  ;;  %v792_v36 = vld [vmem:[%s2258_s7 + $0x58] sm:$0xff] }
 0x1d5   : > { %v1532_v27 = vpop.eup %1531 }
 0x1d6   : > { %1507 = vpush %v1532_v27  ;;  %v1534_v53 = vpop.eup %1533 }
 0x1d7   : > { %v621_v4 = vadd.f32 1.0, %v1534_v53 }
 0x1d9   : > { %1535 = vrcp.f32 %v621_v4 }
 0x207   : > { %s1508_s24 = spop %1507 }
 0x208   : > { %v744_v37 = vstv %s1508_s24 }
 0x209   : > { %v745_v40 = vmul.f32 %v744_v37, %v736_v21  ;;  %v746_v41 = vmul.f32 %v744_v37, %v737_v22  ;;  %v747_v54 = vmul.f32 %v744_v37, %v738_v23  ;;  %v748_v13 = vmul.f32 %v744_v37, %v739_v24  ;;  %v789_v22 = vld [vmem:[%s2258_s7 + $0x40] sm:$0xff]  ;;  %v790_v23 = vld [vmem:[%s2258_s7 + $0x48] sm:$0xff] }
 0x20b   : > { %v765_v46 = vmul.f32 %v749_v11, %v745_v40  ;;  %v766_v47 = vmul.f32 %v750_v38, %v745_v40  ;;  %v767_v48 = vmul.f32 %v751_v39, %v745_v40  ;;  %v768_v49 = vmul.f32 %v752_v42, %v745_v40  ;;  %v793_v39 = vld [vmem:[%s2258_s7 + $0x60] sm:$0xff] }
 0x20c   : > { %v769_v56 = vmul.f32 %v753_v43, %v746_v41  ;;  %v770_v59 = vmul.f32 %v754_v44, %v746_v41  ;;  %v771_v63 = vmul.f32 %v755_v45, %v746_v41  ;;  %v772_v5 = vmul.f32 %v756_v55, %v746_v41  ;;  %v794_v43 = vld [vmem:[%s2258_s7 + $0x68] sm:$0xff] }
 0x20d   : > { %v797_v1 = vadd.f32 %v781_v50, %v765_v46  ;;  %v798_v2 = vadd.f32 %v782_v51, %v766_v47  ;;  %v799_v3 = vadd.f32 %v783_v52, %v767_v48  ;;  %v800_v12 = vadd.f32 %v784_v57, %v768_v49  ;;  %v795_v47 = vld [vmem:[%s2258_s7 + $0x70] sm:$0xff]  ;;  %v796_v50 = vld [vmem:[%s2258_s7 + $0x78] sm:$0xff] }
 0x20e   : > { %v773_v16 = vmul.f32 %v757_v58, %v747_v54  ;;  %v801_v18 = vadd.f32 %v785_v60, %v769_v56  ;;  %v774_v20 = vmul.f32 %v758_v61, %v747_v54  ;;  %v775_v21 = vmul.f32 %v759_v62, %v747_v54  ;;  %v1922_v60 = vpop.eup %1535 }
 0x20f   : > { %v802_v24 = vadd.f32 %v786_v0, %v770_v59  ;;  %v803_v25 = vadd.f32 %v787_v10, %v771_v63  ;;  %v1463_v26 = vmul.f32 -1.442695, %v797_v1  ;;  %v1464_v27 = vmul.f32 -1.442695, %v798_v2  ;;  %v1935_v10 = vld [vmem:[%s1929_s21 + $0x10] sm:$0xff] }
 0x210   : > { %v1465_v28 = vmul.f32 -1.442695, %v799_v3  ;;  %v776_v30 = vmul.f32 %v760_v14, %v747_v54  ;;  %v804_v32 = vadd.f32 %v788_v17, %v772_v5  ;;  %v1466_v33 = vmul.f32 -1.442695, %v800_v12  ;;  %v1932_v5 = vld [vmem:[%s1929_s21] sm:$0xff]  ;;  %v1941_v17 = vld [vmem:[%s1929_s21 + $0x18] sm:$0xff] }
 0x211   : > { %v777_v35 = vmul.f32 %v761_v15, %v748_v13  ;;  %v805_v37 = vadd.f32 %v789_v22, %v773_v16  ;;  %1537 = vpow2.f32 %v1463_v26  ;;  %v1467_v11 = vmul.f32 -1.442695, %v801_v18  ;;  %v910_v15 = vld [vmem:[%s1929_s21 + $0x8] sm:$0xff]  ;;  %v1949_v22 = vld [vmem:[%s1929_s21 + $0x30] sm:$0xff] }
 0x212   : > { %v778_v38 = vmul.f32 %v762_v19, %v748_v13  ;;  %v806_v40 = vadd.f32 %v790_v23, %v774_v20  ;;  %1539 = vpow2.f32 %v1464_v27  ;;  %v1468_v41 = vmul.f32 -1.442695, %v802_v24 }
 0x213   : > { %v779_v42 = vmul.f32 %v763_v29, %v748_v13  ;;  %v807_v44 = vadd.f32 %v791_v31, %v775_v21  ;;  %1541 = vpow2.f32 %v1465_v28  ;;  %v1469_v45 = vmul.f32 -1.442695, %v803_v25  ;;  %v1946_v21 = vld [vmem:[%s1929_s21 + $0x20] sm:$0xff]  ;;  %v1954_v31 = vld [vmem:[%s1929_s21 + $0x28] sm:$0xff] }
 0x214   : > { %v780_v46 = vmul.f32 %v764_v34, %v748_v13  ;;  %v808_v48 = vadd.f32 %v792_v36, %v776_v30  ;;  %1543 = vpow2.f32 %v1466_v33  ;;  %v1470_v49 = vmul.f32 -1.442695, %v804_v32  ;;  %v1959_v36 = vld [vmem:[%s1929_s21 + $0x38] sm:$0xff] }
 0x215   : > { %v809_v51 = vadd.f32 %v793_v39, %v777_v35  ;;  %1545 = vpow2.f32 %v1467_v11  ;;  %v1471_v52 = vmul.f32 -1.442695, %v805_v37  ;;  %v810_v53 = vadd.f32 %v794_v43, %v778_v38 }
 0x216   : > { %1547 = vpow2.f32 %v1468_v41  ;;  %v1472_v54 = vmul.f32 -1.442695, %v806_v40  ;;  %v811_v55 = vadd.f32 %v795_v47, %v779_v42  ;;  %v1473_v56 = vmul.f32 -1.442695, %v807_v44 }
 0x217   : > { %1549 = vpow2.f32 %v1469_v45  ;;  %v812_v57 = vadd.f32 %v796_v50, %v780_v46  ;;  %v1474_v58 = vmul.f32 -1.442695, %v808_v48  ;;  %v1475_v59 = vmul.f32 -1.442695, %v809_v51  ;;  %v986_v50 = vld [vmem:[%s2255_s4] sm:$0xf] }
 0x218   : > { %1551 = vpow2.f32 %v1470_v49  ;;  %v1476_v61 = vmul.f32 -1.442695, %v810_v53  ;;  %v1477_v63 = vmul.f32 -1.442695, %v811_v55  ;;  %v918_v19 = vunpack.c.h.bf16 %v1932_v5 }
 0x219   : > { %1553 = vpow2.f32 %v1471_v52  ;;  %v1478_v1 = vmul.f32 -1.442695, %v812_v57  ;;  %v922_v20 = vunpack.c.h.bf16 %v1935_v10  ;;  %v919_v25 = vunpack.c.l.bf16 %v910_v15 }
 0x21a   : > { %1555 = vpow2.f32 %v1472_v54  ;;  %v920_v26 = vunpack.c.h.bf16 %v910_v15  ;;  %v923_v29 = vunpack.c.l.bf16 %v1941_v17  ;;  %v924_v30 = vunpack.c.h.bf16 %v1941_v17 }
 0x21b   : > { %v1924_v62 = vpop.eup %1537  ;;  %1557 = vpow2.f32 %v1473_v56  ;;  %v926_v34 = vunpack.c.h.bf16 %v1946_v21  ;;  %v930_v35 = vunpack.c.h.bf16 %v1949_v22  ;;  %v1963_v38 = vrot.slane %v1922_v60, %v1750_v7 }
 0x21c   : > { %v1540_v0 = vpop.eup %1539  ;;  %1559 = vpow2.f32 %v1474_v58  ;;  %v1967_v39 = vrot.slane %v1922_v60, %v1754_v9  ;;  %v1971_v42 = vrot.slane %v1922_v60, %v1752_v8  ;;  %v927_v43 = vunpack.c.l.bf16 %v1954_v31 }
 0x21d   : > { %v1542_v2 = vpop.eup %1541  ;;  %1561 = vpow2.f32 %v1475_v59  ;;  %v862_v14 = vadd.f32 1.0, %v1540_v0  ;;  %v928_v46 = vunpack.c.h.bf16 %v1954_v31  ;;  %v931_v47 = vunpack.c.l.bf16 %v1959_v36 }
 0x21e   : > { %v1544_v3 = vpop.eup %1543  ;;  %1563 = vpow2.f32 %v1476_v61  ;;  %v863_v4 = vadd.f32 1.0, %v1542_v2  ;;  %v1981_v51 = vrot.slane %v1922_v60, %v1748_v6  ;;  %v925_v52 = vunpack.c.l.bf16 %v1946_v21 }
 0x21f   : > { %v1937_v12 = vpop.eup %1545  ;;  %1565 = vpow2.f32 %v1477_v63  ;;  %v864_v13 = vadd.f32 1.0, %v1544_v3  ;;  %v955_v55 = vmul.f32 %v1963_v38, %v918_v19  ;;  %v957_v56 = vmul.f32 %v1967_v39, %v920_v26 }
 0x220   : > { %v1548_v16 = vpop.eup %1547  ;;  %1567 = vpow2.f32 %v1478_v1  ;;  %v956_v61 = vmul.f32 %v1971_v42, %v919_v25  ;;  %v861_v60 = vadd.f32 1.0, %v1924_v62  ;;  %v1989_v1 = vrot.slane %v986_v50, %v1752_v8 }
 0x221   : > { %v1550_v18 = vpop.eup %1549  ;;  %1569 = vrcp.f32 %v863_v4  ;;  %v866_v59 = vadd.f32 1.0, %v1548_v16  ;;  %v1992_v3 = vrot.slane %v986_v50, %v1754_v9  ;;  %v865_v4 = vadd.f32 1.0, %v1937_v12 }
 0x222   : > { %v1552_v23 = vpop.eup %1551  ;;  %v867_v24 = vadd.f32 1.0, %v1550_v18  ;;  %1571 = vrcp.f32 %v864_v13  ;;  %v960_v16 = vmul.f32 %v1971_v42, %v923_v29  ;;  %v932_v17 = vunpack.c.h.bf16 %v1959_v36 }
 0x223   : > { %v1554_v27 = vpop.eup %1553  ;;  %v868_v28 = vadd.f32 1.0, %v1552_v23  ;;  %1573 = vrcp.f32 %v862_v14  ;;  %v961_v8 = vmul.f32 %v1967_v39, %v924_v30  ;;  %v929_v19 = vunpack.c.l.bf16 %v1949_v22 }
 0x224   : > { %v1556_v32 = vpop.eup %1555  ;;  %v869_v33 = vadd.f32 1.0, %v1554_v27  ;;  %1575 = vrcp.f32 %v867_v24  ;;  %v962_v24 = vmul.f32 %v1981_v51, %v925_v52  ;;  %v991_v30 = vrot.slane %v986_v50, %v1748_v6 }
 0x225   : > { %v1558_v37 = vpop.eup %1557  ;;  %v870_v11 = vadd.f32 1.0, %v1556_v32  ;;  %1577 = vrcp.f32 %v868_v28  ;;  %v963_v28 = vmul.f32 %v1963_v38, %v926_v34  ;;  %v917_v21 = vunpack.c.l.bf16 %v1932_v5 }
 0x226   : > { %v1560_v40 = vpop.eup %1559  ;;  %v871_v41 = vadd.f32 1.0, %v1558_v37  ;;  %1579 = vrcp.f32 %v869_v33  ;;  %v964_v33 = vmul.f32 %v1971_v42, %v927_v43  ;;  %v968_v5 = vmul.f32 %v1971_v42, %v931_v47 }
 0x227   : > { %v1562_v44 = vpop.eup %1561  ;;  %v872_v45 = vadd.f32 1.0, %v1560_v40  ;;  %1581 = vrcp.f32 %v870_v11  ;;  %v995_v11 = vrot.slane %v986_v50, %v1750_v7  ;;  %v967_v7 = vmul.f32 %v1963_v38, %v930_v35 }
 0x228   : > { %v1564_v48 = vpop.eup %1563  ;;  %v873_v49 = vadd.f32 1.0, %v1562_v44  ;;  %1583 = vrcp.f32 %v871_v41  ;;  %v965_v44 = vmul.f32 %v1967_v39, %v928_v46  ;;  %v969_v22 = vmul.f32 %v1967_v39, %v932_v17 }
 0x229   : > { %v1566_v53 = vpop.eup %1565  ;;  %v874_v54 = vadd.f32 1.0, %v1564_v48  ;;  %1585 = vrcp.f32 %v872_v45  ;;  %v966_v48 = vmul.f32 %v1981_v51, %v929_v19  ;;  %v954_v35 = vmul.f32 %v1981_v51, %v917_v21 }
 0x22a   : > { %v1568_v57 = vpop.eup %1567  ;;  %v875_v58 = vadd.f32 1.0, %v1566_v53  ;;  %1587 = vrcp.f32 %v873_v49  ;;  %v921_v53 = vunpack.c.l.bf16 %v1935_v10 }
 0x22b   : > { %v1570_v63 = vpop.eup %1569  ;;  %v876_v0 = vadd.f32 1.0, %v1568_v57  ;;  %1589 = vrcp.f32 %v874_v54 }
 0x22c   : > { %v1572_v2 = vpop.eup %1571  ;;  %1591 = vrcp.f32 %v875_v58  ;;  %v972_v13 = vadd.f32 %v1570_v63, %v956_v61  ;;  %v958_v42 = vmul.f32 %v1981_v51, %v921_v53 }
 0x22d   : > { %v1574_v14 = vpop.eup %1573  ;;  %1593 = vrcp.f32 %v876_v0  ;;  %v973_v15 = vadd.f32 %v1572_v2, %v957_v56  ;;  %v959_v56 = vmul.f32 %v1963_v38, %v922_v20 }
 0x22e   : > { %v1576_v18 = vpop.eup %1575  ;;  %1595 = vrcp.f32 %v866_v59  ;;  %v971_v62 = vadd.f32 %v1574_v14, %v955_v55  ;;  %v1010_v12 = vmul.f32 %v1989_v1, %v972_v13 }
 0x22f   : > { %v1578_v23 = vpop.eup %1577  ;;  %1597 = vrcp.f32 %v861_v60  ;;  %v976_v9 = vadd.f32 %v1576_v18, %v960_v16  ;;  %v1011_v27 = vmul.f32 %v1992_v3, %v973_v15 }
 0x230   : > { %v1580_v25 = vpop.eup %1579  ;;  %v977_v26 = vadd.f32 %v1578_v23, %v961_v8  ;;  %1599 = vrcp.f32 %v865_v4  ;;  %v1009_v2 = vmul.f32 %v995_v11, %v971_v62  ;;  %v1528_v62 = vld [vmem:[%s2262_s11] sm:$0xff]  }
 0x231   : > { %v1582_v29 = vpop.eup %1581  ;;  %v1014_v31 = vmul.f32 %v1989_v1, %v976_v9  ;;  %v978_v32 = vadd.f32 %v1580_v25, %v962_v24 }
 0x232   : > { %v1584_v37 = vpop.eup %1583  ;;  %v1015_v40 = vmul.f32 %v1992_v3, %v977_v26  ;;  %v979_v41 = vadd.f32 %v1582_v29, %v963_v28 }
 0x233   : > { %v1586_v45 = vpop.eup %1585  ;;  %v1028_v34 = vpack.c.bf16 %v1014_v31, %v1010_v12  ;;  %v980_v6 = vadd.f32 %v1584_v37, %v964_v33  ;;  %v1016_v55 = vmul.f32 %v991_v30, %v978_v32 }
 0x234   : > { %v1588_v49 = vpop.eup %1587  ;;  %v1029_v52 = vpack.c.bf16 %v1015_v40, %v1011_v27  ;;  %v981_v43 = vadd.f32 %v1586_v45, %v965_v44  ;;  %v1017_v58 = vmul.f32 %v995_v11, %v979_v41 }
 0x235   : > { %v1590_v50 = vpop.eup %1589  ;;  %v982_v54 = vadd.f32 %v1588_v49, %v966_v48  ;;  %v1018_v36 = vmul.f32 %v1989_v1, %v980_v6 }
 0x236   : > { %v1592_v46 = vpop.eup %1591  ;;  %1086 = vmatprep.subr.bf16.mxu0 %v1029_v52  ;;  %v983_v57 = vadd.f32 %v1590_v50, %v967_v7  ;;  %v1019_v20 = vmul.f32 %v1992_v3, %v981_v43 }
 0x237   : > { %v1594_v59 = vpop.eup %1593  ;;  %1087 = vmatpush1.bf16.msra.mxu0 %v1028_v34  ;;  %v1020_v61 = vmul.f32 %v991_v30, %v982_v54  ;;  %v984_v63 = vadd.f32 %v1592_v46, %v968_v5 }
 0x238   : > { %v1596_v0 = vpop.eup %1595  ;;  %v1021_v47 = vmul.f32 %v995_v11, %v983_v57  ;;  %v985_v10 = vadd.f32 %v1594_v59, %v969_v22 }
 0x239   : > { %v1598_v38 = vpop.eup %1597  ;;  %v975_v60 = vadd.f32 %v1596_v0, %v959_v56  ;;  %v1030_v4 = vpack.c.bf16 %v1020_v61, %v1016_v55  ;;  %v1022_v39 = vmul.f32 %v1989_v1, %v984_v63 }
 0x23a   : > { %v1600_v13 = vpop.eup %1599  ;;  %v970_v14 = vadd.f32 %v1598_v38, %v954_v35  ;;  %v1031_v15 = vpack.c.bf16 %v1021_v47, %v1017_v58  ;;  %v1023_v16 = vmul.f32 %v1992_v3, %v985_v10 }
 0x23b   : > { %v1013_v17 = vmul.f32 %v995_v11, %v975_v60  ;;  %v974_v18 = vadd.f32 %v1600_v13, %v958_v42  ;;  %v1032_v8 = vpack.c.bf16 %v1022_v39, %v1018_v36 }
 0x23c   : > { %v1008_v19 = vmul.f32 %v991_v30, %v970_v14  ;;  %v1033_v51 = vpack.c.bf16 %v1023_v16, %v1019_v20 }
 0x23d   : > { %v1027_v23 = vpack.c.bf16 %v1013_v17, %v1009_v2  ;;  %v1012_v9 = vmul.f32 %v991_v30, %v974_v18  ;;  %v1196_v17 = vld [vmem:[%s2263_s12] sm:$0xff]  ;;  %v1197_v18 = vld [vmem:[%s2263_s12 + $0x8] sm:$0xff] }
 0x23e   : > { %1088 = vmatprep.subr.bf16.mxu0 %v1033_v51  ;;  %v1199_v51 = vld [vmem:[%s2263_s12 + $0x18] sm:$0xff] }
 0x23f   : > { %1043 = vmatprep.subr.bf16.mxu1 %v1027_v23  ;;  %v1026_v12 = vpack.c.bf16 %v1012_v9, %v1008_v19  ;;  %1089 = vmatpush1.bf16.msra.mxu0 %v1032_v8  ;;  %v1198_v19 = vld [vmem:[%s2263_s12 + $0x10] sm:$0xff]  ;;  %v1200_v23 = vld [vmem:[%s2263_s12 + $0x20] sm:$0xff] }
 0x241   : > { %1044 = vmatpush1.bf16.msra.mxu1 %v1026_v12 }
 0x242   : > { %1045 = vmatprep.subr.bf16.mxu1 %v1031_v15  ;;  %1481 = vmatmul.mubr.msk.bf16.vlgmr.msra.gmra.mrb[4].mxu0 %vm1039_vm2, %v1528_v62 }
 0x245   : > { %1046 = vmatpush1.bf16.msra.mxu1 %v1030_v4 }
 0x248   : > { %1480 = vmatmul.mubr.msk.bf16.vlgmr.msra.gmra.mrb[0].mxu1 %vm1039_vm2, %v1528_v62 }
 0x315   : > { %v2033_v1 = vpop.f32.mrb[4].mxu0 }
 0x316   : > { %v2035_v3 = vpop.f32.mrb[5].mxu0  ;;  %v1148_v29 = vmul.f32 %v2033_v1, %v2033_v1 }
 0x317   : > { %v2037_v24 = vpop.f32.mrb[6].mxu0  ;;  %v1149_v41 = vmul.f32 %v2035_v3, %v2035_v3 }
 0x318   : > { %v2039_v25 = vpop.f32.mrb[7].mxu0  ;;  %v1152_v52 = vmul.f32 %v2037_v24, %v2037_v24 }
 0x319   : > { %v1153_v43 = vmul.f32 %v2039_v25, %v2039_v25 }
 0x31b   : > { %v2041_v26 = vpop.f32.mrb[0].mxu1 }
 0x31c   : > { %v1146_v27 = vmul.f32 %v2041_v26, %v2041_v26  ;;  %v2045_v28 = vpop.f32.mrb[1].mxu1 }
 0x31d   : > { %v1129_v30 = vadd.f32 %v2045_v28, %v2041_v26  ;;  %v1147_v31 = vmul.f32 %v2045_v28, %v2045_v28  ;;  %v2053_v32 = vpop.f32.mrb[2].mxu1 }
 0x31e   : > { %v2055_v33 = vpop.f32.mrb[3].mxu1  ;;  %v1150_v34 = vmul.f32 %v2053_v32, %v2053_v32 }
 0x31f   : > { %v1154_v37 = vadd.f32 %v1147_v31, %v1146_v27  ;;  %v1130_v11 = vadd.f32 %v1129_v30, %v2033_v1  ;;  %v1151_v49 = vmul.f32 %v2055_v33, %v2055_v33  ;;  %v1213_v30 = vld [vmem:[%s2264_s13 + $0x8] sm:$0xff]  ;;  %v1214_v31 = vld [vmem:[%s2264_s13 + $0x10] sm:$0xff] }
 0x321   : > { %v1131_v40 = vadd.f32 %v1130_v11, %v2035_v3  ;;  %v1155_v44 = vadd.f32 %v1154_v37, %v1148_v29 }
 0x323   : > { %v1156_v45 = vadd.f32 %v1155_v44, %v1149_v41  ;;  %v1132_v21 = vadd.f32 %v1131_v40, %v2053_v32  ;;  %v1216_v44 = vld [vmem:[%s2264_s13 + $0x20] sm:$0xff] }
 0x325   : > { %v1157_v48 = vadd.f32 %v1156_v45, %v1150_v34  ;;  %v1133_v6 = vadd.f32 %v1132_v21, %v2055_v33  ;;  %v1217_v45 = vld [vmem:[%s2264_s13 + $0x28] sm:$0xff] }
 0x327   : > { %v1158_v53 = vadd.f32 %v1157_v48, %v1151_v49  ;;  %v1134_v7 = vadd.f32 %v1133_v6, %v2037_v24  ;;  %v1218_v6 = vld [vmem:[%s2264_s13 + $0x30] sm:$0xff] }
 0x329   : > { %v1135_v50 = vadd.f32 %v1134_v7, %v2039_v25  ;;  %v1159_v54 = vadd.f32 %v1158_v53, %v1152_v52 }
 0x32b   : > { %1136 = vadd.xlane.f32.xlu0 %v1135_v50  ;;  %v1160_v55 = vadd.f32 %v1159_v54, %v1153_v43 }
 0x32d   : > { %1161 = vadd.xlane.f32.xlu1 %v1160_v55  ;;  %v1219_v55 = vld [vmem:[%s2264_s13 + $0x38] sm:$0xff] }
 0x3b8   : > { %v1137_v5 = vpop.xlane.xlu0 %1136 }
 0x3b9   : > { %v1138_v46 = vrot.slane %v1137_v5, 4 }
 0x3ba   : > { %v1162_v56 = vpop.xlane.xlu1 %1161 }
 0x3bb   : > { %v1139_v57 = vadd.f32 %v1138_v46, %v1137_v5  ;;  %v1163_v58 = vrot.slane %v1162_v56, 4 }
 0x3bd   : > { %v1140_v22 = vrot.slane %v1139_v57, 2  ;;  %v1164_v59 = vadd.f32 %v1163_v58, %v1162_v56 }
 0x3bf   : > { %v1141_v35 = vadd.f32 %v1140_v22, %v1139_v57  ;;  %v1165_v61 = vrot.slane %v1164_v59, 2 }
 0x3c1   : > { %v1166_v63 = vadd.f32 %v1165_v61, %v1164_v59  ;;  %v1142_v36 = vrot.slane %v1141_v35, 1 }
 0x3c3   : > { %v1143_v0 = vadd.f32 %v1142_v36, %v1141_v35  ;;  %v1167_v42 = vrot.slane %v1166_v63, 1 }
 0x3c5   : > { %1509 = vpush %v1143_v0  ;;  %v1168_v47 = vadd.f32 %v1167_v42, %v1166_v63 }
 0x3c7   : > { %1511 = vpush %v1168_v47 }
 0x3f6   : > { %s1510_s23 = spop %1509 }
 0x3f7   : > { %s1145_s26 = smul.f32 0.0009765625, %s1510_s23  ;;  %s1487_s23 = sshll.u32 %s2277_s16, 4 }
 0x3f8   : > { %s1512_s27 = spop %1511 }
 0x3f9   : > { %s1171_s28 = smul.f32 %s1145_s26, %s1145_s26  ;;  %v1178_v10 = vstv %s1145_s26  ;;  %s519_s26 = scalar_lea.vmem %s2265_s14, %s1487_s23 }
 0x3fa   : > { %s1170_s29 = smul.f32 0.0009765625, %s1512_s27  ;;  %v1179_v20 = vsub.f32 %v2041_v26, %v1178_v10  ;;  %v1180_v38 = vsub.f32 %v2045_v28, %v1178_v10  ;;  %v1181_v60 = vsub.f32 %v2033_v1, %v1178_v10  ;;  %v1182_v2 = vsub.f32 %v2035_v3, %v1178_v10  ;;  %v1201_v3 = vld [vmem:[%s2263_s12 + $0x28] sm:$0xff] }
 0x3fb   : > { %v1183_v4 = vsub.f32 %v2053_v32, %v1178_v10  ;;  %v1184_v39 = vsub.f32 %v2055_v33, %v1178_v10  ;;  %v1185_v13 = vsub.f32 %v2037_v24, %v1178_v10  ;;  %v1186_v14 = vsub.f32 %v2039_v25, %v1178_v10  ;;  %v1202_v24 = vld [vmem:[%s2263_s12 + $0x30] sm:$0xff]  ;;  %v1212_v25 = vld [vmem:[%s2264_s13] sm:$0xff]  ;;  %v1215_v32 = vld [vmem:[%s2264_s13 + $0x18] sm:$0xff] }
 0x3fc   : > { %s1172_s17 = ssub.f32 %s1170_s29, %s1171_s28  ;;  %v1203_v33 = vld [vmem:[%s2263_s12 + $0x38] sm:$0xff] }
 0x3fe   : > { %s1173_s18 = smax.f32 %s1643_s20, %s1172_s17 }
 0x3ff   : > { %s1174_s8 = sadd.f32 1e-05, %s1173_s18 }
 0x401   : > { %v1175_v15 = vstv %s1174_s8 }
 0x402   : > { %1601 = vrsqrt.f32 %v1175_v15 }
 0x40c   : > { %v1602_v16 = vpop.eup %1601 }
 0x40d   : > { %1513 = vpush %v1602_v16 }
 0x43e   : > { %s1514_s19 = spop %1513 }
 0x43f   : > { %v1187_v8 = vstv %s1514_s19 }
 0x440   : > { %v1188_v9 = vmul.f32 %v1187_v8, %v1179_v20  ;;  %v1189_v62 = vmul.f32 %v1187_v8, %v1180_v38  ;;  %v1190_v12 = vmul.f32 %v1187_v8, %v1181_v60  ;;  %v1191_v1 = vmul.f32 %v1187_v8, %v1182_v2 }
 0x441   : > { %v1192_v26 = vmul.f32 %v1187_v8, %v1183_v4  ;;  %v1193_v27 = vmul.f32 %v1187_v8, %v1184_v39  ;;  %v1194_v28 = vmul.f32 %v1187_v8, %v1185_v13  ;;  %v1195_v29 = vmul.f32 %v1187_v8, %v1186_v14 }
 0x442   : > { %v1204_v37 = vmul.f32 %v1196_v17, %v1188_v9  ;;  %v1205_v11 = vmul.f32 %v1197_v18, %v1189_v62  ;;  %v1206_v40 = vmul.f32 %v1198_v19, %v1190_v12  ;;  %v1207_v41 = vmul.f32 %v1199_v51, %v1191_v1 }
 0x443   : > { %v1208_v21 = vmul.f32 %v1200_v23, %v1192_v26  ;;  %v1209_v34 = vmul.f32 %v1201_v3, %v1193_v27  ;;  %v1210_v48 = vmul.f32 %v1202_v24, %v1194_v28  ;;  %v1211_v43 = vmul.f32 %v1203_v33, %v1195_v29 }
 0x444   : > { %v2127_v49 = vadd.f32 %v1212_v25, %v1204_v37  ;;  %v2129_v52 = vadd.f32 %v1213_v30, %v1205_v11  ;;  %v2131_v53 = vadd.f32 %v1214_v31, %v1206_v40  ;;  %v2133_v7 = vadd.f32 %v1215_v32, %v1207_v41 }
 0x445   : > { %v2135_v50 = vadd.f32 %v1216_v44, %v1208_v21  ;;  %v2137_v54 = vadd.f32 %v1217_v45, %v1209_v34  ;;  %v2142_v5 = vadd.f32 %v1218_v6, %v1210_v48  ;;  %v2148_v22 = vadd.f32 %v1219_v55, %v1211_v43 }
 0x446   : > { %v1236_v46 = vmin.f32 %v2127_v49, 20.0  ;;  %v1237_v56 = vmin.f32 %v2129_v52, 20.0  ;;  %v1238_v57 = vmin.f32 %v2131_v53, 20.0  ;;  %v1239_v58 = vmin.f32 %v2133_v7, 20.0 }
 0x447   : > { %v1240_v59 = vmin.f32 %v2135_v50, 20.0  ;;  %v1241_v35 = vmin.f32 %v2137_v54, 20.0  ;;  %v1242_v0 = vmin.f32 %v2142_v5, 20.0  ;;  %v1243_v10 = vmin.f32 %v2148_v22, 20.0 }
 0x448   : > { %v1244_v61 = vmul.f32 1.442695, %v1236_v46  ;;  %v1246_v63 = vmul.f32 1.442695, %v1237_v56  ;;  %v1248_v36 = vmul.f32 1.442695, %v1238_v57 }
 0x449   : > { %v1250_v42 = vmul.f32 1.442695, %v1239_v58  ;;  %v1252_v47 = vmul.f32 1.442695, %v1240_v59  ;;  %v1254_v20 = vmul.f32 1.442695, %v1241_v35 }
 0x44a   : > { %1603 = vpow2.f32 %v1244_v61  ;;  %v1256_v38 = vmul.f32 1.442695, %v1242_v0  ;;  %v1258_v60 = vmul.f32 1.442695, %v1243_v10  ;;  %vm1228_vm3 = vcmp.gt.f32.partialorder %v2127_v49, 20.0 }
 0x44b   : > { %1605 = vpow2.f32 %v1246_v63  ;;  %vm1229_vm4 = vcmp.gt.f32.partialorder %v2129_v52, 20.0  ;;  %vm1230_vm5 = vcmp.gt.f32.partialorder %v2131_v53, 20.0  ;;  %vm1231_vm8 = vcmp.gt.f32.partialorder %v2133_v7, 20.0 }
 0x44c   : > { %1607 = vpow2.f32 %v1248_v36  ;;  %vm1232_vm10 = vcmp.gt.f32.partialorder %v2135_v50, 20.0  ;;  %vm1233_vm14 = vcmp.gt.f32.partialorder %v2137_v54, 20.0  ;;  %vm1234_vm0 = vcmp.gt.f32.partialorder %v2142_v5, 20.0 }
 0x44d   : > { %1609 = vpow2.f32 %v1250_v42  ;;  %vm1235_vm2 = vcmp.gt.f32.partialorder %v2148_v22, 20.0 }
 0x44e   : > { %1611 = vpow2.f32 %v1252_v47 }
 0x44f   : > { %1613 = vpow2.f32 %v1254_v20 }
 0x450   : > { %1615 = vpow2.f32 %v1256_v38 }
 0x451   : > { %1617 = vpow2.f32 %v1258_v60 }
 0x454   : > { %v1604_v2 = vpop.eup %1603 }
 0x455   : > { %v1606_v4 = vpop.eup %1605  ;;  %v1260_v39 = vadd.f32 1.0, %v1604_v2  ;;  %v1263_v18 = vmul.f32 -0.5, %v1604_v2  ;;  %v1266_v1 = vand.u32 2147483647, %v1604_v2 }
 0x456   : > { %v1608_v13 = vpop.eup %1607  ;;  %v1269_v14 = vadd.f32 1.0, %v1606_v4  ;;  %v1272_v8 = vmul.f32 -0.5, %v1606_v4  ;;  %v1275_v3 = vand.u32 2147483647, %v1606_v4 }
 0x457   : > { %v2154_v15 = vpop.eup %1609  ;;  %1619 = vlog2.f32 %v1260_v39  ;;  %v1278_v16 = vadd.f32 1.0, %v1608_v13  ;;  %v1281_v23 = vmul.f32 -0.5, %v1608_v13  ;;  %v1264_v12 = vadd.f32 1.0, %v1263_v18 }
 0x458   : > { %v2156_v17 = vpop.eup %1611  ;;  %1621 = vlog2.f32 %v1269_v14  ;;  %v1287_v19 = vadd.f32 1.0, %v2154_v15  ;;  %v1273_v25 = vadd.f32 1.0, %v1272_v8  ;;  %v1284_v26 = vand.u32 2147483647, %v1608_v13 }
 0x459   : > { %1623 = vlog2.f32 %v1278_v16  ;;  %v2159_v51 = vpop.eup %1613  ;;  %v1296_v62 = vadd.f32 1.0, %v2156_v17  ;;  %v1282_v28 = vadd.f32 1.0, %v1281_v23  ;;  %v1290_v29 = vmul.f32 -0.5, %v2154_v15 }
 0x45a   : > { %v2161_v9 = vpop.eup %1615  ;;  %1625 = vlog2.f32 %v1287_v19  ;;  %v1305_v27 = vadd.f32 1.0, %v2159_v51  ;;  %v1293_v31 = vand.u32 2147483647, %v2154_v15  ;;  %v1299_v32 = vmul.f32 -0.5, %v2156_v17 }
 0x45b   : > { %v2165_v24 = vpop.eup %1617  ;;  %1627 = vlog2.f32 %v1296_v62  ;;  %v1314_v30 = vadd.f32 1.0, %v2161_v9  ;;  %vm2174_vm6 = vcmp.lt.f32.partialorder %v1266_v1, 0.0004427343  ;;  %vm2178_vm7 = vcmp.lt.f32.partialorder %v1275_v3, 0.0004427343 }
 0x45c   : > { %1629 = vlog2.f32 %v1305_v27  ;;  %v1323_v11 = vadd.f32 1.0, %v2165_v24  ;;  %v1265_v41 = vmul.f32 %v1604_v2, %v1264_v12  ;;  %v1274_v44 = vmul.f32 %v1606_v4, %v1273_v25 }
 0x45d   : > { %1631 = vlog2.f32 %v1314_v30  ;;  %vm2184_vm9 = vcmp.lt.f32.partialorder %v1284_v26, 0.0004427343  ;;  %v1308_v21 = vmul.f32 -0.5, %v2159_v51  ;;  %v1283_v6 = vmul.f32 %v1608_v13, %v1282_v28 }
 0x45e   : > { %v1291_v43 = vadd.f32 1.0, %v1290_v29  ;;  %1633 = vlog2.f32 %v1323_v11  ;;  %vm2190_vm11 = vcmp.lt.f32.partialorder %v1293_v31, 0.0004427343  ;;  %v1300_v57 = vadd.f32 1.0, %v1299_v32 }
 0x45f   : > { %v1317_v58 = vmul.f32 -0.5, %v2161_v9  ;;  %v1302_v61 = vand.u32 2147483647, %v2156_v17  ;;  %v1326_v63 = vmul.f32 -0.5, %v2165_v24  ;;  %v1309_v42 = vadd.f32 1.0, %v1308_v21 }
 0x460   : > { %v1311_v47 = vand.u32 2147483647, %v2159_v51  ;;  %v1292_v60 = vmul.f32 %v2154_v15, %v1291_v43  ;;  %v1301_v39 = vmul.f32 %v2156_v17, %v1300_v57  ;;  %v1329_v3 = vand.u32 2147483647, %v2165_v24 }
 0x461   : > { %v1620_v40 = vpop.eup %1619  ;;  %v1318_v13 = vadd.f32 1.0, %v1317_v58  ;;  %v1327_v15 = vadd.f32 1.0, %v1326_v63  ;;  %vm1303_vm12 = vcmp.lt.f32.partialorder %v1302_v61, 0.0004427343  ;;  %v1310_v19 = vmul.f32 %v2159_v51, %v1309_v42 }
 0x462   : > { %v1622_v34 = vpop.eup %1621  ;;  %v1262_v48 = vmul.f32 0.6931472, %v1620_v40  ;;  %vm2224_vm13 = vcmp.lt.f32.partialorder %v1311_v47, 0.0004427343  ;;  %vm1330_vm1 = vcmp.lt.f32.partialorder %v1329_v3, 0.0004427343 }
 0x463   : > { %v1624_v55 = vpop.eup %1623  ;;  %v1271_v46 = vmul.f32 0.6931472, %v1622_v34  ;;  %v1319_v27 = vmul.f32 %v2161_v9, %v1318_v13 }
 0x464   : > { %v1268_v59 = vsel %vm2174_vm6, %v1265_v41, %v1262_v48  ;;  %v1280_v35 = vmul.f32 0.6931472, %v1624_v55  ;;  %v1626_v36 = vpop.eup %1625 }
 0x465   : > { %v1277_v0 = vsel %vm2178_vm7, %v1274_v44, %v1271_v46  ;;  %v1332_v10 = vsel %vm1228_vm3, %v2127_v49, %v1268_v59  ;;  %v1289_v38 = vmul.f32 0.6931472, %v1626_v36  ;;  %v1628_v4 = vpop.eup %1627  ;;  %v1320_v49 = vand.u32 2147483647, %v2161_v9 }
 0x466   : > { %v1286_v20 = vsel %vm2184_vm9, %v1283_v6, %v1280_v35  ;;  %v1333_v2 = vsel %vm1229_vm4, %v2129_v52, %v1277_v0  ;;  %v1298_v18 = vmul.f32 0.6931472, %v1628_v4  ;;  %v1630_v8 = vpop.eup %1629 }
 0x467   : > { %v1340_v14 = vadd.f32 %v1333_v2, %v1332_v10  ;;  %v1295_v16 = vsel %vm2190_vm11, %v1292_v60, %v1289_v38  ;;  %v1334_v52 = vsel %vm1230_vm5, %v2131_v53, %v1286_v20  ;;  %v1632_v62 = vpop.eup %1631  ;;  %v1307_v1 = vmul.f32 0.6931472, %v1630_v8  ;;  %v1482_v53 = vld [vmem:[%s514_s30] ss:$0 sm:$0xff] }
 0x468   : > { %v1304_v12 = vsel %vm1303_vm12, %v1301_v39, %v1298_v18  ;;  %v1335_v25 = vsel %vm1231_vm8, %v2133_v7, %v1295_v16  ;;  %v1316_v26 = vmul.f32 0.6931472, %v1632_v62  ;;  %v1634_v29 = vpop.eup %1633  ;;  %vm1321_vm15 = vcmp.lt.f32.partialorder %v1320_v49, 0.0004427343 }
 0x469   : > { %v1342_v23 = vadd.f32 %v1340_v14, %v1334_v52  ;;  %v1336_v51 = vsel %vm1232_vm10, %v2135_v50, %v1304_v12  ;;  %v1313_v30 = vsel %vm2224_vm13, %v1310_v19, %v1307_v1  ;;  %v1328_v7 = vmul.f32 %v2165_v24, %v1327_v15 }
 0x46a   : > { %v1322_v31 = vsel %vm1321_vm15, %v1319_v27, %v1316_v26  ;;  %v1325_v9 = vmul.f32 0.6931472, %v1634_v29  ;;  %v1337_v32 = vsel %vm1233_vm14, %v2137_v54, %v1313_v30 }
 0x46b   : > { %v1344_v28 = vadd.f32 %v1342_v23, %v1335_v25  ;;  %v1341_v50 = vadd.f32 %v1337_v32, %v1336_v51  ;;  %v1338_v11 = vsel %vm1234_vm0, %v2142_v5, %v1322_v31 }
 0x46c   : > { %v1331_v37 = vsel %vm1330_vm1, %v1328_v7, %v1325_v9 }
 0x46d   : > { %v1353_v33 = vmul.f32 %v1482_v53, %v1344_v28  ;;  %v1343_v40 = vadd.f32 %v1341_v50, %v1338_v11  ;;  %v1339_v41 = vsel %vm1235_vm2, %v2148_v22, %v1331_v37 }
 0x46f   : > { %1355 = vst [vmem:[%s519_s26] sm:$0xff] %v1353_v33  ;;  %v1345_v44 = vadd.f32 %v1343_v40, %v1339_v41 }
 0x471   : > { %v1354_v24 = vmul.f32 %v1482_v53, %v1345_v44 }
 0x473   : > { %1356 = vst [vmem:[%s519_s26 + $0x8] sm:$0xff] %v1354_v24 }
 0x474 PF: > { %s25_s15 = sadd.s32 1, %s1641_s15  }
 0x475   : > { %p22_p4 = scmp.ge.s32.totalorder %s25_s15, 4  }
 0x477   :  { %24 = sbr.rel (!%p22_p4) target bundleno = 2 (0x2), region = 115 }

// kernel: encoder_forward.5
= control target key start
LH: loop header
LB: loop body
LE: loop exit
PB: predicated region body
PF: predicated region fallthrough
CT: control target
= control target key end

     0   :  { %vm59_vm0 = vcmask 130048   ;;  %s962_s0 = inlined_call_operand.vmem [shape: bf16[2,16,128], index: 0, kind: input, shape index: {}]   ;;  %s963_s1 = inlined_call_operand.vmem [shape: bf16[2,16,128], index: 1, kind: input, shape index: {}]   ;;  %s964_s2 = inlined_call_operand.vmem [shape: bf16[32,16], index: 2, kind: input, shape index: {}]   ;;  %s965_s3 = inlined_call_operand.vmem [shape: bf16[32,16], index: 3, kind: input, shape index: {}]   ;;  %s966_s4 = inlined_call_operand.vmem [shape: f32[32,128], index: 4, kind: input, shape index: {}]   ;;  %s967_s5 = inlined_call_operand.vmem [shape: f32[32,128], index: 5, kind: input, shape index: {}]   ;;  %s968_s6 = inlined_call_operand.vmem [shape: f32[2,1,128], index: 6, kind: input, shape index: {}]   ;;  %s969_s7 = inlined_call_operand.vmem [shape: f32[2,1,128], index: 7, kind: input, shape index: {}]   ;;  %s970_s8 = inlined_call_operand.hbm [shape: f32[2,32], index: 8, kind: output, shape index: {}]  }
   0x1   :  { %v689_v0 = vld [vmem:[%s963_s1] sm:$0xff]   ;;  %v691_v2 = vld [vmem:[%s965_s3 + $0x8] sm:$0xff]  }
   0x2   :  { %v690_v1 = vld [vmem:[%s965_s3] sm:$0xff]   ;;  %642 = vmatprep.subr.bf16.mxu0 %v689_v0  ;;  %v695_v5 = vld [vmem:[%s963_s1 + $0x8] sm:$0xff]  }
   0x3   :  { %643 = vmatpush3.bf16.msra.mxu0 %v689_v0  ;;  %644 = vmatprep.mubr.msk.bf16.mxu0 %vm59_vm0, %v690_v1  ;;  %v692_v3 = vld [vmem:[%s962_s0] sm:$0xff]   ;;  %v696_v6 = vld [vmem:[%s962_s0 + $0x8] sm:$0xff]  }
   0x4   :  { %v693_v4 = vld [vmem:[%s964_s2] sm:$0xff]   ;;  %656 = vmatprep.mubr.msk.bf16.mxu1 %vm59_vm0, %v690_v1  ;;  %648 = vmatprep.subr.bf16.mxu0 %v692_v3 }
   0x5   :  { %654 = vmatprep.subr.bf16.mxu1 %v695_v5 }
   0x6   :  { %645 = vmatmul.mubr.msk.bf16.vlgmr.msra.gmra.mrb[0].mxu0 %vm59_vm0, %v691_v2 }
   0x7   :  { %649 = vmatpush3.bf16.msra.mxu0 %v692_v3  ;;  %650 = vmatprep.mubr.msk.bf16.mxu0 %vm59_vm0, %v693_v4 }
   0x8   :  { %13 = vsyncpa [#allocation3], 0  ;;  %655 = vmatpush3.bf16.msra.mxu1 %v695_v5  ;;  %v694_v7 = vld [vmem:[%s964_s2 + $0x8] sm:$0xff]   ;;  %s725_s23 = smov 0.0   ;;  %vm547_vm13 = vcmask 130112   ;;  %vm554_vm14 = vcmask 195712  }
   0x9   :  { %660 = vmatprep.subr.bf16.mxu1 %v696_v6  ;;  %vm561_vm15 = vcmask 261312  }
   0xb   :  { %657 = vmatmul.mubr.msk.bf16.vlgmr.msra.gmra.mrb[0].mxu1 %vm59_vm0, %v691_v2 }
   0xc   :  { %661 = vmatpush3.bf16.msra.mxu1 %v696_v6  ;;  %662 = vmatprep.mubr.msk.bf16.mxu1 %vm59_vm0, %v693_v4 }
  0x12   :  { %651 = vmatmul.mubr.msk.bf16.vlgmr.msra.gmra.mrb[0].mxu0 %vm59_vm0, %v694_v7 }
  0x17   :  { %663 = vmatmul.mubr.msk.bf16.vlgmr.msra.gmra.mrb[0].mxu1 %vm59_vm0, %v694_v7  ;;  %v265_v7 = vlaneseq  ;;  %vm588_vm0 = vcmask 1040384  }
  0xe5   :  { %v805_v8 = vpop.f32.mrb[0].mxu0 }
  0xe6   :  { %v807_v9 = vpop.f32.mrb[1].mxu0  ;;  %v201_v15 = vmul.f32 %v805_v8, %v805_v8 }
  0xe7   :  { %v809_v10 = vpop.f32.mrb[2].mxu0  ;;  %v199_v12 = vmul.f32 %v807_v9, %v807_v9 }
  0xe8   :  { %v811_v11 = vpop.f32.mrb[3].mxu0  ;;  %v202_v21 = vmul.f32 %v809_v10, %v809_v10 }
  0xe9   :  { %v186_v13 = vadd.f32 %v811_v11, %v807_v9  ;;  %v200_v14 = vmul.f32 %v811_v11, %v811_v11 }
  0xea   :  { %v822_v18 = vpop.f32.mrb[0].mxu1 }
  0xeb   :  { %v203_v16 = vadd.f32 %v200_v14, %v199_v12  ;;  %v187_v17 = vadd.f32 %v805_v8, %v186_v13  ;;  %v824_v19 = vpop.f32.mrb[1].mxu1  ;;  %v435_v27 = vmul.f32 %v822_v18, %v822_v18  ;;  %v861_v13 = vld [vmem:[%s966_s4] sm:$0xff] }
  0xec   :  { %v433_v23 = vmul.f32 %v824_v19, %v824_v19  ;;  %v831_v24 = vpop.f32.mrb[2].mxu1 }
  0xed   :  { %v188_v20 = vadd.f32 %v809_v10, %v187_v17  ;;  %v204_v22 = vadd.f32 %v203_v16, %v201_v15  ;;  %v833_v25 = vpop.f32.mrb[3].mxu1  ;;  %v436_v32 = vmul.f32 %v831_v24, %v831_v24  ;;  %v866_v15 = vld [vmem:[%s966_s4 + $0x8] sm:$0xff]  ;;  %v871_v16 = vld [vmem:[%s966_s4 + $0x10] sm:$0xff]  ;;  %v876_v17 = vld [vmem:[%s966_s4 + $0x18] sm:$0xff] }
  0xee   :  { %v420_v28 = vadd.f32 %v833_v25, %v824_v19  ;;  %v434_v29 = vmul.f32 %v833_v25, %v833_v25 }
  0xef   :  { %189 = vadd.xlane.f32.xlu0 %v188_v20  ;;  %v205_v26 = vadd.f32 %v204_v22, %v202_v21 }
  0xf0   :  { %v437_v30 = vadd.f32 %v434_v29, %v433_v23  ;;  %v421_v31 = vadd.f32 %v822_v18, %v420_v28  ;;  %v888_v28 = vld [vmem:[%s967_s5] sm:$0xff]  ;;  %v893_v29 = vld [vmem:[%s967_s5 + $0x10] sm:$0xff] }
  0xf2   :  { %v422_v33 = vadd.f32 %v831_v24, %v421_v31  ;;  %v438_v34 = vadd.f32 %v437_v30, %v435_v27  ;;  %v883_v27 = vld [vmem:[%s967_s5 + $0x8] sm:$0xff]  ;;  %v898_v30 = vld [vmem:[%s967_s5 + $0x18] sm:$0xff] }
  0xf3   :  { %206 = vadd.xlane.f32.xlu0 %v205_v26 }
  0xf4   :  { %423 = vadd.xlane.f32.xlu1 %v422_v33  ;;  %v439_v35 = vadd.f32 %v438_v34, %v436_v32 }
  0xf8   :  { %440 = vadd.xlane.f32.xlu1 %v439_v35 }
 0x17c   :  { %v190_v36 = vpop.xlane.xlu0 %189 }
 0x17d   :  { %v191_v37 = vrot.slane %v190_v36, 4 }
 0x17f   :  { %v192_v38 = vadd.f32 %v191_v37, %v190_v36 }
 0x180   :  { %v207_v39 = vpop.xlane.xlu0 %206 }
 0x181   :  { %v193_v40 = vrot.slane %v192_v38, 2  ;;  %v208_v41 = vrot.slane %v207_v39, 4  ;;  %v424_v50 = vpop.xlane.xlu1 %423 }
 0x182   :  { %v425_v52 = vrot.slane %v424_v50, 4 }
 0x183   :  { %v209_v42 = vadd.f32 %v208_v41, %v207_v39  ;;  %v194_v43 = vadd.f32 %v193_v40, %v192_v38 }
 0x184   :  { %v426_v59 = vadd.f32 %v425_v52, %v424_v50 }
 0x185   :  { %v210_v44 = vrot.slane %v209_v42, 2  ;;  %v195_v45 = vrot.slane %v194_v43, 1  ;;  %v441_v51 = vpop.xlane.xlu1 %440 }
 0x186   :  { %v442_v53 = vrot.slane %v441_v51, 4  ;;  %v427_v61 = vrot.slane %v426_v59, 2 }
 0x187   :  { %v196_v46 = vadd.f32 %v195_v45, %v194_v43  ;;  %v211_v47 = vadd.f32 %v210_v44, %v209_v42 }
 0x188   :  { %v443_v60 = vadd.f32 %v442_v53, %v441_v51  ;;  %v428_v0 = vadd.f32 %v427_v61, %v426_v59  ;;  %v627_v59 = vld [vmem:[%s968_s6 + $0x1] sm:$0x1] }
 0x189   :  { %674 = vpush %v196_v46  ;;  %v212_v48 = vrot.slane %v211_v47, 1  ;;  %vm491_vm7 = vcmp.gt.f32.partialorder %v627_v59, 0.0 }
 0x18a   :  { %v444_v62 = vrot.slane %v443_v60, 2  ;;  %v429_v2 = vrot.slane %v428_v0, 1 }
 0x18b   :  { %v213_v49 = vadd.f32 %v212_v48, %v211_v47 }
 0x18c   :  { %v445_v1 = vadd.f32 %v444_v62, %v443_v60  ;;  %v430_v5 = vadd.f32 %v429_v2, %v428_v0 }
 0x18d   :  { %676 = vpush %v213_v49 }
 0x18e   :  { %v446_v3 = vrot.slane %v445_v1, 1 }
 0x190   :  { %v447_v6 = vadd.f32 %v446_v3, %v445_v1 }
 0x1ba   :  { %s675_s0 = spop %674 }
 0x1bb   :  { %s198_s1 = smul.f32 0.001953125, %s675_s0 }
 0x1bd   :  { %v219_v54 = vstv %s198_s1  ;;  %s216_s2 = smul.f32 %s198_s1, %s198_s1 }
 0x1be   :  { %s677_s20 = spop %676  ;;  %v220_v55 = vsub.f32 %v807_v9, %v219_v54  ;;  %v221_v56 = vsub.f32 %v811_v11, %v219_v54  ;;  %v222_v57 = vsub.f32 %v805_v8, %v219_v54  ;;  %v223_v58 = vsub.f32 %v809_v10, %v219_v54  ;;  %v261_v8 = vld [vmem:[%s968_s6] sm:$0x1] }
 0x1bf   :  { %s215_s21 = smul.f32 0.001953125, %s677_s20  ;;  %v854_v9 = vshrl.u32 %v265_v7, 7  ;;  %vm263_vm1 = vcmp.gt.f32.partialorder %v261_v8, 0.0  ;;  %v726_v11 = vmov 0  }
 0x1c0   :  { %v264_v12 = vsel %vm263_vm1, 1, %v726_v11  ;;  %v492_v60 = vsel %vm491_vm7, 1, %v726_v11  ;;  %vm590_vm1 = vcmask 254976  }
 0x1c1   :  { %s217_s22 = ssub.f32 %s215_s21, %s216_s2  ;;  %v267_v10 = vsub.s32 0, %v854_v9 }
 0x1c3   :  { %s218_s24 = smax.f32 %s725_s23, %s217_s22  ;;  %v268_v20 = vrot.slane %v264_v12, %v267_v10  ;;  %v496_v2 = vrot.slane %v492_v60, %v267_v10 }
 0x1c4   :  { %s224_s25 = sadd.f32 1e-05, %s218_s24 }
 0x1c5   :  { %vm269_vm2 = vcmp.eq.s32.totalorder %v268_v20, 1  ;;  %vm497_vm8 = vcmp.eq.s32.totalorder %v496_v2, 1 }
 0x1c6   :  { %v225_v63 = vstv %s224_s25 }
 0x1c7   :  { %697 = vrsqrt.f32 %v225_v63 }
 0x1d1   :  { %v698_v4 = vpop.eup %697 }
 0x1d2   :  { %678 = vpush %v698_v4 }
 0x1d3   :  { %680 = vpush %v430_v5 }
 0x1d4   :  { %682 = vpush %v447_v6 }
 0x203   :  { %s679_s28 = spop %678 }
 0x204   :  { %v228_v14 = vstv %s679_s28  ;;  %s681_s15 = spop %680 }
 0x205   :  { %v229_v21 = vmul.f32 %v228_v14, %v220_v55  ;;  %v230_v22 = vmul.f32 %v228_v14, %v221_v56  ;;  %v231_v23 = vmul.f32 %v228_v14, %v222_v57  ;;  %v232_v26 = vmul.f32 %v228_v14, %v223_v58  ;;  %s432_s16 = smul.f32 0.001953125, %s681_s15  ;;  %s683_s3 = spop %682 }
 0x206   :  { %s449_s19 = smul.f32 0.001953125, %s683_s3 }
 0x207   :  { %v237_v31 = vmul.f32 %v861_v13, %v229_v21  ;;  %v238_v32 = vmul.f32 %v866_v15, %v230_v22  ;;  %v239_v33 = vmul.f32 %v871_v16, %v231_v23  ;;  %v240_v34 = vmul.f32 %v876_v17, %v232_v26  ;;  %s450_s22 = smul.f32 %s432_s16, %s432_s16  ;;  %v629_v22 = vld [vmem:[%s969_s7 + $0x1] ss:$0 sm:$0xff] }
 0x208   :  { %v453_v35 = vstv %s432_s16 }
 0x209   :  { %s451_s24 = ssub.f32 %s449_s19, %s450_s22  ;;  %v246_v36 = vadd.f32 %v883_v27, %v238_v32  ;;  %v245_v37 = vadd.f32 %v888_v28, %v237_v31  ;;  %v247_v38 = vadd.f32 %v893_v29, %v239_v33  ;;  %v248_v39 = vadd.f32 %v898_v30, %v240_v34 }
 0x20a   :  { %v454_v40 = vsub.f32 %v824_v19, %v453_v35  ;;  %v455_v41 = vsub.f32 %v833_v25, %v453_v35  ;;  %v456_v42 = vsub.f32 %v822_v18, %v453_v35  ;;  %v457_v43 = vsub.f32 %v831_v24, %v453_v35  ;;  %v616_v18 = vld [vmem:[%s969_s7] ss:$0 sm:$0xff]  ;;  %s727_s7 = smov [#allocation2]  }
 0x20b   :  { %s452_s5 = smax.f32 %s725_s23, %s451_s24  ;;  %vm250_vm3 = vcmp.ge.f32.partialorder %v246_v36, 0.0  ;;  %v254_v44 = vmul.f32 0.2, %v246_v36  ;;  %vm249_vm4 = vcmp.ge.f32.partialorder %v245_v37, 0.0  ;;  %v253_v45 = vmul.f32 0.2, %v245_v37 }
 0x20c   :  { %s458_s25 = sadd.f32 1e-05, %s452_s5  ;;  %vm251_vm5 = vcmp.ge.f32.partialorder %v247_v38, 0.0  ;;  %v255_v46 = vmul.f32 0.2, %v247_v38  ;;  %vm252_vm6 = vcmp.ge.f32.partialorder %v248_v39, 0.0 }
 0x20d   :  { %v258_v47 = vsel %vm250_vm3, %v246_v36, %v254_v44  ;;  %v257_v48 = vsel %vm249_vm4, %v245_v37, %v253_v45  ;;  %v256_v50 = vmul.f32 0.2, %v248_v39  ;;  %s598_s9 = sshll.u32 %s727_s7, 4  ;;  %s599_s9 = int_to_ptr.vmem [resolvable:$true] %s598_s9 }
 0x20e   :  { %v459_v49 = vstv %s458_s25  ;;  %v271_v19 = vsel %vm269_vm2, %v258_v47, -inf  ;;  %v270_v25 = vsel %vm269_vm2, %v257_v48, -inf  ;;  %v259_v24 = vsel %vm251_vm5, %v247_v38, %v255_v46  ;;  %s701_s10 = scalar_lea.vmem %s599_s9, 32  ;;  %p706_p1 = scmp.lt.s32.totalorder %s599_s9, %s599_s9 }
 0x20f   :  { %699 = vrsqrt.f32 %v459_v49  ;;  %276 = vmax.xlane.f32.xlu1 %v271_v19  ;;  %274 = vmax.xlane.f32.xlu0 %v270_v25  ;;  %v289_v51 = vmul.f32 %v616_v18, %v258_v47  ;;  %v272_v52 = vsel %vm269_vm2, %v259_v24, -inf  ;;  %v260_v53 = vsel %vm252_vm6, %v248_v39, %v256_v50  ;;  %p702_p0 = scmp.ne.s32.totalorder %s599_s9, %s701_s10  ;;  %p707_p2 = scmp.lt.s32.totalorder %s701_s10, %s701_s10 }
 0x210   :  { %v290_v54 = vmul.f32 %v616_v18, %v259_v24  ;;  %v273_v55 = vsel %vm269_vm2, %v260_v53, -inf  ;;  %v291_v57 = vmul.f32 %v616_v18, %v260_v53  ;;  %v288_v58 = vmul.f32 %v616_v18, %v257_v48 }
 0x211   :  { %p708_p3 = por %p707_p2, %p706_p1 }
 0x213   :  { %294 = vadd.xlane.f32.xlu1 %v289_v51  ;;  %278 = vmax.xlane.f32.xlu0 %v272_v52  ;;  %p709_p4 = pnand %p708_p3, %p702_p0 }
 0x217   :  { %296 = vadd.xlane.f32.xlu1 %v290_v54  ;;  %280 = vmax.xlane.f32.xlu0 %v273_v55 }
 0x219   :  { %v700_v56 = vpop.eup %699 }
 0x21a   :  { %684 = vpush %v700_v56 }
 0x21b   :  { %298 = vadd.xlane.f32.xlu1 %v291_v57  ;;  %292 = vadd.xlane.f32.xlu0 %v288_v58 }
 0x24b   :  { %s685_s29 = spop %684 }
 0x24c   :  { %v462_v61 = vstv %s685_s29 }
 0x24d   :  { %v463_v62 = vmul.f32 %v462_v61, %v454_v40  ;;  %v464_v63 = vmul.f32 %v462_v61, %v455_v41  ;;  %v465_v0 = vmul.f32 %v462_v61, %v456_v42  ;;  %v466_v1 = vmul.f32 %v462_v61, %v457_v43 }
 0x24e   :  { %v537_v42 = vand.u32 127, %v265_v7 }
 0x24f   :  { %v467_v3 = vmul.f32 %v463_v62, %v861_v13  ;;  %v468_v4 = vmul.f32 %v464_v63, %v866_v15  ;;  %v469_v5 = vmul.f32 %v465_v0, %v871_v16  ;;  %v470_v12 = vmul.f32 %v466_v1, %v876_v17 }
 0x250   :  { %v542_v45 = vadd.s32 4294967288, %v537_v42  ;;  %v540_v46 = vsub.s32 %v537_v42, %v854_v9  ;;  %v549_v48 = vadd.s32 4294967280, %v537_v42  ;;  %v556_v24 = vadd.s32 4294967272, %v537_v42 }
 0x251   :  { %v472_v6 = vadd.f32 %v468_v4, %v883_v27  ;;  %v471_v8 = vadd.f32 %v467_v3, %v888_v28  ;;  %v473_v11 = vadd.f32 %v469_v5, %v893_v29  ;;  %v474_v23 = vadd.f32 %v470_v12, %v898_v30 }
 0x252   :  { %v545_v25 = vsub.s32 %v542_v45, %v854_v9  ;;  %v552_v52 = vsub.s32 %v549_v48, %v854_v9  ;;  %v559_v58 = vsub.s32 %v556_v24, %v854_v9 }
 0x253   :  { %vm476_vm9 = vcmp.ge.f32.partialorder %v472_v6, 0.0  ;;  %v480_v14 = vmul.f32 0.2, %v472_v6  ;;  %vm475_vm10 = vcmp.ge.f32.partialorder %v471_v8, 0.0  ;;  %v479_v20 = vmul.f32 0.2, %v471_v8 }
 0x254   :  { %vm477_vm11 = vcmp.ge.f32.partialorder %v473_v11, 0.0  ;;  %v481_v10 = vmul.f32 0.2, %v473_v11  ;;  %v482_v28 = vmul.f32 0.2, %v474_v23  ;;  %vm478_vm12 = vcmp.ge.f32.partialorder %v474_v23, 0.0 }
 0x255   :  { %v484_v13 = vsel %vm476_vm9, %v472_v6, %v480_v14  ;;  %v483_v21 = vsel %vm475_vm10, %v471_v8, %v479_v20 }
 0x256   :  { %v499_v15 = vsel %vm497_vm8, %v484_v13, -inf  ;;  %v498_v16 = vsel %vm497_vm8, %v483_v21, -inf  ;;  %v485_v17 = vsel %vm477_vm11, %v473_v11, %v481_v10  ;;  %v517_v26 = vmul.f32 %v629_v22, %v484_v13 }
 0x257   :  { %504 = vmax.xlane.f32.xlu1 %v499_v15  ;;  %502 = vmax.xlane.f32.xlu0 %v498_v16  ;;  %v500_v27 = vsel %vm497_vm8, %v485_v17, -inf  ;;  %v518_v29 = vmul.f32 %v629_v22, %v485_v17  ;;  %v516_v31 = vmul.f32 %v629_v22, %v483_v21  ;;  %v486_v32 = vsel %vm478_vm12, %v474_v23, %v482_v28 }
 0x258   :  { %v519_v33 = vmul.f32 %v629_v22, %v486_v32  ;;  %v501_v34 = vsel %vm497_vm8, %v486_v32, -inf }
 0x25b   :  { %522 = vadd.xlane.f32.xlu1 %v517_v26  ;;  %506 = vmax.xlane.f32.xlu0 %v500_v27 }
 0x25f   :  { %524 = vadd.xlane.f32.xlu1 %v518_v29  ;;  %520 = vadd.xlane.f32.xlu0 %v516_v31 }
 0x263   :  { %526 = vadd.xlane.f32.xlu1 %v519_v33  ;;  %508 = vmax.xlane.f32.xlu0 %v501_v34 }
 0x29c   :  { %v277_v30 = vpop.xlane.xlu1 %276  ;;  %v275_v35 = vpop.xlane.xlu0 %274 }
 0x2a0   :  { %v295_v36 = vpop.xlane.xlu1 %294  ;;  %v279_v37 = vpop.xlane.xlu0 %278 }
 0x2a1   :  { %v301_v18 = vadd.f32 %v295_v36, %v277_v30 }
 0x2a3   :  { %v546_v55 = vrot.slane %v301_v18, %v545_v25 }
 0x2a4   :  { %v297_v38 = vpop.xlane.xlu1 %296  ;;  %v281_v39 = vpop.xlane.xlu0 %280 }
 0x2a5   :  { %v302_v53 = vadd.f32 %v297_v38, %v279_v37 }
 0x2a7   :  { %v553_v63 = vrot.slane %v302_v53, %v552_v52 }
 0x2a8   :  { %v299_v40 = vpop.xlane.xlu1 %298  ;;  %v293_v41 = vpop.xlane.xlu0 %292 }
 0x2a9   :  { %v300_v47 = vadd.f32 %v293_v41, %v275_v35  ;;  %v303_v59 = vadd.f32 %v299_v40, %v281_v39 }
 0x2ab   :  { %v541_v50 = vrot.slane %v300_v47, %v540_v46  ;;  %v560_v6 = vrot.slane %v303_v59, %v559_v58 }
 0x2ad   :  { %v548_v60 = vsel %vm547_vm13, %v546_v55, %v541_v50 }
 0x2ae   :  { %v555_v5 = vsel %vm554_vm14, %v553_v63, %v548_v60 }
 0x2af   :  { %v562_v11 = vsel %vm561_vm15, %v560_v6, %v555_v5 }
 0x2e4   :  { %v505_v43 = vpop.xlane.xlu1 %504  ;;  %v503_v44 = vpop.xlane.xlu0 %502 }
 0x2e8   :  { %v523_v49 = vpop.xlane.xlu1 %522  ;;  %v507_v19 = vpop.xlane.xlu0 %506 }
 0x2e9   :  { %v529_v51 = vadd.f32 %v523_v49, %v505_v43 }
 0x2eb   :  { %v575_v61 = vrot.slane %v529_v51, %v545_v25 }
 0x2ec   :  { %v525_v7 = vpop.xlane.xlu1 %524  ;;  %v521_v54 = vpop.xlane.xlu0 %520 }
 0x2ed   :  { %v530_v56 = vadd.f32 %v525_v7, %v507_v19  ;;  %v528_v57 = vadd.f32 %v521_v54, %v503_v44 }
 0x2ef   :  { %v571_v62 = vrot.slane %v528_v57, %v540_v46  ;;  %v580_v0 = vrot.slane %v530_v56, %v552_v52 }
 0x2f0   :  { %v527_v1 = vpop.xlane.xlu1 %526  ;;  %v509_v2 = vpop.xlane.xlu0 %508 }
 0x2f1   :  { %v576_v3 = vsel %vm547_vm13, %v575_v61, %v571_v62  ;;  %v531_v4 = vadd.f32 %v527_v1, %v509_v2 }
 0x2f2   :  { %v581_v8 = vsel %vm554_vm14, %v580_v0, %v576_v3 }
 0x2f3   :  { %v585_v9 = vrot.slane %v531_v4, %v559_v58 }
 0x2f5   :  { %v586_v12 = vsel %vm561_vm15, %v585_v9, %v581_v8 }
 0x2f6   :  { %v589_v14 = vsel %vm588_vm0, %v562_v11, %v586_v12 }
 0x2f7   :  { %591 = vst.msk [vmem:[#allocation2] sm:$0x3] %vm590_vm1, %v589_v14 }
 0x2f8   :  { %712 = shalt.err (!%p709_p4)
}
 0x2f9   :  { %s713_s13 = scalar_lea.hbm %s970_s8, 32 }
 0x2fa   :  { %p714_p5 = scmp.ne.s32.totalorder %s970_s8, %s713_s13  ;;  %p717_p6 = scmp.lt.u32.totalorder %s713_s13, %s970_s8 }
 0x2fc   :  { %p719_p7 = pnand %p717_p6, %p714_p5 }
 0x2fe   :  { %722 = shalt.err (!%p719_p7)
}
 0x2ff   :  { %601 = dma.vmem_to_hbm [thread:$0]  %s599_s9, 32, %s970_s8, [#allocation3]  }
 0x300   :  { %723 = dma.done.wait [#allocation3], 32  }
 0x301   :  { %724 = vsyncadd [#allocation3], 4294967264 }
 0x302   :  { %605 = vsyncpa [#allocation3], 1 }

</bundles_post_ra>
